<compile_context>
chip_gen: v7x
topology: tpu7x:2x2x1
jax: 0.10.0
libtpu: 0.0.40
codegen_flags: <defaults>
</compile_context>

<pallas_src>
import functools

import jax
import jax.numpy as jnp
from jax.experimental import pallas as pl
from jax.experimental.pallas import tpu as pltpu

LANE = 128


def _round_up(x, m):
    return (x + m - 1) // m * m


def _two_conv_relu_kernel(xp1_ref, w1_ref, b1_ref, w2_ref, b2_ref,
                          y1_ref, y2_ref, xp2_ref):
    # xp1_ref: (H+2, W+2, Cin)  zero-padded conv1 input (one batch element), f32
    # w1_ref:  (9*Cin, Cp)      conv1 weights, taps folded into K, N padded, bf16
    # b1_ref:  (1, Cp)          f32
    # w2_ref:  (9*Cout, Cp)     conv2 weights, taps folded into K, N padded, bf16
    # b2_ref:  (1, Cp)          f32
    # y1_ref:  (H, W, Cout)     conv1 + ReLU output (no channel inflation)
    # y2_ref:  (H, W, Cout)     conv2 + ReLU output
    # xp2_ref: (H+2, W+2, Cout) VMEM halo scratch for x1 (f32)
    H, W, Cout = y1_ref.shape
    Cin = xp1_ref.shape[-1]
    cdt = w1_ref.dtype  # bf16 MXU operand dtype

    def im2col(ref, c):
        # 9 shifted windows of the padded buffer, folded onto the K axis.
        taps = [ref[kh:kh + H, kw:kw + W, :].reshape(H * W, c)
                for kh in range(3) for kw in range(3)]
        return jnp.concatenate(taps, axis=-1)          # (H*W, 9*c)

    # ---------------- conv1 + ReLU: one fat-K matmul on the MXU -------------
    lhs1 = im2col(xp1_ref, Cin).astype(cdt)            # (H*W, 9*Cin) bf16
    a1 = jnp.dot(lhs1, w1_ref[...], preferred_element_type=jnp.float32)
    a1 = jnp.maximum(a1 + b1_ref[...], 0.0)            # (H*W, Cp) f32
    x1 = a1[:, :Cout].reshape(H, W, Cout)              # valid channels only
    y1_ref[...] = x1.astype(y1_ref.dtype)

    # -------- refresh only the 1-px zero border of the halo scratch ---------
    # (interior is fully overwritten below; re-done every step so per-core
    #  scratch under megacore "parallel" sharding is always initialized)
    xp2_ref[0:1, :, :] = jnp.zeros((1, W + 2, Cout), xp2_ref.dtype)
    xp2_ref[H + 1:H + 2, :, :] = jnp.zeros((1, W + 2, Cout), xp2_ref.dtype)
    xp2_ref[:, 0:1, :] = jnp.zeros((H + 2, 1, Cout), xp2_ref.dtype)
    xp2_ref[:, W + 1:W + 2, :] = jnp.zeros((H + 2, 1, Cout), xp2_ref.dtype)
    xp2_ref[1:H + 1, 1:W + 1, :] = x1                  # x1 reused from VMEM

    # ------------- conv2 + ReLU: one fat-K matmul, no accumulator -----------
    lhs2 = im2col(xp2_ref, Cout).astype(cdt)           # (H*W, 9*Cout) bf16
    a2 = jnp.dot(lhs2, w2_ref[...], preferred_element_type=jnp.float32)
    a2 = jnp.maximum(a2 + b2_ref[...], 0.0)            # (H*W, Cp) f32
    y2_ref[...] = a2[:, :Cout].reshape(H, W, Cout).astype(y2_ref.dtype)


def _prep_params(w1, b1, w2, b2, compute_dtype=jnp.bfloat16):
    """Fold 3x3 taps into K (unpadded); pad only the output/N dim to 128."""
    Cin, Cout = w1.shape[2], w1.shape[3]
    Cp = max(LANE, _round_up(Cout, LANE))
    pad_o = Cp - Cout
    # Row order (kh, kw, ci) matches the kernel's im2col column order.
    w1_mat = jnp.pad(w1.reshape(9 * Cin, Cout),
                     ((0, 0), (0, pad_o))).astype(compute_dtype)
    w2_mat = jnp.pad(w2.reshape(9 * Cout, Cout),
                     ((0, 0), (0, pad_o))).astype(compute_dtype)
    b1_p = jnp.pad(b1, (0, pad_o)).reshape(1, Cp).astype(jnp.float32)
    b2_p = jnp.pad(b2, (0, pad_o)).reshape(1, Cp).astype(jnp.float32)
    return w1_mat, b1_p, w2_mat, b2_p, Cp


def two_conv_relu(x_nchw, params):
    """Forward pass of TwoConvReLU. NCHW in / (NCHW, NCHW) out, like PyTorch."""
    w1, b1, w2, b2 = params
    N, Cin, H, W = x_nchw.shape
    Cout = w1.shape[-1]
    w1_mat, b1_p, w2_mat, b2_p, Cp = _prep_params(w1, b1, w2, b2)

    # NHWC working layout; one cheap zero-pad (no host-side 9x im2col).
    x_nhwc = jnp.transpose(x_nchw, (0, 2, 3, 1))
    xp1 = jnp.pad(x_nhwc, ((0, 0), (1, 1), (1, 1), (0, 0)))  # (N, H+2, W+2, Cin)

    y1, y2 = pl.pallas_call(
        _two_conv_relu_kernel,
        out_shape=(jax.ShapeDtypeStruct((N, H, W, Cout), x_nchw.dtype),
                   jax.ShapeDtypeStruct((N, H, W, Cout), x_nchw.dtype)),
        grid=(N,),
        in_specs=[
            pl.BlockSpec((None, H + 2, W + 2, Cin), lambda n: (n, 0, 0, 0)),
            pl.BlockSpec((9 * Cin, Cp), lambda n: (0, 0)),
            pl.BlockSpec((1, Cp), lambda n: (0, 0)),
            pl.BlockSpec((9 * Cout, Cp), lambda n: (0, 0)),
            pl.BlockSpec((1, Cp), lambda n: (0, 0)),
        ],
        out_specs=(
            pl.BlockSpec((None, H, W, Cout), lambda n: (n, 0, 0, 0)),
            pl.BlockSpec((None, H, W, Cout), lambda n: (n, 0, 0, 0)),
        ),
        scratch_shapes=[
            pltpu.VMEM((H + 2, W + 2, Cout), jnp.float32),   # x1 halo buffer
        ],
        compiler_params=pltpu.CompilerParams(
            dimension_semantics=("parallel",)),
    )(xp1, w1_mat, b1_p, w2_mat, b2_p)

    # Return NCHW to match the PyTorch module.
    x1 = jnp.transpose(y1, (0, 3, 1, 2))
    x2 = jnp.transpose(y2, (0, 3, 1, 2))
    return x1, x2


def _reference_conv_relu(x_nhwc, w_hwio, b):
    y = jax.lax.conv_general_dilated(
        x_nhwc, w_hwio, window_strides=(1, 1), padding="SAME",
        dimension_numbers=("NHWC", "HWIO", "NHWC"))
    return jnp.maximum(y + b[None, None, None, :], 0.0)


if __name__ == "__main__":
    key = jax.random.PRNGKey(0)
    N, Cin, Cout, H, W = 2, 4, 8, 16, 16

    k_x, k_w1, k_b1, k_w2, k_b2 = jax.random.split(key, 5)
    x = jax.random.normal(k_x, (N, Cin, H, W), dtype=jnp.float32)

    # Deterministic synthetic parameters (HWIO layout for the kernel).
    w1 = jax.random.normal(k_w1, (3, 3, Cin, Cout), dtype=jnp.float32) * 0.1
    b1 = jax.random.normal(k_b1, (Cout,), dtype=jnp.float32) * 0.1
    w2 = jax.random.normal(k_w2, (3, 3, Cout, Cout), dtype=jnp.float32) * 0.1
    b2 = jax.random.normal(k_b2, (Cout,), dtype=jnp.float32) * 0.1
    params = (w1, b1, w2, b2)

    fwd = jax.jit(functools.partial(two_conv_relu, params=params))
    x1, x2 = fwd(x)
    jax.block_until_ready((x1, x2))

    # Sanity-check against a pure-JAX f32 reference (kernel uses bf16 MXU
    # operands with f32 accumulation, hence the loosened tolerance).
    x_nhwc = jnp.transpose(x, (0, 2, 3, 1))
    r1 = _reference_conv_relu(x_nhwc, w1, b1)
    r2 = _reference_conv_relu(r1, w2, b2)
    r1 = jnp.transpose(r1, (0, 3, 1, 2))
    r2 = jnp.transpose(r2, (0, 3, 1, 2))
    assert x1.shape == (N, Cout, H, W) and x2.shape == (N, Cout, H, W)
    assert jnp.allclose(x1, r1, atol=3e-2, rtol=3e-2)
    assert jnp.allclose(x2, r2, atol=3e-2, rtol=3e-2)

    print("KERNEL_OK")
</pallas_src>

<mosaic_0001>
module attributes {stable_mosaic.version = 11 : i64} {
  func.func @_two_conv_relu_kernel(%arg0: i32, %arg1: memref<1x18x18x4xf32, #tpu.memory_space<vmem>>, %arg2: memref<36x128xbf16, #tpu.memory_space<vmem>>, %arg3: memref<1x128xf32, #tpu.memory_space<vmem>>, %arg4: memref<72x128xbf16, #tpu.memory_space<vmem>>, %arg5: memref<1x128xf32, #tpu.memory_space<vmem>>, %arg6: memref<1x16x16x8xf32, #tpu.memory_space<vmem>>, %arg7: memref<1x16x16x8xf32, #tpu.memory_space<vmem>>, %arg8: memref<18x18x8xf32, #tpu.memory_space<vmem>>) attributes {dimension_semantics = [#tpu.dimension_semantics<parallel>], iteration_bounds = array<i64: 2>, scalar_prefetch = 0 : i64, scratch_operands = 1 : i64, tpu.core_type = #tpu.core_type<tc>, window_params = [{transform_indices = @transform_0, window_bounds = array<i64: 1, 18, 18, 4>}, {pipeline_mode = #tpu.pipeline_mode<synchronous>, transform_indices = @transform_1, window_bounds = array<i64: 36, 128>}, {pipeline_mode = #tpu.pipeline_mode<synchronous>, transform_indices = @transform_2, window_bounds = array<i64: 1, 128>}, {pipeline_mode = #tpu.pipeline_mode<synchronous>, transform_indices = @transform_3, window_bounds = array<i64: 72, 128>}, {pipeline_mode = #tpu.pipeline_mode<synchronous>, transform_indices = @transform_4, window_bounds = array<i64: 1, 128>}, {transform_indices = @transform_5, window_bounds = array<i64: 1, 16, 16, 8>}, {transform_indices = @transform_6, window_bounds = array<i64: 1, 16, 16, 8>}]} {
    %c0 = arith.constant 0 : index
    %c0_0 = arith.constant 0 : index
    %c0_1 = arith.constant 0 : index
    %c0_2 = arith.constant 0 : index
    %0 = vector.load %arg1[%c0, %c0_0, %c0_1, %c0_2] : memref<1x18x18x4xf32, #tpu.memory_space<vmem>>, vector<1x16x16x4xf32>
    %1 = vector.shape_cast %0 : vector<1x16x16x4xf32> to vector<16x16x4xf32>
    %2 = vector.shape_cast %1 : vector<16x16x4xf32> to vector<256x4xf32>
    %c0_3 = arith.constant 0 : index
    %c0_4 = arith.constant 0 : index
    %c1 = arith.constant 1 : index
    %c0_5 = arith.constant 0 : index
    %3 = vector.load %arg1[%c0_3, %c0_4, %c1, %c0_5] : memref<1x18x18x4xf32, #tpu.memory_space<vmem>>, vector<1x16x16x4xf32>
    %4 = vector.shape_cast %3 : vector<1x16x16x4xf32> to vector<16x16x4xf32>
    %5 = vector.shape_cast %4 : vector<16x16x4xf32> to vector<256x4xf32>
    %c0_6 = arith.constant 0 : index
    %c0_7 = arith.constant 0 : index
    %c2 = arith.constant 2 : index
    %c0_8 = arith.constant 0 : index
    %6 = vector.load %arg1[%c0_6, %c0_7, %c2, %c0_8] : memref<1x18x18x4xf32, #tpu.memory_space<vmem>>, vector<1x16x16x4xf32>
    %7 = vector.shape_cast %6 : vector<1x16x16x4xf32> to vector<16x16x4xf32>
    %8 = vector.shape_cast %7 : vector<16x16x4xf32> to vector<256x4xf32>
    %c0_9 = arith.constant 0 : index
    %c1_10 = arith.constant 1 : index
    %c0_11 = arith.constant 0 : index
    %c0_12 = arith.constant 0 : index
    %9 = vector.load %arg1[%c0_9, %c1_10, %c0_11, %c0_12] : memref<1x18x18x4xf32, #tpu.memory_space<vmem>>, vector<1x16x16x4xf32>
    %10 = vector.shape_cast %9 : vector<1x16x16x4xf32> to vector<16x16x4xf32>
    %11 = vector.shape_cast %10 : vector<16x16x4xf32> to vector<256x4xf32>
    %c0_13 = arith.constant 0 : index
    %c1_14 = arith.constant 1 : index
    %c1_15 = arith.constant 1 : index
    %c0_16 = arith.constant 0 : index
    %12 = vector.load %arg1[%c0_13, %c1_14, %c1_15, %c0_16] : memref<1x18x18x4xf32, #tpu.memory_space<vmem>>, vector<1x16x16x4xf32>
    %13 = vector.shape_cast %12 : vector<1x16x16x4xf32> to vector<16x16x4xf32>
    %14 = vector.shape_cast %13 : vector<16x16x4xf32> to vector<256x4xf32>
    %c0_17 = arith.constant 0 : index
    %c1_18 = arith.constant 1 : index
    %c2_19 = arith.constant 2 : index
    %c0_20 = arith.constant 0 : index
    %15 = vector.load %arg1[%c0_17, %c1_18, %c2_19, %c0_20] : memref<1x18x18x4xf32, #tpu.memory_space<vmem>>, vector<1x16x16x4xf32>
    %16 = vector.shape_cast %15 : vector<1x16x16x4xf32> to vector<16x16x4xf32>
    %17 = vector.shape_cast %16 : vector<16x16x4xf32> to vector<256x4xf32>
    %c0_21 = arith.constant 0 : index
    %c2_22 = arith.constant 2 : index
    %c0_23 = arith.constant 0 : index
    %c0_24 = arith.constant 0 : index
    %18 = vector.load %arg1[%c0_21, %c2_22, %c0_23, %c0_24] : memref<1x18x18x4xf32, #tpu.memory_space<vmem>>, vector<1x16x16x4xf32>
    %19 = vector.shape_cast %18 : vector<1x16x16x4xf32> to vector<16x16x4xf32>
    %20 = vector.shape_cast %19 : vector<16x16x4xf32> to vector<256x4xf32>
    %c0_25 = arith.constant 0 : index
    %c2_26 = arith.constant 2 : index
    %c1_27 = arith.constant 1 : index
    %c0_28 = arith.constant 0 : index
    %21 = vector.load %arg1[%c0_25, %c2_26, %c1_27, %c0_28] : memref<1x18x18x4xf32, #tpu.memory_space<vmem>>, vector<1x16x16x4xf32>
    %22 = vector.shape_cast %21 : vector<1x16x16x4xf32> to vector<16x16x4xf32>
    %23 = vector.shape_cast %22 : vector<16x16x4xf32> to vector<256x4xf32>
    %c0_29 = arith.constant 0 : index
    %c2_30 = arith.constant 2 : index
    %c2_31 = arith.constant 2 : index
    %c0_32 = arith.constant 0 : index
    %24 = vector.load %arg1[%c0_29, %c2_30, %c2_31, %c0_32] : memref<1x18x18x4xf32, #tpu.memory_space<vmem>>, vector<1x16x16x4xf32>
    %25 = vector.shape_cast %24 : vector<1x16x16x4xf32> to vector<16x16x4xf32>
    %26 = vector.shape_cast %25 : vector<16x16x4xf32> to vector<256x4xf32>
    %27 = tpu.concatenate %2, %5, %8, %11, %14, %17, %20, %23, %26 in 1 : vector<256x4xf32>, vector<256x4xf32>, vector<256x4xf32>, vector<256x4xf32>, vector<256x4xf32>, vector<256x4xf32>, vector<256x4xf32>, vector<256x4xf32>, vector<256x4xf32> -> vector<256x36xf32>
    %28 = arith.truncf %27 : vector<256x36xf32> to vector<256x36xbf16>
    %c0_33 = arith.constant 0 : index
    %c0_34 = arith.constant 0 : index
    %29 = vector.load %arg2[%c0_33, %c0_34] : memref<36x128xbf16, #tpu.memory_space<vmem>>, vector<36x128xbf16>
    %cst = arith.constant dense<0.000000e+00> : vector<256x128xf32>
    %30 = tpu.matmul %28, %29, %cst {dimension_numbers = #tpu.dot_dimension_numbers<[1], [0], [0], [1], [0, 0, 1, 1], [], []>} : vector<256x36xbf16>, vector<36x128xbf16>, vector<256x128xf32> -> vector<256x128xf32>
    %c0_35 = arith.constant 0 : index
    %c0_36 = arith.constant 0 : index
    %31 = vector.load %arg3[%c0_35, %c0_36] : memref<1x128xf32, #tpu.memory_space<vmem>>, vector<1x128xf32>
    %32 = vector.broadcast %31 : vector<1x128xf32> to vector<256x128xf32>
    %33 = arith.addf %30, %32 : vector<256x128xf32>
    %cst_37 = arith.constant 0.000000e+00 : f32
    %34 = vector.broadcast %cst_37 : f32 to vector<256x128xf32>
    %35 = arith.maximumf %33, %34 : vector<256x128xf32>
    %36 = vector.extract_strided_slice %35 {offsets = [0, 0], sizes = [256, 8], strides = [1, 1]} : vector<256x128xf32> to vector<256x8xf32>
    %37 = vector.shape_cast %36 : vector<256x8xf32> to vector<16x16x8xf32>
    %c0_38 = arith.constant 0 : index
    %c0_39 = arith.constant 0 : index
    %c0_40 = arith.constant 0 : index
    %c0_41 = arith.constant 0 : index
    %38 = vector.load %arg6[%c0_38, %c0_39, %c0_40, %c0_41] : memref<1x16x16x8xf32, #tpu.memory_space<vmem>>, vector<1x16x16x8xf32>
    %39 = vector.shape_cast %38 : vector<1x16x16x8xf32> to vector<16x16x8xf32>
    %40 = vector.shape_cast %37 : vector<16x16x8xf32> to vector<1x16x16x8xf32>
    tpu.vector_store %arg6[%c0_38, %c0_39, %c0_40, %c0_41], %40 {strides = array<i32>} : memref<1x16x16x8xf32, #tpu.memory_space<vmem>>, vector<1x16x16x8xf32>,
    %cst_42 = arith.constant 0.000000e+00 : f32
    %41 = vector.broadcast %cst_42 : f32 to vector<1x18x8xf32>
    %c0_43 = arith.constant 0 : index
    %c0_44 = arith.constant 0 : index
    %c0_45 = arith.constant 0 : index
    %42 = vector.load %arg8[%c0_43, %c0_44, %c0_45] : memref<18x18x8xf32, #tpu.memory_space<vmem>>, vector<1x18x8xf32>
    tpu.vector_store %arg8[%c0_43, %c0_44, %c0_45], %41 {strides = array<i32>} : memref<18x18x8xf32, #tpu.memory_space<vmem>>, vector<1x18x8xf32>,
    %cst_46 = arith.constant 0.000000e+00 : f32
    %43 = vector.broadcast %cst_46 : f32 to vector<1x18x8xf32>
    %c17 = arith.constant 17 : index
    %c0_47 = arith.constant 0 : index
    %c0_48 = arith.constant 0 : index
    %44 = vector.load %arg8[%c17, %c0_47, %c0_48] : memref<18x18x8xf32, #tpu.memory_space<vmem>>, vector<1x18x8xf32>
    tpu.vector_store %arg8[%c17, %c0_47, %c0_48], %43 {strides = array<i32>} : memref<18x18x8xf32, #tpu.memory_space<vmem>>, vector<1x18x8xf32>,
    %cst_49 = arith.constant 0.000000e+00 : f32
    %45 = vector.broadcast %cst_49 : f32 to vector<18x1x8xf32>
    %c0_50 = arith.constant 0 : index
    %c0_51 = arith.constant 0 : index
    %c0_52 = arith.constant 0 : index
    %46 = vector.load %arg8[%c0_50, %c0_51, %c0_52] : memref<18x18x8xf32, #tpu.memory_space<vmem>>, vector<18x1x8xf32>
    tpu.vector_store %arg8[%c0_50, %c0_51, %c0_52], %45 {strides = array<i32>} : memref<18x18x8xf32, #tpu.memory_space<vmem>>, vector<18x1x8xf32>,
    %cst_53 = arith.constant 0.000000e+00 : f32
    %47 = vector.broadcast %cst_53 : f32 to vector<18x1x8xf32>
    %c0_54 = arith.constant 0 : index
    %c17_55 = arith.constant 17 : index
    %c0_56 = arith.constant 0 : index
    %48 = vector.load %arg8[%c0_54, %c17_55, %c0_56] : memref<18x18x8xf32, #tpu.memory_space<vmem>>, vector<18x1x8xf32>
    tpu.vector_store %arg8[%c0_54, %c17_55, %c0_56], %47 {strides = array<i32>} : memref<18x18x8xf32, #tpu.memory_space<vmem>>, vector<18x1x8xf32>,
    %c1_57 = arith.constant 1 : index
    %c1_58 = arith.constant 1 : index
    %c0_59 = arith.constant 0 : index
    %49 = vector.load %arg8[%c1_57, %c1_58, %c0_59] : memref<18x18x8xf32, #tpu.memory_space<vmem>>, vector<16x16x8xf32>
    tpu.vector_store %arg8[%c1_57, %c1_58, %c0_59], %37 {strides = array<i32>} : memref<18x18x8xf32, #tpu.memory_space<vmem>>, vector<16x16x8xf32>,
    %c0_60 = arith.constant 0 : index
    %c0_61 = arith.constant 0 : index
    %c0_62 = arith.constant 0 : index
    %50 = vector.load %arg8[%c0_60, %c0_61, %c0_62] : memref<18x18x8xf32, #tpu.memory_space<vmem>>, vector<16x16x8xf32>
    %51 = vector.shape_cast %50 : vector<16x16x8xf32> to vector<256x8xf32>
    %c0_63 = arith.constant 0 : index
    %c1_64 = arith.constant 1 : index
    %c0_65 = arith.constant 0 : index
    %52 = vector.load %arg8[%c0_63, %c1_64, %c0_65] : memref<18x18x8xf32, #tpu.memory_space<vmem>>, vector<16x16x8xf32>
    %53 = vector.shape_cast %52 : vector<16x16x8xf32> to vector<256x8xf32>
    %c0_66 = arith.constant 0 : index
    %c2_67 = arith.constant 2 : index
    %c0_68 = arith.constant 0 : index
    %54 = vector.load %arg8[%c0_66, %c2_67, %c0_68] : memref<18x18x8xf32, #tpu.memory_space<vmem>>, vector<16x16x8xf32>
    %55 = vector.shape_cast %54 : vector<16x16x8xf32> to vector<256x8xf32>
    %c1_69 = arith.constant 1 : index
    %c0_70 = arith.constant 0 : index
    %c0_71 = arith.constant 0 : index
    %56 = vector.load %arg8[%c1_69, %c0_70, %c0_71] : memref<18x18x8xf32, #tpu.memory_space<vmem>>, vector<16x16x8xf32>
    %57 = vector.shape_cast %56 : vector<16x16x8xf32> to vector<256x8xf32>
    %c1_72 = arith.constant 1 : index
    %c1_73 = arith.constant 1 : index
    %c0_74 = arith.constant 0 : index
    %58 = vector.load %arg8[%c1_72, %c1_73, %c0_74] : memref<18x18x8xf32, #tpu.memory_space<vmem>>, vector<16x16x8xf32>
    %59 = vector.shape_cast %58 : vector<16x16x8xf32> to vector<256x8xf32>
    %c1_75 = arith.constant 1 : index
    %c2_76 = arith.constant 2 : index
    %c0_77 = arith.constant 0 : index
    %60 = vector.load %arg8[%c1_75, %c2_76, %c0_77] : memref<18x18x8xf32, #tpu.memory_space<vmem>>, vector<16x16x8xf32>
    %61 = vector.shape_cast %60 : vector<16x16x8xf32> to vector<256x8xf32>
    %c2_78 = arith.constant 2 : index
    %c0_79 = arith.constant 0 : index
    %c0_80 = arith.constant 0 : index
    %62 = vector.load %arg8[%c2_78, %c0_79, %c0_80] : memref<18x18x8xf32, #tpu.memory_space<vmem>>, vector<16x16x8xf32>
    %63 = vector.shape_cast %62 : vector<16x16x8xf32> to vector<256x8xf32>
    %c2_81 = arith.constant 2 : index
    %c1_82 = arith.constant 1 : index
    %c0_83 = arith.constant 0 : index
    %64 = vector.load %arg8[%c2_81, %c1_82, %c0_83] : memref<18x18x8xf32, #tpu.memory_space<vmem>>, vector<16x16x8xf32>
    %65 = vector.shape_cast %64 : vector<16x16x8xf32> to vector<256x8xf32>
    %c2_84 = arith.constant 2 : index
    %c2_85 = arith.constant 2 : index
    %c0_86 = arith.constant 0 : index
    %66 = vector.load %arg8[%c2_84, %c2_85, %c0_86] : memref<18x18x8xf32, #tpu.memory_space<vmem>>, vector<16x16x8xf32>
    %67 = vector.shape_cast %66 : vector<16x16x8xf32> to vector<256x8xf32>
    %68 = tpu.concatenate %51, %53, %55, %57, %59, %61, %63, %65, %67 in 1 : vector<256x8xf32>, vector<256x8xf32>, vector<256x8xf32>, vector<256x8xf32>, vector<256x8xf32>, vector<256x8xf32>, vector<256x8xf32>, vector<256x8xf32>, vector<256x8xf32> -> vector<256x72xf32>
    %69 = arith.truncf %68 : vector<256x72xf32> to vector<256x72xbf16>
    %c0_87 = arith.constant 0 : index
    %c0_88 = arith.constant 0 : index
    %70 = vector.load %arg4[%c0_87, %c0_88] : memref<72x128xbf16, #tpu.memory_space<vmem>>, vector<72x128xbf16>
    %cst_89 = arith.constant dense<0.000000e+00> : vector<256x128xf32>
    %71 = tpu.matmul %69, %70, %cst_89 {dimension_numbers = #tpu.dot_dimension_numbers<[1], [0], [0], [1], [0, 0, 1, 1], [], []>} : vector<256x72xbf16>, vector<72x128xbf16>, vector<256x128xf32> -> vector<256x128xf32>
    %c0_90 = arith.constant 0 : index
    %c0_91 = arith.constant 0 : index
    %72 = vector.load %arg5[%c0_90, %c0_91] : memref<1x128xf32, #tpu.memory_space<vmem>>, vector<1x128xf32>
    %73 = vector.broadcast %72 : vector<1x128xf32> to vector<256x128xf32>
    %74 = arith.addf %71, %73 : vector<256x128xf32>
    %cst_92 = arith.constant 0.000000e+00 : f32
    %75 = vector.broadcast %cst_92 : f32 to vector<256x128xf32>
    %76 = arith.maximumf %74, %75 : vector<256x128xf32>
    %77 = vector.extract_strided_slice %76 {offsets = [0, 0], sizes = [256, 8], strides = [1, 1]} : vector<256x128xf32> to vector<256x8xf32>
    %78 = vector.shape_cast %77 : vector<256x8xf32> to vector<16x16x8xf32>
    %c0_93 = arith.constant 0 : index
    %c0_94 = arith.constant 0 : index
    %c0_95 = arith.constant 0 : index
    %c0_96 = arith.constant 0 : index
    %79 = vector.load %arg7[%c0_93, %c0_94, %c0_95, %c0_96] : memref<1x16x16x8xf32, #tpu.memory_space<vmem>>, vector<1x16x16x8xf32>
    %80 = vector.shape_cast %79 : vector<1x16x16x8xf32> to vector<16x16x8xf32>
    %81 = vector.shape_cast %78 : vector<16x16x8xf32> to vector<1x16x16x8xf32>
    tpu.vector_store %arg7[%c0_93, %c0_94, %c0_95, %c0_96], %81 {strides = array<i32>} : memref<1x16x16x8xf32, #tpu.memory_space<vmem>>, vector<1x16x16x8xf32>,
    return
  }
  func.func @transform_0(%arg0: i32) -> (i32, i32, i32, i32) {
    %c0_i32 = arith.constant 0 : i32
    %c0_i32_0 = arith.constant 0 : i32
    %c0_i32_1 = arith.constant 0 : i32
    %c0_i32_2 = arith.constant 0 : i32
    return %arg0, %c0_i32, %c0_i32_0, %c0_i32_1 : i32, i32, i32, i32
  }
  func.func @transform_1(%arg0: i32) -> (i32, i32) {
    %c0_i32 = arith.constant 0 : i32
    %c0_i32_0 = arith.constant 0 : i32
    %c0_i32_1 = arith.constant 0 : i32
    return %c0_i32, %c0_i32_0 : i32, i32
  }
  func.func @transform_2(%arg0: i32) -> (i32, i32) {
    %c0_i32 = arith.constant 0 : i32
    %c0_i32_0 = arith.constant 0 : i32
    %c0_i32_1 = arith.constant 0 : i32
    return %c0_i32, %c0_i32_0 : i32, i32
  }
  func.func @transform_3(%arg0: i32) -> (i32, i32) {
    %c0_i32 = arith.constant 0 : i32
    %c0_i32_0 = arith.constant 0 : i32
    %c0_i32_1 = arith.constant 0 : i32
    return %c0_i32, %c0_i32_0 : i32, i32
  }
  func.func @transform_4(%arg0: i32) -> (i32, i32) {
    %c0_i32 = arith.constant 0 : i32
    %c0_i32_0 = arith.constant 0 : i32
    %c0_i32_1 = arith.constant 0 : i32
    return %c0_i32, %c0_i32_0 : i32, i32
  }
  func.func @transform_5(%arg0: i32) -> (i32, i32, i32, i32) {
    %c0_i32 = arith.constant 0 : i32
    %c0_i32_0 = arith.constant 0 : i32
    %c0_i32_1 = arith.constant 0 : i32
    %c0_i32_2 = arith.constant 0 : i32
    return %arg0, %c0_i32, %c0_i32_0, %c0_i32_1 : i32, i32, i32, i32
  }
  func.func @transform_6(%arg0: i32) -> (i32, i32, i32, i32) {
    %c0_i32 = arith.constant 0 : i32
    %c0_i32_0 = arith.constant 0 : i32
    %c0_i32_1 = arith.constant 0 : i32
    %c0_i32_2 = arith.constant 0 : i32
    return %arg0, %c0_i32, %c0_i32_0, %c0_i32_1 : i32, i32, i32, i32
  }
}

</mosaic_0001>

<bundles_post_ra>
// kernel: two_conv_relu.1
= control target key start
LH: loop header
LB: loop body
LE: loop exit
PB: predicated region body
PF: predicated region fallthrough
CT: control target
= control target key end

     0   :  { %s5977_s21 = smov 0   ;;  %s8776_s0 = inlined_call_operand.vmem [shape: f32[2,18,18,4], index: 0, kind: input, shape index: {}]   ;;  %s8777_s1 = inlined_call_operand.vmem [shape: bf16[36,128], index: 1, kind: input, shape index: {}]   ;;  %s8778_s2 = inlined_call_operand.vmem [shape: f32[1,128], index: 2, kind: input, shape index: {}]   ;;  %s8779_s3 = inlined_call_operand.vmem [shape: bf16[72,128], index: 3, kind: input, shape index: {}]   ;;  %s8780_s4 = inlined_call_operand.vmem [shape: f32[1,128], index: 4, kind: input, shape index: {}]   ;;  %s8781_s5 = inlined_call_operand.vmem [shape: f32[2,16,16,8], index: 5, kind: output, shape index: {0}]   ;;  %s8782_s6 = inlined_call_operand.vmem [shape: f32[2,16,16,8], index: 6, kind: output, shape index: {1}]  }
   0x1 LB: > { %s4241_s22 = sadd.s32 4294967295, %s5927_s21   ;;  %p4245_p0 = scmp.ge.s32.totalorder %s5927_s21, 1  ;;  %s5927_s21 = sphi %s5977_s21, %s17_s21  }
   0x2   : > { %p215_p1 = scmp.lt.s32.totalorder %s5927_s21, 3 }
   0x4   : > { %p216_p2 = pnand %p4245_p0, %p215_p1 }
   0x6   : > { %219 = sbr.rel (%p216_p2) target bundleno = 1160 (0x488), region = 40 }
   0xd   : > { %p250_p3 = scmp.lt.s32.totalorder %s4241_s22, 1  ;;  %s5929_s27 = smov 4   ;;  %vm1936_vm0 = vcmask 1041408   ;;  %vm1580_vm1 = vcmask 31744   ;;  %vm1613_vm2 = vcmask 64512   ;;  %vm1646_vm3 = vcmask 97280  }
   0xe   : > { %s5930_s28 = smov 8   ;;  %s5931_s29 = smov 12   ;;  %vm1679_vm4 = vcmask 130048   ;;  %vm1712_vm5 = vcmask 162816   ;;  %vm1745_vm6 = vcmask 195584   ;;  %vm1778_vm7 = vcmask 228352  }
   0xf   : > { %s8997_s22 = smov (!%p250_p3, %s4241_s22), 1  ;;  %s5932_s30 = smov 16   ;;  %vm1811_vm8 = vcmask 261120   ;;  %vm1887_vm9 = vcmask 293888   ;;  %vm2167_vm10 = vcmask 58368   ;;  %vm2173_vm11 = vcmask 57344  }
  0x10   : > { %s4611_s23 = smul.u32 432, %s8997_s22  ;;  %s5933_s7 = smov 20   ;;  %vm3924_vm12 = vcmask 1043456   ;;  %vm3684_vm13 = vcmask 326656   ;;  %vm3717_vm14 = vcmask 392192   ;;  %vm3750_vm15 = vcmask 457728  }
  0x11   : > { %s5934_s8 = smov 24   ;;  %s5935_s15 = smov 28  }
  0x12   : > { %s5991_s26 = scalar_lea.vmem %s8776_s0, %s4611_s23  ;;  %s5936_s16 = smov 32  }
  0x13   : > { %v302_v0 = vld [vmem:[%s5991_s26 + $0x31] sm:$0xff]  ;;  %v303_v1 = vld [vmem:[%s5991_s26 + $0x39] sm:$0xff]  ;;  %v298_v2 = vld [vmem:[%s5991_s26 + $0x1] sm:$0xff]  ;;  %s4487_s19 = sshll.u32 %s8997_s22, 8  ;;  %s5938_s25 = smov 48  }
  0x14   : > { %v5996_v3 = vpack.i.bf16 %v303_v1, %v302_v0  ;;  %v299_v4 = vld [vmem:[%s5991_s26 + $0x9] sm:$0xff]  ;;  %v305_v6 = vld [vmem:[%s5991_s26 + $0x51] sm:$0xff]  ;;  %v300_v8 = vld [vmem:[%s5991_s26 + $0x19] sm:$0xff]  ;;  %s7699_s24 = scalar_lea.vmem %s8781_s5, %s4487_s19  ;;  %s8676_s20 = scalar_lea.vmem %s8782_s6, %s4487_s19 }
  0x15   : > { %v304_v5 = vld [vmem:[%s5991_s26 + $0x49] sm:$0xff]  ;;  %v4633_v7 = vpack.i.bf16 %v299_v4, %v298_v2  ;;  %v301_v9 = vld [vmem:[%s5991_s26 + $0x21] sm:$0xff]  ;;  %v308_v12 = vld [vmem:[%s5991_s26 + $0x79] sm:$0xff] }
  0x16   : > { %4644 = vrot.lane.b32.xlu1 %v5996_v3, %s5929_s27  ;;  %v6005_v10 = vpack.i.bf16 %v305_v6, %v304_v5  ;;  %v6008_v11 = vpack.i.bf16 %v301_v9, %v300_v8  ;;  %v309_v13 = vld [vmem:[%s5991_s26 + $0x81] sm:$0xff]  ;;  %v307_v15 = vld [vmem:[%s5991_s26 + $0x69] sm:$0xff]  ;;  %v313_v19 = vld [vmem:[%s5991_s26 + $0xb1] sm:$0xff] }
  0x17   : > { %4634 = vrot.lane.b32.xlu0 %v4633_v7, %s5929_s27  ;;  %v306_v14 = vld [vmem:[%s5991_s26 + $0x61] sm:$0xff]  ;;  %v6016_v16 = vpack.i.bf16 %v309_v13, %v308_v12  ;;  %v312_v18 = vld [vmem:[%s5991_s26 + $0xa9] sm:$0xff]  ;;  %v310_v20 = vld [vmem:[%s5991_s26 + $0x91] sm:$0xff] }
  0x18   : > { %v6020_v17 = vpack.i.bf16 %v307_v15, %v306_v14  ;;  %v311_v21 = vld [vmem:[%s5991_s26 + $0x99] sm:$0xff]  ;;  %v6028_v22 = vpack.i.bf16 %v313_v19, %v312_v18  ;;  %v317_v25 = vld [vmem:[%s5991_s26 + $0xe1] sm:$0xff]  ;;  %v315_v27 = vld [vmem:[%s5991_s26 + $0xc9] sm:$0xff] }
  0x19   : > { %v6032_v23 = vpack.i.bf16 %v311_v21, %v310_v20  ;;  %v316_v24 = vld [vmem:[%s5991_s26 + $0xd9] sm:$0xff]  ;;  %v314_v26 = vld [vmem:[%s5991_s26 + $0xc1] sm:$0xff]  ;;  %v320_v30 = vld [vmem:[%s5991_s26 + $0x109] sm:$0xff] }
  0x1a   : > { %4649 = vrot.lane.b32.xlu1 %v6005_v10, %s5929_s27  ;;  %v6040_v28 = vpack.i.bf16 %v317_v25, %v316_v24  ;;  %v6044_v29 = vpack.i.bf16 %v315_v27, %v314_v26  ;;  %v321_v31 = vld [vmem:[%s5991_s26 + $0x111] sm:$0xff]  ;;  %v319_v33 = vld [vmem:[%s5991_s26 + $0xf9] sm:$0xff]  ;;  %v325_v37 = vld [vmem:[%s5991_s26 + $0x141] sm:$0xff] }
  0x1b   : > { %4639 = vrot.lane.b32.xlu0 %v6008_v11, %s5929_s27  ;;  %v318_v32 = vld [vmem:[%s5991_s26 + $0xf1] sm:$0xff]  ;;  %v6052_v34 = vpack.i.bf16 %v321_v31, %v320_v30  ;;  %v324_v36 = vld [vmem:[%s5991_s26 + $0x139] sm:$0xff]  ;;  %v322_v38 = vld [vmem:[%s5991_s26 + $0x121] sm:$0xff] }
  0x1c   : > { %v6056_v35 = vpack.i.bf16 %v319_v33, %v318_v32  ;;  %v323_v39 = vld [vmem:[%s5991_s26 + $0x129] sm:$0xff]  ;;  %v6064_v40 = vpack.i.bf16 %v325_v37, %v324_v36  ;;  %v329_v43 = vld [vmem:[%s5991_s26 + $0x171] sm:$0xff]  ;;  %v327_v45 = vld [vmem:[%s5991_s26 + $0x159] sm:$0xff] }
  0x1d   : > { %v6068_v41 = vpack.i.bf16 %v323_v39, %v322_v38  ;;  %v328_v42 = vld [vmem:[%s5991_s26 + $0x169] sm:$0xff]  ;;  %v326_v44 = vld [vmem:[%s5991_s26 + $0x151] sm:$0xff]  ;;  %v332_v48 = vld [vmem:[%s5991_s26 + $0x1a] sm:$0xff] }
  0x1e   : > { %4659 = vrot.lane.b32.xlu1 %v6016_v16, %s5929_s27  ;;  %v6076_v46 = vpack.i.bf16 %v329_v43, %v328_v42  ;;  %v6080_v47 = vpack.i.bf16 %v327_v45, %v326_v44  ;;  %v333_v49 = vld [vmem:[%s5991_s26 + $0x22] sm:$0xff]  ;;  %v331_v51 = vld [vmem:[%s5991_s26 + $0xa] sm:$0xff]  ;;  %v337_v55 = vld [vmem:[%s5991_s26 + $0x52] sm:$0xff] }
  0x1f   : > { %4654 = vrot.lane.b32.xlu0 %v6020_v17, %s5929_s27  ;;  %v330_v50 = vld [vmem:[%s5991_s26 + $0x2] sm:$0xff]  ;;  %v6088_v52 = vpack.i.bf16 %v333_v49, %v332_v48  ;;  %v336_v54 = vld [vmem:[%s5991_s26 + $0x4a] sm:$0xff]  ;;  %v334_v56 = vld [vmem:[%s5991_s26 + $0x32] sm:$0xff] }
  0x20   : > { %v4713_v53 = vpack.i.bf16 %v331_v51, %v330_v50  ;;  %v335_v57 = vld [vmem:[%s5991_s26 + $0x3a] sm:$0xff]  ;;  %v6098_v58 = vpack.i.bf16 %v337_v55, %v336_v54  ;;  %v341_v61 = vld [vmem:[%s5991_s26 + $0x82] sm:$0xff]  ;;  %v339_v63 = vld [vmem:[%s5991_s26 + $0x6a] sm:$0xff] }
  0x21   : > { %v6101_v59 = vpack.i.bf16 %v335_v57, %v334_v56  ;;  %v340_v60 = vld [vmem:[%s5991_s26 + $0x7a] sm:$0xff]  ;;  %v338_v62 = vld [vmem:[%s5991_s26 + $0x62] sm:$0xff]  ;;  %v344_v2 = vld [vmem:[%s5991_s26 + $0xaa] sm:$0xff] }
  0x22   : > { %4669 = vrot.lane.b32.xlu1 %v6028_v22, %s5929_s27  ;;  %v6109_v0 = vpack.i.bf16 %v341_v61, %v340_v60  ;;  %v6113_v1 = vpack.i.bf16 %v339_v63, %v338_v62  ;;  %v345_v4 = vld [vmem:[%s5991_s26 + $0xb2] sm:$0xff]  ;;  %v343_v6 = vld [vmem:[%s5991_s26 + $0x9a] sm:$0xff]  ;;  %v349_v12 = vld [vmem:[%s5991_s26 + $0xe2] sm:$0xff] }
  0x23   : > { %4664 = vrot.lane.b32.xlu0 %v6032_v23, %s5929_s27  ;;  %v342_v5 = vld [vmem:[%s5991_s26 + $0x92] sm:$0xff]  ;;  %v6121_v7 = vpack.i.bf16 %v345_v4, %v344_v2  ;;  %v348_v9 = vld [vmem:[%s5991_s26 + $0xda] sm:$0xff]  ;;  %v346_v13 = vld [vmem:[%s5991_s26 + $0xc2] sm:$0xff] }
  0x24   : > { %v6125_v8 = vpack.i.bf16 %v343_v6, %v342_v5  ;;  %v347_v14 = vld [vmem:[%s5991_s26 + $0xca] sm:$0xff]  ;;  %v6133_v15 = vpack.i.bf16 %v349_v12, %v348_v9  ;;  %v353_v20 = vld [vmem:[%s5991_s26 + $0x112] sm:$0xff]  ;;  %v351_v24 = vld [vmem:[%s5991_s26 + $0xfa] sm:$0xff] }
  0x25   : > { %v6137_v18 = vpack.i.bf16 %v347_v14, %v346_v13  ;;  %v352_v19 = vld [vmem:[%s5991_s26 + $0x10a] sm:$0xff]  ;;  %v350_v21 = vld [vmem:[%s5991_s26 + $0xf2] sm:$0xff]  ;;  %v356_v27 = vld [vmem:[%s5991_s26 + $0x13a] sm:$0xff] }
  0x26   : > { %4679 = vrot.lane.b32.xlu1 %v6040_v28, %s5929_s27  ;;  %v6145_v25 = vpack.i.bf16 %v353_v20, %v352_v19  ;;  %v6149_v26 = vpack.i.bf16 %v351_v24, %v350_v21  ;;  %v357_v30 = vld [vmem:[%s5991_s26 + $0x142] sm:$0xff]  ;;  %v355_v32 = vld [vmem:[%s5991_s26 + $0x12a] sm:$0xff]  ;;  %v361_v38 = vld [vmem:[%s5991_s26 + $0x172] sm:$0xff] }
  0x27   : > { %4674 = vrot.lane.b32.xlu0 %v6044_v29, %s5929_s27  ;;  %v354_v31 = vld [vmem:[%s5991_s26 + $0x122] sm:$0xff]  ;;  %v6157_v33 = vpack.i.bf16 %v357_v30, %v356_v27  ;;  %v360_v37 = vld [vmem:[%s5991_s26 + $0x16a] sm:$0xff]  ;;  %v358_v39 = vld [vmem:[%s5991_s26 + $0x152] sm:$0xff] }
  0x28   : > { %v6161_v36 = vpack.i.bf16 %v355_v32, %v354_v31  ;;  %v359_v42 = vld [vmem:[%s5991_s26 + $0x15a] sm:$0xff]  ;;  %v6169_v43 = vpack.i.bf16 %v361_v38, %v360_v37  ;;  %v6176_v45 = vld [vmem:[%s5991_s26 + $0x30] sm:$0xff]  ;;  %v6201_v55 = vld [vmem:[%s5991_s26 + $0x68] sm:$0xff] }
  0x29   : > { %v6173_v44 = vpack.i.bf16 %v359_v42, %v358_v39  ;;  %v6179_v48 = vld [vmem:[%s5991_s26 + $0x38] sm:$0xff]  ;;  %v6185_v50 = vld [vmem:[%s5991_s26 + $0x20] sm:$0xff]  ;;  %v6204_v56 = vld [vmem:[%s5991_s26 + $0x48] sm:$0xff] }
  0x2a   : > { %4689 = vrot.lane.b32.xlu1 %v6052_v34, %s5929_s27  ;;  %v6182_v49 = vld [vmem:[%s5991_s26 + $0x18] sm:$0xff]  ;;  %v6191_v51 = vpack.i.bf16 %v6179_v48, %v6176_v45  ;;  %v6198_v54 = vld [vmem:[%s5991_s26 + $0x60] sm:$0xff]  ;;  %v6207_v57 = vld [vmem:[%s5991_s26 + $0x50] sm:$0xff] }
  0x2b   : > { %4684 = vrot.lane.b32.xlu0 %v6056_v35, %s5929_s27  ;;  %v6213_v60 = vpack.i.bf16 %v6201_v55, %v6198_v54  ;;  %v6218_v61 = vpack.i.bf16 %v6207_v57, %v6204_v56  ;;  %v6221_v62 = vld [vmem:[%s5991_s26 + $0x90] sm:$0xff]  ;;  %v6224_v63 = vld [vmem:[%s5991_s26 + $0x98] sm:$0xff]  ;;  %v6230_v4 = vld [vmem:[%s5991_s26 + $0x80] sm:$0xff] }
  0x2c   : > { %8851 = vst [vmem:[#allocation3_spill] sm:$0xff] %v6221_v62  ;;  %8852 = vst [vmem:[#allocation4_spill] sm:$0xff] %v6224_v63  ;;  %v6227_v2 = vld [vmem:[%s5991_s26 + $0x78] sm:$0xff]  ;;  %v6236_v5 = vpack.i.bf16 %v6224_v63, %v6221_v62  ;;  %v6245_v9 = vld [vmem:[%s5991_s26 + $0xc0] sm:$0xff] }
  0x2d   : > { %v6242_v6 = vpack.i.bf16 %v6230_v4, %v6227_v2  ;;  %8853 = vst [vmem:[#allocation5_spill] sm:$0xff] %v6245_v9  ;;  %v6248_v12 = vld [vmem:[%s5991_s26 + $0xc8] sm:$0xff]  ;;  %v6254_v14 = vld [vmem:[%s5991_s26 + $0xb0] sm:$0xff]  ;;  %v6272_v24 = vld [vmem:[%s5991_s26 + $0xf8] sm:$0xff] }
  0x2e   : > { %4699 = vrot.lane.b32.xlu1 %v6064_v40, %s5929_s27  ;;  %8854 = vst [vmem:[#allocation6_spill] sm:$0xff] %v6248_v12  ;;  %v6251_v13 = vld [vmem:[%s5991_s26 + $0xa8] sm:$0xff]  ;;  %v6260_v19 = vpack.i.bf16 %v6248_v12, %v6245_v9  ;;  %v6269_v21 = vld [vmem:[%s5991_s26 + $0xf0] sm:$0xff]  ;;  %8856 = vst [vmem:[#allocation8_spill] sm:$0xff] %v6272_v24 }
  0x2f   : > { %4694 = vrot.lane.b32.xlu0 %v6068_v41, %s5929_s27  ;;  %v6266_v20 = vpack.i.bf16 %v6254_v14, %v6251_v13  ;;  %8855 = vst [vmem:[#allocation7_spill] sm:$0xff] %v6269_v21  ;;  %v6275_v27 = vld [vmem:[%s5991_s26 + $0xd8] sm:$0xff]  ;;  %v6278_v30 = vld [vmem:[%s5991_s26 + $0xe0] sm:$0xff]  ;;  %v6284_v31 = vpack.i.bf16 %v6272_v24, %v6269_v21  ;;  %v6296_v38 = vld [vmem:[%s5991_s26 + $0x128] sm:$0xff] }
  0x30   : > { %8857 = vst [vmem:[#allocation9_spill] sm:$0xff] %v6275_v27  ;;  %8858 = vst [vmem:[#allocation10_spill] sm:$0xff] %v6278_v30  ;;  %v6290_v32 = vpack.i.bf16 %v6278_v30, %v6275_v27  ;;  %v6293_v37 = vld [vmem:[%s5991_s26 + $0x120] sm:$0xff]  ;;  %v6299_v39 = vld [vmem:[%s5991_s26 + $0x108] sm:$0xff] }
  0x31   : > { %8859 = vst [vmem:[#allocation11_spill] sm:$0xff] %v6293_v37  ;;  %8860 = vst [vmem:[#allocation12_spill] sm:$0xff] %v6296_v38  ;;  %v6302_v42 = vld [vmem:[%s5991_s26 + $0x110] sm:$0xff]  ;;  %v6320_v12 = vld [vmem:[%s5991_s26 + $0x158] sm:$0xff] }
  0x32   : > { %4709 = vrot.lane.b32.xlu1 %v6076_v46, %s5929_s27  ;;  %8861 = vst [vmem:[#allocation13_spill] sm:$0xff] %v6299_v39  ;;  %8862 = vst [vmem:[#allocation14_spill] sm:$0xff] %v6302_v42  ;;  %v6314_v24 = vpack.i.bf16 %v6302_v42, %v6299_v39  ;;  %v6317_v21 = vld [vmem:[%s5991_s26 + $0x150] sm:$0xff]  ;;  %v6323_v9 = vld [vmem:[%s5991_s26 + $0x138] sm:$0xff] }
  0x33   : > { %4704 = vrot.lane.b32.xlu0 %v6080_v47, %s5929_s27  ;;  %8863 = vst [vmem:[#allocation15_spill] sm:$0xff] %v6320_v12  ;;  %v6326_v30 = vld [vmem:[%s5991_s26 + $0x140] sm:$0xff]  ;;  %v4282_v39 = vld [vmem:[%s5991_s26 + $0x188] sm:$0xff]  ;;  %v6346_v63 = vld [vmem:[%s5991_s26 + $0x170] sm:$0xff]  ;;  %s5940_s27 = smov 64  }
  0x34   : > { %v4281_v42 = vld [vmem:[%s5991_s26 + $0x180] sm:$0xff]  ;;  %v6343_v27 = vld [vmem:[%s5991_s26 + $0x168] sm:$0xff] }
  0x35   : > { %v6350_v62 = vpack.i.bf16 %v4282_v39, %v4281_v42 }
  0x36   : > { %4719 = vrot.lane.b32.xlu1 %v6088_v52, %s5930_s28 }
  0x37   : > { %4714 = vrot.lane.b32.xlu0 %v4713_v53, %s5930_s28  ;;  %v4793_v53 = vpack.i.bf16 %v6185_v50, %v6182_v49 }
  0x3a   : > { %4729 = vrot.lane.b32.xlu1 %v6098_v58, %s5930_s28 }
  0x3b   : > { %4724 = vrot.lane.b32.xlu0 %v6101_v59, %s5930_s28 }
  0x3e   : > { %4739 = vrot.lane.b32.xlu1 %v6109_v0, %s5930_s28 }
  0x3f   : > { %4734 = vrot.lane.b32.xlu0 %v6113_v1, %s5930_s28 }
  0x42   : > { %4749 = vrot.lane.b32.xlu1 %v6121_v7, %s5930_s28 }
  0x43   : > { %4744 = vrot.lane.b32.xlu0 %v6125_v8, %s5930_s28 }
  0x46   : > { %4759 = vrot.lane.b32.xlu1 %v6133_v15, %s5930_s28 }
  0x47   : > { %4754 = vrot.lane.b32.xlu0 %v6137_v18, %s5930_s28 }
  0x4a   : > { %4769 = vrot.lane.b32.xlu1 %v6145_v25, %s5930_s28 }
  0x4b   : > { %4764 = vrot.lane.b32.xlu0 %v6149_v26, %s5930_s28 }
  0x4e   : > { %4779 = vrot.lane.b32.xlu1 %v6157_v33, %s5930_s28 }
  0x4f   : > { %4774 = vrot.lane.b32.xlu0 %v6161_v36, %s5930_s28 }
  0x52   : > { %4789 = vrot.lane.b32.xlu1 %v6169_v43, %s5930_s28 }
  0x53   : > { %4784 = vrot.lane.b32.xlu0 %v6173_v44, %s5930_s28 }
  0x56   : > { %4799 = vrot.lane.b32.xlu1 %v6191_v51, %s5931_s29 }
  0x57   : > { %4794 = vrot.lane.b32.xlu0 %v4793_v53, %s5931_s29  ;;  %v6308_v53 = vpack.i.bf16 %v6296_v38, %v6293_v37  ;;  %v6332_v38 = vpack.i.bf16 %v6320_v12, %v6317_v21  ;;  %v6338_v37 = vpack.i.bf16 %v6326_v30, %v6323_v9  ;;  %v6356_v12 = vpack.i.bf16 %v6346_v63, %v6343_v27 }
  0x5a   : > { %4809 = vrot.lane.b32.xlu1 %v6213_v60, %s5931_s29 }
  0x5b   : > { %4804 = vrot.lane.b32.xlu0 %v6218_v61, %s5931_s29 }
  0x5e   : > { %4819 = vrot.lane.b32.xlu1 %v6236_v5, %s5931_s29 }
  0x5f   : > { %4814 = vrot.lane.b32.xlu0 %v6242_v6, %s5931_s29 }
  0x62   : > { %4829 = vrot.lane.b32.xlu1 %v6260_v19, %s5931_s29 }
  0x63   : > { %4824 = vrot.lane.b32.xlu0 %v6266_v20, %s5931_s29 }
  0x66   : > { %4839 = vrot.lane.b32.xlu1 %v6284_v31, %s5931_s29 }
  0x67   : > { %4834 = vrot.lane.b32.xlu0 %v6290_v32, %s5931_s29 }
  0x6a   : > { %4849 = vrot.lane.b32.xlu1 %v6308_v53, %s5931_s29 }
  0x6b   : > { %4844 = vrot.lane.b32.xlu0 %v6314_v24, %s5931_s29 }
  0x6e   : > { %4859 = vrot.lane.b32.xlu1 %v6332_v38, %s5931_s29 }
  0x6f   : > { %4854 = vrot.lane.b32.xlu0 %v6338_v37, %s5931_s29 }
  0x72   : > { %4869 = vrot.lane.b32.xlu1 %v6350_v62, %s5931_s29 }
  0x73   : > { %4864 = vrot.lane.b32.xlu0 %v6356_v12, %s5931_s29  ;;  %s5941_s29 = smov 40  }
  0x76   : > { %4879 = vrot.lane.b32.xlu1 %v5996_v3, %s5932_s30 }
  0x77   : > { %4874 = vrot.lane.b32.xlu0 %v6008_v11, %s5932_s30  ;;  %v4313_v11 = vld [vmem:[%s5991_s26 + $0x181] sm:$0xff] }
  0x7a   : > { %4889 = vrot.lane.b32.xlu1 %v6020_v17, %s5932_s30 }
  0x7b   : > { %4884 = vrot.lane.b32.xlu0 %v6005_v10, %s5932_s30 }
  0x7e   : > { %4899 = vrot.lane.b32.xlu1 %v6032_v23, %s5932_s30 }
  0x7f   : > { %4894 = vrot.lane.b32.xlu0 %v6016_v16, %s5932_s30  ;;  %v4314_v16 = vld [vmem:[%s5991_s26 + $0x189] sm:$0xff] }
  0x80   : > { %v4948_v23 = vpack.i.bf16 %v4314_v16, %v4313_v11 }
  0x82   : > { %4909 = vrot.lane.b32.xlu1 %v6044_v29, %s5932_s30 }
  0x83   : > { %4904 = vrot.lane.b32.xlu0 %v6028_v22, %s5932_s30 }
  0x86   : > { %4919 = vrot.lane.b32.xlu1 %v6056_v35, %s5932_s30 }
  0x87   : > { %4914 = vrot.lane.b32.xlu0 %v6040_v28, %s5932_s30 }
  0x88   : > { %v6382_v3 = vpop.permute.xlu1 %4644 }
  0x89   : > { %v6384_v10 = vpop.permute.xlu0 %4634 }
  0x8a   : > { %4929 = vrot.lane.b32.xlu1 %v6068_v41, %s5932_s30 }
  0x8b   : > { %4924 = vrot.lane.b32.xlu0 %v6052_v34, %s5932_s30 }
  0x8c   : > { %v6392_v17 = vpop.permute.xlu1 %4649 }
  0x8d   : > { %v6394_v22 = vpop.permute.xlu0 %4639 }
  0x8e   : > { %4939 = vrot.lane.b32.xlu1 %v6080_v47, %s5932_s30 }
  0x8f   : > { %4934 = vrot.lane.b32.xlu0 %v6064_v40, %s5932_s30 }
  0x90   : > { %v6400_v28 = vpop.permute.xlu1 %4659 }
  0x91   : > { %v6402_v29 = vpop.permute.xlu0 %4654 }
  0x92   : > { %4949 = vrot.lane.b32.xlu1 %v4948_v23, %s5932_s30 }
  0x93   : > { %4944 = vrot.lane.b32.xlu0 %v6076_v46, %s5932_s30 }
  0x94   : > { %v6407_v34 = vpop.permute.xlu1 %4669 }
  0x95   : > { %v6409_v35 = vpop.permute.xlu0 %4664 }
  0x96   : > { %4959 = vrot.lane.b32.xlu1 %v6101_v59, %s5933_s7 }
  0x97   : > { %4954 = vrot.lane.b32.xlu0 %v6088_v52, %s5933_s7 }
  0x98   : > { %v6415_v40 = vpop.permute.xlu1 %4679 }
  0x99   : > { %v6417_v41 = vpop.permute.xlu0 %4674 }
  0x9a   : > { %4969 = vrot.lane.b32.xlu1 %v6113_v1, %s5933_s7 }
  0x9b   : > { %4964 = vrot.lane.b32.xlu0 %v6098_v58, %s5933_s7 }
  0x9c   : > { %v6423_v46 = vpop.permute.xlu1 %4689 }
  0x9d   : > { %v6425_v47 = vpop.permute.xlu0 %4684 }
  0x9e   : > { %4979 = vrot.lane.b32.xlu1 %v6125_v8, %s5933_s7 }
  0x9f   : > { %4974 = vrot.lane.b32.xlu0 %v6109_v0, %s5933_s7 }
  0xa0   : > { %v6431_v52 = vpop.permute.xlu1 %4699 }
  0xa1   : > { %v6433_v59 = vpop.permute.xlu0 %4694 }
  0xa2   : > { %4989 = vrot.lane.b32.xlu1 %v6137_v18, %s5933_s7  ;;  %v4346_v18 = vld [vmem:[%s5991_s26 + $0x18a] sm:$0xff] }
  0xa3   : > { %4984 = vrot.lane.b32.xlu0 %v6121_v7, %s5933_s7  ;;  %v4345_v7 = vld [vmem:[%s5991_s26 + $0x182] sm:$0xff] }
  0xa4   : > { %v6439_v58 = vpop.permute.xlu1 %4709 }
  0xa5   : > { %v6441_v1 = vpop.permute.xlu0 %4704 }
  0xa6   : > { %4999 = vrot.lane.b32.xlu1 %v6149_v26, %s5933_s7 }
  0xa7   : > { %4994 = vrot.lane.b32.xlu0 %v6133_v15, %s5933_s7  ;;  %v6463_v15 = vpack.i.bf16 %v4346_v18, %v4345_v7  ;;  %v5915_v18 = vld [vmem:[%s8777_s1 + $0x10] ss:$0 sps:$4 sm:$0x33]  }
  0xa8   : > { %v6447_v0 = vpop.permute.xlu1 %4719 }
  0xa9   : > { %v6449_v8 = vpop.permute.xlu0 %4714 }
  0xaa   : > { %5009 = vrot.lane.b32.xlu1 %v6161_v36, %s5933_s7 }
  0xab   : > { %5004 = vrot.lane.b32.xlu0 %v6145_v25, %s5933_s7 }
  0xac   : > { %v6457_v39 = vpop.permute.xlu1 %4729 }
  0xad   : > { %v6459_v42 = vpop.permute.xlu0 %4724 }
  0xae   : > { %5019 = vrot.lane.b32.xlu1 %v6173_v44, %s5933_s7 }
  0xaf   : > { %5014 = vrot.lane.b32.xlu0 %v6157_v33, %s5933_s7 }
  0xb0   : > { %v6467_v26 = vpop.permute.xlu1 %4739 }
  0xb1   : > { %v6469_v36 = vpop.permute.xlu0 %4734 }
  0xb2   : > { %5029 = vrot.lane.b32.xlu1 %v6463_v15, %s5933_s7 }
  0xb3   : > { %5024 = vrot.lane.b32.xlu0 %v6169_v43, %s5933_s7 }
  0xb4   : > { %v6475_v25 = vpop.permute.xlu1 %4749 }
  0xb5   : > { %8864 = vst [vmem:[#allocation16_spill] sm:$0xff] %v6475_v25  ;;  %v6477_v11 = vpop.permute.xlu0 %4744  ;;  %v4442_v25 = vld [vmem:[%s5991_s26 + $0x1a2] sm:$0xff] }
  0xb6   : > { %8865 = vst [vmem:[#allocation17_spill] sm:$0xff] %v6477_v11  ;;  %5039 = vrot.lane.b32.xlu1 %v6218_v61, %s5934_s8 }
  0xb7   : > { %5034 = vrot.lane.b32.xlu0 %v6191_v51, %s5934_s8 }
  0xb8   : > { %v6483_v33 = vpop.permute.xlu1 %4759 }
  0xb9   : > { %8866 = vst [vmem:[#allocation18_spill] sm:$0xff] %v6483_v33  ;;  %v6485_v44 = vpop.permute.xlu0 %4754 }
  0xba   : > { %8867 = vst [vmem:[#allocation19_spill] sm:$0xff] %v6485_v44  ;;  %5049 = vrot.lane.b32.xlu1 %v6242_v6, %s5934_s8  ;;  %v4408_v44 = vld [vmem:[%s5991_s26 + $0x189] sm:$0xff] }
  0xbb   : > { %5044 = vrot.lane.b32.xlu0 %v6213_v60, %s5934_s8 }
  0xbc   : > { %v6491_v43 = vpop.permute.xlu1 %4769 }
  0xbd   : > { %8868 = vst [vmem:[#allocation20_spill] sm:$0xff] %v6491_v43  ;;  %v6493_v16 = vpop.permute.xlu0 %4764  ;;  %v4407_v43 = vld [vmem:[%s5991_s26 + $0x181] sm:$0xff] }
  0xbe   : > { %8869 = vst [vmem:[#allocation21_spill] sm:$0xff] %v6493_v16  ;;  %5059 = vrot.lane.b32.xlu1 %v6266_v20, %s5934_s8  ;;  %v4641_v16 = vunpack.i.l.bf16 %v6394_v22 }
  0xbf   : > { %5054 = vrot.lane.b32.xlu0 %v6236_v5, %s5934_s8  ;;  %v5913_v5 = vld [vmem:[%s8777_s1] sm:$0xff]  }
  0xc0   : > { %v6499_v51 = vpop.permute.xlu1 %4779  ;;  %4529 = vmatprep.subr.bf16.mxu0 %v5913_v5 }
  0xc1   : > { %8870 = vst [vmem:[#allocation22_spill] sm:$0xff] %v6499_v51  ;;  %v6501_v61 = vpop.permute.xlu0 %4774  ;;  %4530 = vmatpush3.bf16.msra.mxu0 %v5913_v5  ;;  %v4382_v5 = vld [vmem:[%s5991_s26 + $0x51] sm:$0xff]  ;;  %v4652_v51 = vunpack.i.h.bf16 %v6392_v17 }
  0xc2   : > { %8871 = vst [vmem:[#allocation23_spill] sm:$0xff] %v6501_v61  ;;  %5069 = vrot.lane.b32.xlu1 %v6290_v32, %s5934_s8  ;;  %v267_v61 = vld [vmem:[%s5991_s26 + $0x8] sm:$0xff] }
  0xc3   : > { %5064 = vrot.lane.b32.xlu0 %v6260_v19, %s5934_s8  ;;  %v5914_v19 = vld [vmem:[%s8777_s1 + $0x8] sm:$0xff]  }
  0xc4   : > { %v6507_v60 = vpop.permute.xlu1 %4789  ;;  %4531 = vmatprep.subr.bf16.mxu0 %v5914_v19 }
  0xc5   : > { %8872 = vst [vmem:[#allocation24_spill] sm:$0xff] %v6507_v60  ;;  %v6509_v6 = vpop.permute.xlu0 %4784  ;;  %4532 = vmatpush3.bf16.msra.mxu0 %v5914_v19  ;;  %v4379_v19 = vld [vmem:[%s5991_s26 + $0x31] sm:$0xff] }
  0xc6   : > { %8873 = vst [vmem:[#allocation25_spill] sm:$0xff] %v6509_v6  ;;  %5079 = vrot.lane.b32.xlu1 %v6314_v24, %s5934_s8  ;;  %v4377_v24 = vld [vmem:[%s5991_s26 + $0x198] sm:$0xff]  ;;  %4609 = vmatprep.subr.msk.bf16.mxu0 %vm1936_vm0, %v5915_v18 }
  0xc7   : > { %5074 = vrot.lane.b32.xlu0 %v6284_v31, %s5934_s8  ;;  %v4378_v31 = vld [vmem:[%s5991_s26 + $0x1a0] sm:$0xff]  ;;  %v4411_v6 = vld [vmem:[%s5991_s26 + $0x32] sm:$0xff] }
  0xc8   : > { %v6518_v20 = vpop.permute.xlu1 %4799 }
  0xc9   : > { %8874 = vst [vmem:[#allocation26_spill] sm:$0xff] %v6518_v20  ;;  %v6520_v32 = vpop.permute.xlu0 %4794 }
  0xca   : > { %8875 = vst [vmem:[#allocation27_spill] sm:$0xff] %v6520_v32  ;;  %5089 = vrot.lane.b32.xlu1 %v6338_v37, %s5934_s8  ;;  %v5108_v37 = vpack.i.bf16 %v4378_v31, %v4377_v24  ;;  %v4413_v32 = vld [vmem:[%s5991_s26 + $0x4a] sm:$0xff] }
  0xcb   : > { %5084 = vrot.lane.b32.xlu0 %v6308_v53, %s5934_s8  ;;  %v4381_v53 = vld [vmem:[%s5991_s26 + $0x49] sm:$0xff] }
  0xcc   : > { %v6531_v23 = vpop.permute.xlu1 %4809 }
  0xcd   : > { %8876 = vst [vmem:[#allocation28_spill] sm:$0xff] %v6531_v23  ;;  %v6533_v7 = vpop.permute.xlu0 %4804  ;;  %v4380_v23 = vld [vmem:[%s5991_s26 + $0x39] sm:$0xff] }
  0xce   : > { %8877 = vst [vmem:[#allocation29_spill] sm:$0xff] %v6533_v7  ;;  %5099 = vrot.lane.b32.xlu1 %v6356_v12, %s5934_s8  ;;  %v1938_v12 = vsel %vm1936_vm0, %v5915_v18, 0  ;;  %v5113_v31 = vpack.i.bf16 %v4380_v23, %v4379_v19  ;;  %v4412_v18 = vld [vmem:[%s5991_s26 + $0x3a] sm:$0xff]  ;;  %vm3783_vm0 = vcmask 523264  }
  0xcf   : > { %5094 = vrot.lane.b32.xlu0 %v6332_v38, %s5934_s8  ;;  %4534 = vmatpush3.bf16.msra.mxu0 %v1938_v12  ;;  %v5118_v38 = vpack.i.bf16 %v4382_v5, %v4381_v53  ;;  %v4385_v23 = vld [vmem:[%s5991_s26 + $0x79] sm:$0xff]  ;;  %v4386_v53 = vld [vmem:[%s5991_s26 + $0x81] sm:$0xff]  ;;  %v4384_v12 = vld [vmem:[%s5991_s26 + $0x69] sm:$0xff] }
  0xd0   : > { %v6544_v7 = vpop.permute.xlu1 %4819  ;;  %v4383_v19 = vld [vmem:[%s5991_s26 + $0x61] sm:$0xff] }
  0xd1   : > { %8878 = vst [vmem:[#allocation30_spill] sm:$0xff] %v6544_v7  ;;  %v6548_v24 = vpop.permute.xlu0 %4814  ;;  %v4414_v7 = vld [vmem:[%s5991_s26 + $0x52] sm:$0xff] }
  0xd2   : > { %8879 = vst [vmem:[#allocation31_spill] sm:$0xff] %v6548_v24  ;;  %5109 = vrot.lane.b32.xlu1 %v5108_v37, %s5934_s8  ;;  %v5128_v37 = vpack.i.bf16 %v4414_v7, %v4413_v32  ;;  %v4417_v32 = vld [vmem:[%s5991_s26 + $0x7a] sm:$0xff]  ;;  %v4418_v7 = vld [vmem:[%s5991_s26 + $0x82] sm:$0xff] }
  0xd3   : > { %5104 = vrot.lane.b32.xlu0 %v6350_v62, %s5934_s8  ;;  %v5123_v62 = vpack.i.bf16 %v4412_v18, %v4411_v6  ;;  %v5133_v6 = vpack.i.bf16 %v4384_v12, %v4383_v19  ;;  %v4415_v18 = vld [vmem:[%s5991_s26 + $0x62] sm:$0xff]  ;;  %v4387_v19 = vld [vmem:[%s5991_s26 + $0x91] sm:$0xff]  ;;  %v4388_v12 = vld [vmem:[%s5991_s26 + $0x99] sm:$0xff] }
  0xd4   : > { %v6555_v20 = vpop.permute.xlu1 %4829  ;;  %v4436_v24 = vld [vmem:[%s5991_s26 + $0x15a] sm:$0xff] }
  0xd5   : > { %8880 = vst [vmem:[#allocation32_spill] sm:$0xff] %v6555_v20  ;;  %v6559_v60 = vpop.permute.xlu0 %4824 }
  0xd6   : > { %8881 = vst [vmem:[#allocation33_spill] sm:$0xff] %v6559_v60  ;;  %5119 = vrot.lane.b32.xlu1 %v5118_v38, %s5935_s15  ;;  %v5138_v38 = vpack.i.bf16 %v4386_v53, %v4385_v23  ;;  %v4390_v23 = vld [vmem:[%s5991_s26 + $0xb1] sm:$0xff] }
  0xd7   : > { %5114 = vrot.lane.b32.xlu0 %v5113_v31, %s5935_s15 }
  0xd8   : > { %v6565_v5 = vpop.permute.xlu1 %4839 }
  0xd9   : > { %8882 = vst [vmem:[#allocation34_spill] sm:$0xff] %v6565_v5  ;;  %v6569_v20 = vpop.permute.xlu0 %4834  ;;  %v4416_v5 = vld [vmem:[%s5991_s26 + $0x6a] sm:$0xff] }
  0xda   : > { %8883 = vst [vmem:[#allocation35_spill] sm:$0xff] %v6569_v20  ;;  %5129 = vrot.lane.b32.xlu1 %v5128_v37, %s5936_s16  ;;  %v5148_v20 = vpack.i.bf16 %v4418_v7, %v4417_v32  ;;  %v5143_v37 = vpack.i.bf16 %v4416_v5, %v4415_v18  ;;  %v4422_v5 = vld [vmem:[%s5991_s26 + $0xb2] sm:$0xff]  ;;  %v4420_v18 = vld [vmem:[%s5991_s26 + $0x9a] sm:$0xff] }
  0xdb   : > { %5124 = vrot.lane.b32.xlu0 %v5123_v62, %s5936_s16  ;;  %v4389_v62 = vld [vmem:[%s5991_s26 + $0xa9] sm:$0xff]  ;;  %v4419_v7 = vld [vmem:[%s5991_s26 + $0x92] sm:$0xff] }
  0xdc   : > { %v6575_v31 = vpop.permute.xlu1 %4849 }
  0xdd   : > { %8884 = vst [vmem:[#allocation36_spill] sm:$0xff] %v6575_v31  ;;  %v6579_v60 = vpop.permute.xlu0 %4844 }
  0xde   : > { %8885 = vst [vmem:[#allocation37_spill] sm:$0xff] %v6579_v60  ;;  %5139 = vrot.lane.b32.xlu1 %v5138_v38, %s5935_s15  ;;  %v5158_v60 = vpack.i.bf16 %v4390_v23, %v4389_v62  ;;  %v5153_v38 = vpack.i.bf16 %v4388_v12, %v4387_v19  ;;  %v4394_v62 = vld [vmem:[%s5991_s26 + $0xe1] sm:$0xff]  ;;  %v4392_v12 = vld [vmem:[%s5991_s26 + $0xc9] sm:$0xff] }
  0xdf   : > { %5134 = vrot.lane.b32.xlu0 %v5133_v6, %s5935_s15  ;;  %v4421_v6 = vld [vmem:[%s5991_s26 + $0xaa] sm:$0xff]  ;;  %v4391_v19 = vld [vmem:[%s5991_s26 + $0xc1] sm:$0xff] }
  0xe0   : > { %v6585_v53 = vpop.permute.xlu1 %4859 }
  0xe1   : > { %8886 = vst [vmem:[#allocation38_spill] sm:$0xff] %v6585_v53  ;;  %v6589_v31 = vpop.permute.xlu0 %4854 }
  0xe2   : > { %8887 = vst [vmem:[#allocation39_spill] sm:$0xff] %v6589_v31  ;;  %5149 = vrot.lane.b32.xlu1 %v5148_v20, %s5936_s16  ;;  %v5168_v31 = vpack.i.bf16 %v4422_v5, %v4421_v6  ;;  %v5163_v20 = vpack.i.bf16 %v4420_v18, %v4419_v7  ;;  %v4426_v6 = vld [vmem:[%s5991_s26 + $0xe2] sm:$0xff]  ;;  %v4424_v18 = vld [vmem:[%s5991_s26 + $0xca] sm:$0xff] }
  0xe3   : > { %5144 = vrot.lane.b32.xlu0 %v5143_v37, %s5936_s16  ;;  %v4393_v37 = vld [vmem:[%s5991_s26 + $0xd9] sm:$0xff]  ;;  %v4423_v7 = vld [vmem:[%s5991_s26 + $0xc2] sm:$0xff] }
  0xe4   : > { %v6595_v32 = vpop.permute.xlu1 %4869 }
  0xe5   : > { %8888 = vst [vmem:[#allocation40_spill] sm:$0xff] %v6595_v32  ;;  %v6599_v53 = vpop.permute.xlu0 %4864 }
  0xe6   : > { %8889 = vst [vmem:[#allocation41_spill] sm:$0xff] %v6599_v53  ;;  %5159 = vrot.lane.b32.xlu1 %v5158_v60, %s5935_s15  ;;  %v5178_v53 = vpack.i.bf16 %v4394_v62, %v4393_v37  ;;  %v5173_v60 = vpack.i.bf16 %v4392_v12, %v4391_v19  ;;  %v4398_v37 = vld [vmem:[%s5991_s26 + $0x111] sm:$0xff]  ;;  %v4396_v12 = vld [vmem:[%s5991_s26 + $0xf9] sm:$0xff] }
  0xe7   : > { %5154 = vrot.lane.b32.xlu0 %v5153_v38, %s5935_s15  ;;  %v4425_v38 = vld [vmem:[%s5991_s26 + $0xda] sm:$0xff]  ;;  %v4395_v19 = vld [vmem:[%s5991_s26 + $0xf1] sm:$0xff] }
  0xe8   : > { %v6605_v23 = vpop.permute.xlu1 %4879 }
  0xe9   : > { %8890 = vst [vmem:[#allocation42_spill] sm:$0xff] %v6605_v23  ;;  %v6609_v32 = vpop.permute.xlu0 %4874 }
  0xea   : > { %8891 = vst [vmem:[#allocation43_spill] sm:$0xff] %v6609_v32  ;;  %5169 = vrot.lane.b32.xlu1 %v5168_v31, %s5936_s16  ;;  %v5188_v32 = vpack.i.bf16 %v4426_v6, %v4425_v38  ;;  %v5183_v31 = vpack.i.bf16 %v4424_v18, %v4423_v7  ;;  %v4430_v38 = vld [vmem:[%s5991_s26 + $0x112] sm:$0xff]  ;;  %v4428_v18 = vld [vmem:[%s5991_s26 + $0xfa] sm:$0xff] }
  0xeb   : > { %5164 = vrot.lane.b32.xlu0 %v5163_v20, %s5936_s16  ;;  %v4397_v20 = vld [vmem:[%s5991_s26 + $0x109] sm:$0xff]  ;;  %v4427_v7 = vld [vmem:[%s5991_s26 + $0xf2] sm:$0xff] }
  0xec   : > { %v6615_v5 = vpop.permute.xlu1 %4889 }
  0xed   : > { %8892 = vst [vmem:[#allocation44_spill] sm:$0xff] %v6615_v5  ;;  %v6619_v23 = vpop.permute.xlu0 %4884 }
  0xee   : > { %8893 = vst [vmem:[#allocation45_spill] sm:$0xff] %v6619_v23  ;;  %5179 = vrot.lane.b32.xlu1 %v5178_v53, %s5935_s15  ;;  %v5198_v23 = vpack.i.bf16 %v4398_v37, %v4397_v20  ;;  %v5193_v53 = vpack.i.bf16 %v4396_v12, %v4395_v19  ;;  %v4402_v20 = vld [vmem:[%s5991_s26 + $0x141] sm:$0xff]  ;;  %v4400_v12 = vld [vmem:[%s5991_s26 + $0x129] sm:$0xff] }
  0xef   : > { %5174 = vrot.lane.b32.xlu0 %v5173_v60, %s5935_s15  ;;  %v4429_v60 = vld [vmem:[%s5991_s26 + $0x10a] sm:$0xff]  ;;  %v4399_v19 = vld [vmem:[%s5991_s26 + $0x121] sm:$0xff] }
  0xf0   : > { %v6625_v62 = vpop.permute.xlu1 %4899 }
  0xf1   : > { %8894 = vst [vmem:[#allocation46_spill] sm:$0xff] %v6625_v62  ;;  %v6629_v5 = vpop.permute.xlu0 %4894 }
  0xf2   : > { %8895 = vst [vmem:[#allocation47_spill] sm:$0xff] %v6629_v5  ;;  %5189 = vrot.lane.b32.xlu1 %v5188_v32, %s5936_s16  ;;  %v5208_v5 = vpack.i.bf16 %v4430_v38, %v4429_v60  ;;  %v5203_v32 = vpack.i.bf16 %v4428_v18, %v4427_v7  ;;  %v4434_v60 = vld [vmem:[%s5991_s26 + $0x142] sm:$0xff]  ;;  %v4432_v18 = vld [vmem:[%s5991_s26 + $0x12a] sm:$0xff] }
  0xf3   : > { %5184 = vrot.lane.b32.xlu0 %v5183_v31, %s5936_s16  ;;  %v4401_v31 = vld [vmem:[%s5991_s26 + $0x139] sm:$0xff]  ;;  %v4431_v7 = vld [vmem:[%s5991_s26 + $0x122] sm:$0xff] }
  0xf4   : > { %v6635_v6 = vpop.permute.xlu1 %4909 }
  0xf5   : > { %8896 = vst [vmem:[#allocation48_spill] sm:$0xff] %v6635_v6  ;;  %v6639_v62 = vpop.permute.xlu0 %4904 }
  0xf6   : > { %8897 = vst [vmem:[#allocation49_spill] sm:$0xff] %v6639_v62  ;;  %5199 = vrot.lane.b32.xlu1 %v5198_v23, %s5935_s15  ;;  %v5218_v62 = vpack.i.bf16 %v4402_v20, %v4401_v31  ;;  %v5213_v23 = vpack.i.bf16 %v4400_v12, %v4399_v19  ;;  %v4405_v31 = vld [vmem:[%s5991_s26 + $0x169] sm:$0xff]  ;;  %v4403_v19 = vld [vmem:[%s5991_s26 + $0x151] sm:$0xff]  ;;  %v4404_v12 = vld [vmem:[%s5991_s26 + $0x159] sm:$0xff] }
  0xf7   : > { %5194 = vrot.lane.b32.xlu0 %v5193_v53, %s5935_s15  ;;  %v4433_v53 = vld [vmem:[%s5991_s26 + $0x13a] sm:$0xff] }
  0xf8   : > { %v6645_v37 = vpop.permute.xlu1 %4919 }
  0xf9   : > { %8898 = vst [vmem:[#allocation50_spill] sm:$0xff] %v6645_v37  ;;  %v6649_v6 = vpop.permute.xlu0 %4914 }
  0xfa   : > { %8899 = vst [vmem:[#allocation51_spill] sm:$0xff] %v6649_v6  ;;  %5209 = vrot.lane.b32.xlu1 %v5208_v5, %s5936_s16  ;;  %v5228_v6 = vpack.i.bf16 %v4434_v60, %v4433_v53  ;;  %v5223_v5 = vpack.i.bf16 %v4432_v18, %v4431_v7  ;;  %v4437_v53 = vld [vmem:[%s5991_s26 + $0x16a] sm:$0xff]  ;;  %v4438_v60 = vld [vmem:[%s5991_s26 + $0x172] sm:$0xff]  ;;  %v4637_v7 = vunpack.i.h.bf16 %v6384_v10  ;;  %v4636_v18 = vunpack.i.l.bf16 %v6384_v10 }
  0xfb   : > { %5204 = vrot.lane.b32.xlu0 %v5203_v32, %s5936_s16  ;;  %v4406_v32 = vld [vmem:[%s5991_s26 + $0x171] sm:$0xff]  ;;  %v4642_v10 = vunpack.i.h.bf16 %v6394_v22  ;;  %v4441_v22 = vld [vmem:[%s5991_s26 + $0x19a] sm:$0xff] }
  0xfc   : > { %v6655_v38 = vpop.permute.xlu1 %4929 }
  0xfd   : > { %8900 = vst [vmem:[#allocation52_spill] sm:$0xff] %v6655_v38  ;;  %v6659_v37 = vpop.permute.xlu0 %4924 }
  0xfe   : > { %8901 = vst [vmem:[#allocation53_spill] sm:$0xff] %v6659_v37  ;;  %5219 = vrot.lane.b32.xlu1 %v5218_v62, %s5935_s15  ;;  %v4647_v37 = vunpack.i.h.bf16 %v6382_v3  ;;  %v4646_v62 = vunpack.i.l.bf16 %v6382_v3  ;;  %v266_v3 = vld [vmem:[%s5991_s26] sm:$0xff] }
  0xff   : > { %5214 = vrot.lane.b32.xlu0 %v5213_v23, %s5935_s15  ;;  %v5238_v23 = vpack.i.bf16 %v4406_v32, %v4405_v31  ;;  %v4409_v32 = vld [vmem:[%s5991_s26 + $0x199] sm:$0xff] }
 0x100   : > { %v6665_v20 = vpop.permute.xlu1 %4939  ;;  %v6697_v33 = vsel %vm1580_vm1, %v6176_v45, %v4646_v62  ;;  %v4662_v45 = vunpack.i.h.bf16 %v6400_v28  ;;  %v4656_v62 = vunpack.i.l.bf16 %v6402_v29 }
 0x101   : > { %8902 = vst [vmem:[#allocation54_spill] sm:$0xff] %v6665_v20  ;;  %v6669_v38 = vpop.permute.xlu0 %4934  ;;  %v4435_v20 = vld [vmem:[%s5991_s26 + $0x152] sm:$0xff] }
 0x102   : > { %8903 = vst [vmem:[#allocation55_spill] sm:$0xff] %v6669_v38  ;;  %5229 = vrot.lane.b32.xlu1 %v5228_v6, %s5936_s16  ;;  %v5233_v38 = vpack.i.bf16 %v4404_v12, %v4403_v19  ;;  %v4651_v6 = vunpack.i.l.bf16 %v6392_v17  ;;  %v5248_v19 = vpack.i.bf16 %v4438_v60, %v4437_v53  ;;  %v4410_v12 = vld [vmem:[%s5991_s26 + $0x1a1] sm:$0xff]  ;;  %v4661_v17 = vunpack.i.l.bf16 %v6400_v28  ;;  %s5939_s26 = smov 56  }
 0x103   : > { %5224 = vrot.lane.b32.xlu0 %v5223_v5, %s5936_s16  ;;  %v5243_v11 = vpack.i.bf16 %v4436_v24, %v4435_v20  ;;  %v6708_v53 = vsel %vm1580_vm1, %v266_v3, %v4636_v18  ;;  %v6711_v60 = vsel %vm1580_vm1, %v267_v61, %v4637_v7  ;;  %v4657_v24 = vunpack.i.h.bf16 %v6402_v29 }
 0x104   : > { %v6684_v31 = vpop.permute.xlu1 %4949  ;;  %v5258_v20 = vpack.i.bf16 %v4410_v12, %v4409_v32  ;;  %v6725_v61 = vsel %vm1580_vm1, %v6207_v57, %v4652_v51  ;;  %v6729_v28 = vsel %vm1580_vm1, %v6182_v49, %v4641_v16  ;;  %v5268_v7 = vpack.i.bf16 %v4442_v25, %v4441_v22 }
 0x105   : > { %8904 = vst [vmem:[#allocation56_spill] sm:$0xff] %v6684_v31  ;;  %v6690_v5 = vpop.permute.xlu0 %4944  ;;  %v6701_v31 = vsel %vm1580_vm1, %v6179_v48, %v4647_v37  ;;  %v6718_v48 = vsel %vm1580_vm1, %v6204_v56, %v4651_v6  ;;  %v6739_v29 = vsel %vm1580_vm1, %v6227_v2, %v4661_v17  ;;  %v4671_v57 = vunpack.i.l.bf16 %v6407_v34  ;;  %v8908_v17 = vld [vmem:[#allocation10_spill] sm:$0xff] }
 0x106   : > { %5239 = vrot.lane.b32.xlu1 %v5238_v23, %s5935_s15  ;;  %v5253_v23 = vpack.i.bf16 %v4408_v44, %v4407_v43  ;;  %v4672_v44 = vunpack.i.h.bf16 %v6407_v34  ;;  %v4666_v43 = vunpack.i.l.bf16 %v6409_v35  ;;  %v6747_v49 = vsel %vm1580_vm1, %v6230_v4, %v4662_v45  ;;  %v8909_v45 = vld [vmem:[#allocation5_spill] sm:$0xff] }
 0x107   : > { %5234 = vrot.lane.b32.xlu0 %v5233_v38, %s5935_s15  ;;  %v6733_v38 = vsel %vm1580_vm1, %v6185_v50, %v4642_v10  ;;  %v6751_v50 = vsel %vm1580_vm1, %v6198_v54, %v4656_v62  ;;  %v4667_v25 = vunpack.i.h.bf16 %v6409_v35  ;;  %v4681_v2 = vunpack.i.l.bf16 %v6415_v40  ;;  %v8906_v10 = vld [vmem:[#allocation4_spill] sm:$0xff] }
 0x108   : > { %v6721_v37 = vpop.permute.xlu1 %4959  ;;  %v6758_v34 = vsel %vm1580_vm1, %v6201_v55, %v4657_v24  ;;  %v4682_v16 = vunpack.i.h.bf16 %v6415_v40  ;;  %v4677_v51 = vunpack.i.h.bf16 %v6417_v41  ;;  %v4676_v4 = vunpack.i.l.bf16 %v6417_v41  ;;  %v8905_v41 = vld [vmem:[#allocation3_spill] sm:$0xff]  ;;  %v8910_v24 = vld [vmem:[#allocation6_spill] sm:$0xff] }
 0x109   : > { %v6735_v56 = vpop.permute.xlu0 %4954  ;;  %v4692_v54 = vunpack.i.h.bf16 %v6423_v46  ;;  %v4691_v35 = vunpack.i.l.bf16 %v6423_v46  ;;  %v4687_v3 = vunpack.i.h.bf16 %v6425_v47  ;;  %v6773_v55 = vsel %vm1580_vm1, %v6251_v13, %v4671_v57 }
 0x10a   : > { %5249 = vrot.lane.b32.xlu1 %v5248_v19, %s5936_s16  ;;  %v6777_v40 = vsel %vm1580_vm1, %v6254_v14, %v4672_v44  ;;  %v6781_v32 = vsel %vm1580_vm1, %v8905_v41, %v4666_v43  ;;  %v4701_v46 = vunpack.i.l.bf16 %v6431_v52  ;;  %v8907_v19 = vld [vmem:[#allocation9_spill] sm:$0xff]  ;;  %v4702_v12 = vunpack.i.h.bf16 %v6431_v52 }
 0x10b   : > { %5244 = vrot.lane.b32.xlu0 %v5243_v11, %s5936_s16  ;;  %v4686_v11 = vunpack.i.l.bf16 %v6425_v47  ;;  %v6787_v47 = vsel %vm1580_vm1, %v8906_v10, %v4667_v25  ;;  %v6791_v13 = vsel %vm1580_vm1, %v8907_v19, %v4681_v2  ;;  %v4696_v14 = vunpack.i.l.bf16 %v6433_v59  ;;  %v8911_v52 = vld [vmem:[#allocation13_spill] sm:$0xff]  ;;  %v8913_v2 = vld [vmem:[#allocation7_spill] sm:$0xff] }
 0x10c   : > { %v6763_v18 = vpop.permute.xlu1 %4969  ;;  %v6798_v22 = vsel %vm1580_vm1, %v8908_v17, %v4682_v16  ;;  %v6802_v62 = vsel %vm1580_vm1, %v8909_v45, %v4676_v4  ;;  %v4697_v44 = vunpack.i.h.bf16 %v6433_v59  ;;  %v6813_v43 = vsel %vm1580_vm1, %v8911_v52, %v4691_v35  ;;  %v8914_v4 = vld [vmem:[#allocation8_spill] sm:$0xff] }
 0x10d   : > { %v6769_v6 = vpop.permute.xlu0 %4964  ;;  %v6821_v16 = vsel %vm1580_vm1, %v8913_v2, %v4686_v11  ;;  %v6831_v59 = vsel %vm1580_vm1, %v6323_v9, %v4701_v46  ;;  %v4712_v35 = vunpack.i.h.bf16 %v6439_v58  ;;  %v4711_v10 = vunpack.i.l.bf16 %v6439_v58  ;;  %v8916_v58 = vld [vmem:[#allocation12_spill] sm:$0xff] }
 0x10e   : > { %5259 = vrot.lane.b32.xlu1 %v5258_v20, %s5935_s15  ;;  %v6806_v20 = vsel %vm1580_vm1, %v8910_v24, %v4677_v51  ;;  %v6825_v51 = vsel %vm1580_vm1, %v8914_v4, %v4687_v3  ;;  %v6839_v11 = vsel %vm1580_vm1, %v6326_v30, %v4702_v12  ;;  %v8915_v3 = vld [vmem:[#allocation11_spill] sm:$0xff]  ;;  %v4707_v17 = vunpack.i.h.bf16 %v6441_v1 }
 0x10f   : > { %5254 = vrot.lane.b32.xlu0 %v5253_v23, %s5935_s15  ;;  %v8912_v23 = vld [vmem:[#allocation14_spill] sm:$0xff]  ;;  %v6843_v19 = vsel %vm1580_vm1, %v8915_v3, %v4696_v14  ;;  %v4721_v9 = vunpack.i.l.bf16 %v6447_v0  ;;  %v6851_v46 = vsel %vm1580_vm1, %v8916_v58, %v4697_v44  ;;  %v4717_v30 = vunpack.i.h.bf16 %v6449_v8 }
 0x110   : > { %v6809_v57 = vpop.permute.xlu1 %4979  ;;  %v6817_v25 = vsel %vm1580_vm1, %v8912_v23, %v4692_v54  ;;  %v4706_v54 = vunpack.i.l.bf16 %v6441_v1  ;;  %v4716_v12 = vunpack.i.l.bf16 %v6449_v8  ;;  %v4732_v14 = vunpack.i.h.bf16 %v6457_v39  ;;  %v8918_v23 = vld [vmem:[#allocation15_spill] sm:$0xff] }
 0x111   : > { %v6827_v41 = vpop.permute.xlu0 %4974  ;;  %v4731_v1 = vunpack.i.l.bf16 %v6457_v39  ;;  %v4727_v24 = vunpack.i.h.bf16 %v6459_v42  ;;  %v6866_v44 = vsel %vm1580_vm1, %v6343_v27, %v4711_v10  ;;  %v4741_v39 = vunpack.i.l.bf16 %v6467_v26 }
 0x112   : > { %5269 = vrot.lane.b32.xlu1 %v5268_v7, %s5936_s16  ;;  %v4722_v7 = vunpack.i.h.bf16 %v6447_v0  ;;  %v6870_v0 = vsel %vm1580_vm1, %v6346_v63, %v4712_v35  ;;  %v6874_v8 = vsel %vm1580_vm1, %v6317_v21, %v4706_v54  ;;  %v6879_v2 = vsel %vm1580_vm1, %v8918_v23, %v4707_v17  ;;  %v8927_v23 = vld [vmem:[#allocation21_spill] sm:$0xff] }
 0x113   : > { %5264 = vrot.lane.b32.xlu0 %v6463_v15, %s5936_s16  ;;  %v4726_v15 = vunpack.i.l.bf16 %v6459_v42  ;;  %v6883_v42 = vsel %vm1613_vm2, %v6729_v28, %v4721_v9  ;;  %v4742_v27 = vunpack.i.h.bf16 %v6467_v26  ;;  %v4736_v4 = vunpack.i.l.bf16 %v6469_v36 }
 0x114   : > { %v6856_v45 = vpop.permute.xlu1 %4989  ;;  %v6889_v63 = vsel %vm1613_vm2, %v6733_v38, %v4722_v7  ;;  %v6893_v21 = vsel %vm1613_vm2, %v6708_v53, %v4716_v12  ;;  %v6897_v35 = vsel %vm1613_vm2, %v6711_v60, %v4717_v30  ;;  %v4737_v10 = vunpack.i.h.bf16 %v6469_v36  ;;  %v8923_v7 = vld [vmem:[#allocation18_spill] sm:$0xff] }
 0x115   : > { %v6862_v52 = vpop.permute.xlu0 %4984  ;;  %v6904_v26 = vsel %vm1613_vm2, %v6718_v48, %v4731_v1  ;;  %v6908_v38 = vsel %vm1613_vm2, %v6725_v61, %v4732_v14  ;;  %v6912_v53 = vsel %vm1613_vm2, %v6697_v33, %v4726_v15  ;;  %v6916_v60 = vsel %vm1613_vm2, %v6701_v31, %v4727_v24  ;;  %v8921_v48 = vld [vmem:[#allocation16_spill] sm:$0xff]  ;;  %v8922_v61 = vld [vmem:[#allocation17_spill] sm:$0xff]  ;;  %v8924_v14 = vld [vmem:[#allocation19_spill] sm:$0xff] }
 0x116   : > { %8917 = vst [vmem:[#allocation3_spill] sm:$0xff] %v6862_v52  ;;  %v6922_v36 = vsel %vm1613_vm2, %v6739_v29, %v4741_v39  ;;  %v4752_v3 = vunpack.i.h.bf16 %v8921_v48  ;;  %v4751_v17 = vunpack.i.l.bf16 %v8921_v48  ;;  %v4746_v9 = vunpack.i.l.bf16 %v8922_v61  ;;  %v8926_v15 = vld [vmem:[#allocation20_spill] sm:$0xff] }
 0x117   : > { %v6929_v33 = vsel %vm1613_vm2, %v6747_v49, %v4742_v27  ;;  %v6933_v31 = vsel %vm1613_vm2, %v6751_v50, %v4736_v4  ;;  %v4747_v58 = vunpack.i.h.bf16 %v8922_v61  ;;  %v4761_v30 = vunpack.i.l.bf16 %v8923_v7 }
 0x118   : > { %v6900_v28 = vpop.permute.xlu1 %4999  ;;  %v6939_v29 = vsel %vm1613_vm2, %v6758_v34, %v4737_v10  ;;  %v4762_v12 = vunpack.i.h.bf16 %v8923_v7  ;;  %v4757_v1 = vunpack.i.h.bf16 %v8924_v14  ;;  %v4756_v24 = vunpack.i.l.bf16 %v8924_v14  ;;  %v8929_v7 = vld [vmem:[#allocation22_spill] sm:$0xff] }
 0x119   : > { %8919 = vst [vmem:[#allocation4_spill] sm:$0xff] %v6900_v28  ;;  %v6918_v54 = vpop.permute.xlu0 %4994  ;;  %v4772_v50 = vunpack.i.h.bf16 %v8926_v15  ;;  %v4771_v39 = vunpack.i.l.bf16 %v8926_v15  ;;  %v4767_v27 = vunpack.i.h.bf16 %v8927_v23  ;;  %v4766_v4 = vunpack.i.l.bf16 %v8927_v23 }
 0x11a   : > { %8920 = vst [vmem:[#allocation9_spill] sm:$0xff] %v6918_v54  ;;  %v6954_v34 = vsel %vm1613_vm2, %v6773_v55, %v4751_v17  ;;  %v6958_v10 = vsel %vm1613_vm2, %v6777_v40, %v4752_v3  ;;  %v6962_v61 = vsel %vm1613_vm2, %v6781_v32, %v4746_v9  ;;  %v4781_v14 = vunpack.i.l.bf16 %v8929_v7  ;;  %v8930_v17 = vld [vmem:[#allocation23_spill] sm:$0xff] }
 0x11b   : > { %v6967_v15 = vsel %vm1613_vm2, %v6787_v47, %v4747_v58  ;;  %v6971_v23 = vsel %vm1613_vm2, %v6791_v13, %v4761_v30  ;;  %v4782_v55 = vunpack.i.h.bf16 %v8929_v7  ;;  %v6977_v40 = vsel %vm1613_vm2, %v6798_v22, %v4762_v12  ;;  %v8936_v7 = vld [vmem:[#allocation27_spill] sm:$0xff] }
 0x11c   : > { %v6944_v49 = vpop.permute.xlu1 %5009  ;;  %v6981_v32 = vsel %vm1613_vm2, %v6802_v62, %v4756_v24  ;;  %v6985_v47 = vsel %vm1613_vm2, %v6806_v20, %v4757_v1  ;;  %v4777_v3 = vunpack.i.h.bf16 %v8930_v17  ;;  %v6992_v9 = vsel %vm1613_vm2, %v6813_v43, %v4771_v39  ;;  %v8933_v43 = vld [vmem:[#allocation24_spill] sm:$0xff]  ;;  %v8935_v39 = vld [vmem:[#allocation26_spill] sm:$0xff] }
 0x11d   : > { %8925 = vst [vmem:[#allocation10_spill] sm:$0xff] %v6944_v49  ;;  %v6950_v48 = vpop.permute.xlu0 %5004  ;;  %v6996_v22 = vsel %vm1613_vm2, %v6817_v25, %v4772_v50  ;;  %v7000_v62 = vsel %vm1613_vm2, %v6821_v16, %v4766_v4  ;;  %v7004_v20 = vsel %vm1613_vm2, %v6825_v51, %v4767_v27  ;;  %v7010_v30 = vsel %vm1613_vm2, %v6831_v59, %v4781_v14  ;;  %v8934_v25 = vld [vmem:[#allocation25_spill] sm:$0xff] }
 0x11e   : > { %8928 = vst [vmem:[#allocation5_spill] sm:$0xff] %v6950_v48  ;;  %v4776_v48 = vunpack.i.l.bf16 %v8930_v17  ;;  %v4792_v12 = vunpack.i.h.bf16 %v8933_v43  ;;  %v4791_v1 = vunpack.i.l.bf16 %v8933_v43  ;;  %v4786_v24 = vunpack.i.l.bf16 %v8934_v25 }
 0x11f   : > { %v7017_v16 = vsel %vm1613_vm2, %v6839_v11, %v4782_v55  ;;  %v4787_v50 = vunpack.i.h.bf16 %v8934_v25  ;;  %v4801_v27 = vunpack.i.l.bf16 %v8935_v39  ;;  %v7027_v59 = vsel %vm1613_vm2, %v6851_v46, %v4777_v3  ;;  %v8938_v55 = vld [vmem:[#allocation28_spill] sm:$0xff] }
 0x120   : > { %v6988_v13 = vpop.permute.xlu1 %5019  ;;  %v7021_v51 = vsel %vm1613_vm2, %v6843_v19, %v4776_v48  ;;  %v4802_v4 = vunpack.i.h.bf16 %v8935_v39  ;;  %v4797_v14 = vunpack.i.h.bf16 %v8936_v7  ;;  %v4796_v17 = vunpack.i.l.bf16 %v8936_v7  ;;  %v8939_v48 = vld [vmem:[#allocation29_spill] sm:$0xff]  ;;  %v8941_v7 = vld [vmem:[#allocation30_spill] sm:$0xff] }
 0x121   : > { %8931 = vst [vmem:[#allocation6_spill] sm:$0xff] %v6988_v13  ;;  %v7006_v58 = vpop.permute.xlu0 %5014  ;;  %v4812_v43 = vunpack.i.h.bf16 %v8938_v55  ;;  %v4811_v19 = vunpack.i.l.bf16 %v8938_v55  ;;  %v4807_v25 = vunpack.i.h.bf16 %v8939_v48  ;;  %v7042_v46 = vsel %vm1613_vm2, %v6866_v44, %v4791_v1  ;;  %v8942_v1 = vld [vmem:[#allocation31_spill] sm:$0xff] }
 0x122   : > { %8932 = vst [vmem:[#allocation13_spill] sm:$0xff] %v7006_v58  ;;  %v4806_v58 = vunpack.i.l.bf16 %v8939_v48  ;;  %v7046_v3 = vsel %vm1613_vm2, %v6870_v0, %v4792_v12  ;;  %v7050_v39 = vsel %vm1613_vm2, %v6874_v8, %v4786_v24  ;;  %v4821_v55 = vunpack.i.l.bf16 %v8941_v7 }
 0x123   : > { %v7059_v48 = vsel %vm1646_vm3, %v6883_v42, %v4801_v27  ;;  %v4822_v44 = vunpack.i.h.bf16 %v8941_v7  ;;  %v7065_v0 = vsel %vm1646_vm3, %v6889_v63, %v4802_v4  ;;  %v7069_v8 = vsel %vm1646_vm3, %v6893_v21, %v4796_v17  ;;  %v8946_v7 = vld [vmem:[#allocation35_spill] sm:$0xff] }
 0x124   : > { %v7032_v11 = vpop.permute.xlu1 %5029  ;;  %v4817_v12 = vunpack.i.h.bf16 %v8942_v1  ;;  %v7080_v24 = vsel %vm1646_vm3, %v6904_v26, %v4811_v19  ;;  %v7084_v63 = vsel %vm1646_vm3, %v6908_v38, %v4812_v43  ;;  %v7088_v21 = vsel %vm1646_vm3, %v6912_v53, %v4806_v58  ;;  %v8943_v26 = vld [vmem:[#allocation32_spill] sm:$0xff]  ;;  %v8944_v38 = vld [vmem:[#allocation33_spill] sm:$0xff]  ;;  %v8945_v43 = vld [vmem:[#allocation34_spill] sm:$0xff] }
 0x125   : > { %8937 = vst [vmem:[#allocation14_spill] sm:$0xff] %v7032_v11  ;;  %v7038_v13 = vpop.permute.xlu0 %5024  ;;  %v7055_v11 = vsel %vm1613_vm2, %v6879_v2, %v4787_v50  ;;  %v7073_v2 = vsel %vm1646_vm3, %v6897_v35, %v4797_v14  ;;  %v7092_v35 = vsel %vm1646_vm3, %v6916_v60, %v4807_v25  ;;  %v7098_v27 = vsel %vm1646_vm3, %v6922_v36, %v4821_v55 }
 0x126   : > { %8940 = vst [vmem:[#allocation7_spill] sm:$0xff] %v7038_v13  ;;  %v4816_v13 = vunpack.i.l.bf16 %v8942_v1  ;;  %v4832_v4 = vunpack.i.h.bf16 %v8943_v26  ;;  %v4831_v14 = vunpack.i.l.bf16 %v8943_v26  ;;  %v4826_v17 = vunpack.i.l.bf16 %v8944_v38  ;;  %v8948_v26 = vld [vmem:[#allocation37_spill] sm:$0xff] }
 0x127   : > { %v7105_v53 = vsel %vm1646_vm3, %v6929_v33, %v4822_v44  ;;  %v4827_v58 = vunpack.i.h.bf16 %v8944_v38  ;;  %v4841_v19 = vunpack.i.l.bf16 %v8945_v43  ;;  %v7115_v36 = vsel %vm1646_vm3, %v6939_v29, %v4817_v12  ;;  %v8947_v44 = vld [vmem:[#allocation36_spill] sm:$0xff] }
 0x128   : > { %v7076_v42 = vpop.permute.xlu1 %5039  ;;  %v7109_v60 = vsel %vm1646_vm3, %v6933_v31, %v4816_v13  ;;  %v4842_v25 = vunpack.i.h.bf16 %v8945_v43  ;;  %v4837_v55 = vunpack.i.h.bf16 %v8946_v7  ;;  %v4836_v1 = vunpack.i.l.bf16 %v8946_v7  ;;  %v8949_v7 = vld [vmem:[#allocation38_spill] sm:$0xff] }
 0x129   : > { %v7094_v50 = vpop.permute.xlu0 %5034  ;;  %v4852_v31 = vunpack.i.h.bf16 %v8947_v44  ;;  %v4851_v13 = vunpack.i.l.bf16 %v8947_v44  ;;  %v4847_v38 = vunpack.i.h.bf16 %v8948_v26  ;;  %v4846_v49 = vunpack.i.l.bf16 %v8948_v26 }
 0x12a   : > { %v7130_v29 = vsel %vm1646_vm3, %v6954_v34, %v4831_v14  ;;  %v7134_v12 = vsel %vm1646_vm3, %v6958_v10, %v4832_v4  ;;  %v7138_v43 = vsel %vm1646_vm3, %v6962_v61, %v4826_v17  ;;  %v4861_v44 = vunpack.i.l.bf16 %v8949_v7  ;;  %v8950_v14 = vld [vmem:[#allocation39_spill] sm:$0xff] }
 0x12b   : > { %v7143_v28 = vsel %vm1646_vm3, %v6967_v15, %v4827_v58  ;;  %v7147_v26 = vsel %vm1646_vm3, %v6971_v23, %v4841_v19  ;;  %v4862_v34 = vunpack.i.h.bf16 %v8949_v7  ;;  %v4856_v52 = vunpack.i.l.bf16 %v8950_v14  ;;  %v8956_v7 = vld [vmem:[#allocation43_spill] sm:$0xff] }
 0x12c   : > { %v7120_v33 = vpop.permute.xlu1 %5049  ;;  %v7153_v10 = vsel %vm1646_vm3, %v6977_v40, %v4842_v25  ;;  %v7157_v61 = vsel %vm1646_vm3, %v6981_v32, %v4836_v1  ;;  %v7161_v15 = vsel %vm1646_vm3, %v6985_v47, %v4837_v55  ;;  %v4857_v4 = vunpack.i.h.bf16 %v8950_v14 }
 0x12d   : > { %v7126_v54 = vpop.permute.xlu0 %5044  ;;  %v7168_v17 = vsel %vm1646_vm3, %v6992_v9, %v4851_v13  ;;  %v7172_v40 = vsel %vm1646_vm3, %v6996_v22, %v4852_v31  ;;  %v7176_v32 = vsel %vm1646_vm3, %v7000_v62, %v4846_v49  ;;  %v7180_v47 = vsel %vm1646_vm3, %v7004_v20, %v4847_v38  ;;  %v8953_v9 = vld [vmem:[#allocation40_spill] sm:$0xff]  ;;  %v8954_v22 = vld [vmem:[#allocation41_spill] sm:$0xff]  ;;  %v8955_v31 = vld [vmem:[#allocation42_spill] sm:$0xff] }
 0x12e   : > { %v7186_v19 = vsel %vm1646_vm3, %v7010_v30, %v4861_v44  ;;  %v4872_v25 = vunpack.i.h.bf16 %v8953_v9  ;;  %v4871_v55 = vunpack.i.l.bf16 %v8953_v9  ;;  %v4866_v1 = vunpack.i.l.bf16 %v8954_v22 }
 0x12f   : > { %v7193_v49 = vsel %vm1646_vm3, %v7017_v16, %v4862_v34  ;;  %v7197_v62 = vsel %vm1646_vm3, %v7021_v51, %v4856_v52  ;;  %v4867_v20 = vunpack.i.h.bf16 %v8954_v22  ;;  %v4881_v13 = vunpack.i.l.bf16 %v8955_v31  ;;  %v8958_v34 = vld [vmem:[#allocation44_spill] sm:$0xff]  ;;  %v8959_v51 = vld [vmem:[#allocation45_spill] sm:$0xff] }
 0x130   : > { %v7164_v23 = vpop.permute.xlu1 %5059  ;;  %v7203_v30 = vsel %vm1646_vm3, %v7027_v59, %v4857_v4  ;;  %v4882_v38 = vunpack.i.h.bf16 %v8955_v31  ;;  %v4877_v44 = vunpack.i.h.bf16 %v8956_v7  ;;  %v4876_v14 = vunpack.i.l.bf16 %v8956_v7  ;;  %v8963_v7 = vld [vmem:[#allocation46_spill] sm:$0xff] }
 0x131   : > { %8951 = vst [vmem:[#allocation8_spill] sm:$0xff] %v7164_v23  ;;  %v7182_v58 = vpop.permute.xlu0 %5054  ;;  %v4892_v9 = vunpack.i.h.bf16 %v8958_v34  ;;  %v4891_v52 = vunpack.i.l.bf16 %v8958_v34  ;;  %v4887_v22 = vunpack.i.h.bf16 %v8959_v51  ;;  %v7218_v59 = vsel %vm1646_vm3, %v7042_v46, %v4871_v55  ;;  %v8965_v55 = vld [vmem:[#allocation47_spill] sm:$0xff] }
 0x132   : > { %8952 = vst [vmem:[#allocation11_spill] sm:$0xff] %v7182_v58  ;;  %v4886_v58 = vunpack.i.l.bf16 %v8959_v51  ;;  %v7222_v4 = vsel %vm1646_vm3, %v7046_v3, %v4872_v25  ;;  %v7226_v31 = vsel %vm1646_vm3, %v7050_v39, %v4866_v1  ;;  %v4901_v34 = vunpack.i.l.bf16 %v8963_v7 }
 0x133   : > { %8961 = vst [vmem:[#allocation16_spill] sm:$0xff] %v7222_v4  ;;  %8962 = vst [vmem:[#allocation17_spill] sm:$0xff] %v7226_v31  ;;  %v7235_v51 = vsel %vm1679_vm4, %v7059_v48, %v4881_v13  ;;  %v4902_v46 = vunpack.i.h.bf16 %v8963_v7  ;;  %v7241_v3 = vsel %vm1679_vm4, %v7065_v0, %v4882_v38  ;;  %v7245_v39 = vsel %vm1679_vm4, %v7069_v8, %v4876_v14  ;;  %v8969_v7 = vld [vmem:[#allocation51_spill] sm:$0xff] }
 0x134   : > { %v7208_v16 = vpop.permute.xlu1 %5069  ;;  %v4897_v25 = vunpack.i.h.bf16 %v8965_v55  ;;  %v7256_v1 = vsel %vm1679_vm4, %v7080_v24, %v4891_v52  ;;  %v7260_v0 = vsel %vm1679_vm4, %v7084_v63, %v4892_v9  ;;  %v7264_v8 = vsel %vm1679_vm4, %v7088_v21, %v4886_v58  ;;  %v8966_v24 = vld [vmem:[#allocation48_spill] sm:$0xff]  ;;  %v8967_v63 = vld [vmem:[#allocation49_spill] sm:$0xff]  ;;  %v8968_v9 = vld [vmem:[#allocation50_spill] sm:$0xff] }
 0x135   : > { %8957 = vst [vmem:[#allocation12_spill] sm:$0xff] %v7208_v16  ;;  %v7214_v23 = vpop.permute.xlu0 %5064  ;;  %v7231_v16 = vsel %vm1646_vm3, %v7055_v11, %v4867_v20  ;;  %v7249_v11 = vsel %vm1679_vm4, %v7073_v2, %v4877_v44  ;;  %v7268_v2 = vsel %vm1679_vm4, %v7092_v35, %v4887_v22  ;;  %v7274_v13 = vsel %vm1679_vm4, %v7098_v27, %v4901_v34 }
 0x136   : > { %8960 = vst [vmem:[#allocation15_spill] sm:$0xff] %v7214_v23  ;;  %8964 = vst [vmem:[#allocation18_spill] sm:$0xff] %v7231_v16  ;;  %v4896_v23 = vunpack.i.l.bf16 %v8965_v55  ;;  %v4912_v38 = vunpack.i.h.bf16 %v8966_v24  ;;  %v4911_v44 = vunpack.i.l.bf16 %v8966_v24  ;;  %v4906_v14 = vunpack.i.l.bf16 %v8967_v63  ;;  %v8970_v55 = vld [vmem:[#allocation52_spill] sm:$0xff]  ;;  %v8971_v24 = vld [vmem:[#allocation53_spill] sm:$0xff] }
 0x137   : > { %v7281_v21 = vsel %vm1679_vm4, %v7105_v53, %v4902_v46  ;;  %v4907_v58 = vunpack.i.h.bf16 %v8967_v63  ;;  %v4921_v52 = vunpack.i.l.bf16 %v8968_v9  ;;  %v7291_v27 = vsel %vm1679_vm4, %v7115_v36, %v4897_v25 }
 0x138   : > { %v7252_v48 = vpop.permute.xlu1 %5079  ;;  %v7285_v35 = vsel %vm1679_vm4, %v7109_v60, %v4896_v23  ;;  %v4922_v22 = vunpack.i.h.bf16 %v8968_v9  ;;  %v4917_v34 = vunpack.i.h.bf16 %v8969_v7  ;;  %v4916_v53 = vunpack.i.l.bf16 %v8969_v7  ;;  %v8973_v7 = vld [vmem:[#allocation54_spill] sm:$0xff] }
 0x139   : > { %v7270_v20 = vpop.permute.xlu0 %5074  ;;  %v4932_v60 = vunpack.i.h.bf16 %v8970_v55  ;;  %v4931_v23 = vunpack.i.l.bf16 %v8970_v55  ;;  %v4927_v63 = vunpack.i.h.bf16 %v8971_v24  ;;  %v4926_v16 = vunpack.i.l.bf16 %v8971_v24 }
 0x13a   : > { %v7306_v36 = vsel %vm1679_vm4, %v7130_v29, %v4911_v44  ;;  %v7310_v25 = vsel %vm1679_vm4, %v7134_v12, %v4912_v38  ;;  %v7314_v9 = vsel %vm1679_vm4, %v7138_v43, %v4906_v14  ;;  %v4941_v55 = vunpack.i.l.bf16 %v8973_v7  ;;  %v8974_v44 = vld [vmem:[#allocation55_spill] sm:$0xff] }
 0x13b   : > { %v7319_v4 = vsel %vm1679_vm4, %v7143_v28, %v4907_v58  ;;  %v7323_v24 = vsel %vm1679_vm4, %v7147_v26, %v4921_v52  ;;  %v4942_v29 = vunpack.i.h.bf16 %v8973_v7  ;;  %v7329_v12 = vsel %vm1679_vm4, %v7153_v10, %v4922_v22 }
 0x13c   : > { %v7296_v46 = vpop.permute.xlu1 %5089  ;;  %v7333_v43 = vsel %vm1679_vm4, %v7157_v61, %v4916_v53  ;;  %v7337_v28 = vsel %vm1679_vm4, %v7161_v15, %v4917_v34  ;;  %v4937_v38 = vunpack.i.h.bf16 %v8974_v44  ;;  %v7344_v14 = vsel %vm1679_vm4, %v7168_v17, %v4931_v23  ;;  %v8975_v17 = vld [vmem:[#allocation56_spill] sm:$0xff] }
 0x13d   : > { %v7302_v31 = vpop.permute.xlu0 %5084  ;;  %v7348_v10 = vsel %vm1679_vm4, %v7172_v40, %v4932_v60  ;;  %v7352_v61 = vsel %vm1679_vm4, %v7176_v32, %v4926_v16  ;;  %v7356_v15 = vsel %vm1679_vm4, %v7180_v47, %v4927_v63  ;;  %v7362_v52 = vsel %vm1679_vm4, %v7186_v19, %v4941_v55 }
 0x13e   : > { %8972 = vst [vmem:[#allocation19_spill] sm:$0xff] %v7302_v31  ;;  %v4936_v31 = vunpack.i.l.bf16 %v8974_v44  ;;  %v4951_v22 = vunpack.i.l.bf16 %v8975_v17  ;;  %v4962_v34 = vunpack.i.h.bf16 %v6721_v37  ;;  %v4961_v40 = vunpack.i.l.bf16 %v6721_v37 }
 0x13f   : > { %v7369_v32 = vsel %vm1679_vm4, %v7193_v49, %v4942_v29  ;;  %v4957_v16 = vunpack.i.h.bf16 %v6735_v56  ;;  %v4956_v53 = vunpack.i.l.bf16 %v6735_v56  ;;  %v7379_v19 = vsel %vm1679_vm4, %v7203_v30, %v4937_v38 }
 0x140   : > { %v7340_v26 = vpop.permute.xlu1 %5099  ;;  %v7373_v47 = vsel %vm1679_vm4, %v7197_v62, %v4936_v31  ;;  %v4971_v49 = vunpack.i.l.bf16 %v6763_v18  ;;  %v4972_v31 = vunpack.i.h.bf16 %v6763_v18  ;;  %v4967_v56 = vunpack.i.h.bf16 %v6769_v6 }
 0x141   : > { %v7358_v58 = vpop.permute.xlu0 %5094  ;;  %v4966_v63 = vunpack.i.l.bf16 %v6769_v6  ;;  %v7394_v30 = vsel %vm1679_vm4, %v7218_v59, %v4951_v22  ;;  %v1715_v55 = vsel %vm1712_vm5, %v7235_v51, %v4961_v40  ;;  %v1716_v29 = vsel %vm1712_vm5, %v7241_v3, %v4962_v34 }
 0x142   : > { %v4981_v44 = vunpack.i.l.bf16 %v6809_v57  ;;  %v1713_v18 = vsel %vm1712_vm5, %v7245_v39, %v4956_v53  ;;  %v1714_v6 = vsel %vm1712_vm5, %v7249_v11, %v4957_v16  ;;  %v4982_v38 = vunpack.i.h.bf16 %v6809_v57 }
 0x143   : > { %v5041_v37 = vunpack.i.l.bf16 %v7076_v42  ;;  %v1719_v59 = vsel %vm1712_vm5, %v7256_v1, %v4971_v49  ;;  %v5042_v51 = vunpack.i.h.bf16 %v7076_v42  ;;  %v5037_v22 = vunpack.i.h.bf16 %v7094_v50 }
 0x144   : > { %v7384_v23 = vpop.permute.xlu1 %5109  ;;  %v5036_v3 = vunpack.i.l.bf16 %v7094_v50  ;;  %v1720_v39 = vsel %vm1712_vm5, %v7260_v0, %v4972_v31  ;;  %v1717_v11 = vsel %vm1712_vm5, %v7264_v8, %v4966_v63  ;;  %v1718_v57 = vsel %vm1712_vm5, %v7268_v2, %v4967_v56 }
 0x145   : > { %v7390_v7 = vpop.permute.xlu0 %5104  ;;  %v4977_v40 = vunpack.i.h.bf16 %v6827_v41  ;;  %v7421_v42 = vsel %vm1712_vm5, %v7274_v13, %v4981_v44  ;;  %v4976_v50 = vunpack.i.l.bf16 %v6827_v41  ;;  %v7426_v0 = vsel %vm1712_vm5, %v7281_v21, %v4982_v38 }
 0x146   : > { %v1748_v8 = vsel %vm1745_vm6, %v1715_v55, %v5041_v37  ;;  %v1749_v2 = vsel %vm1745_vm6, %v1716_v29, %v5042_v51  ;;  %v5052_v56 = vunpack.i.h.bf16 %v7120_v33  ;;  %v1746_v13 = vsel %vm1745_vm6, %v1713_v18, %v5036_v3 }
 0x147   : > { %v1747_v44 = vsel %vm1745_vm6, %v1714_v6, %v5037_v22  ;;  %v5051_v41 = vunpack.i.l.bf16 %v7120_v33  ;;  %v5046_v33 = vunpack.i.l.bf16 %v7126_v54  ;;  %vm3875_vm1 = vcmask 588800  }
 0x148   : > { %v5120_v34 = vpop.permute.xlu1 %5119 }
 0x149   : > { %v5115_v1 = vpop.permute.xlu0 %5114  ;;  %v5122_v16 = vunpack.i.h.bf16 %v5120_v34  ;;  %v5121_v53 = vunpack.i.l.bf16 %v5120_v34  ;;  %v5047_v34 = vunpack.i.h.bf16 %v7126_v54 }
 0x14a   : > { %v5117_v49 = vunpack.i.h.bf16 %v5115_v1  ;;  %v5116_v31 = vunpack.i.l.bf16 %v5115_v1 }
 0x14b   : > { %v1781_v37 = vsel %vm1778_vm7, %v1748_v8, %v5121_v53  ;;  %v1782_v55 = vsel %vm1778_vm7, %v1749_v2, %v5122_v16  ;;  %v1721_v16 = vsel %vm1712_vm5, %v7285_v35, %v4976_v50  ;;  %v1722_v8 = vsel %vm1712_vm5, %v7291_v27, %v4977_v40  ;;  %v8977_v50 = vld [vmem:[#allocation8_spill] sm:$0xff] }
 0x14c   : > { %v5130_v63 = vpop.permute.xlu1 %5129  ;;  %v1779_v18 = vsel %vm1778_vm7, %v1746_v13, %v5116_v31  ;;  %v1780_v6 = vsel %vm1778_vm7, %v1747_v44, %v5117_v49  ;;  %v4991_v49 = vunpack.i.l.bf16 %v6856_v45  ;;  %v8976_v13 = vld [vmem:[#allocation3_spill] sm:$0xff]  ;;  %v1753_v35 = vsel %vm1745_vm6, %v1720_v39, %v5052_v56 }
 0x14d   : > { %v5132_v62 = vunpack.i.h.bf16 %v5130_v63  ;;  %v5131_v21 = vunpack.i.l.bf16 %v5130_v63  ;;  %v5125_v38 = vpop.permute.xlu0 %5124  ;;  %v4987_v54 = vunpack.i.h.bf16 %v8976_v13  ;;  %v1750_v27 = vsel %vm1745_vm6, %v1717_v11, %v5046_v33 }
 0x14e   : > { %v5127_v1 = vunpack.i.h.bf16 %v5125_v38  ;;  %v5126_v29 = vunpack.i.l.bf16 %v5125_v38  ;;  %v4986_v38 = vunpack.i.l.bf16 %v8976_v13  ;;  %v1751_v40 = vsel %vm1745_vm6, %v1718_v57, %v5047_v34 }
 0x14f   : > { %v1814_v51 = vsel %vm1811_vm8, %v1781_v37, %v5131_v21  ;;  %v1815_v60 = vsel %vm1811_vm8, %v1782_v55, %v5132_v62  ;;  %v4992_v62 = vunpack.i.h.bf16 %v6856_v45  ;;  %v5062_v45 = vunpack.i.h.bf16 %v8977_v50 }
 0x150   : > { %v5140_v22 = vpop.permute.xlu1 %5139  ;;  %v1812_v3 = vsel %vm1811_vm8, %v1779_v18, %v5126_v29  ;;  %v1813_v63 = vsel %vm1811_vm8, %v1780_v6, %v5127_v1  ;;  %v1845_v53 = vpack.c.bf16 %v1815_v60, %v1814_v51  ;;  %v1752_v60 = vsel %vm1745_vm6, %v1719_v59, %v5051_v41  ;;  %v8978_v51 = vld [vmem:[#allocation11_spill] sm:$0xff] }
 0x151   : > { %v5135_v2 = vpop.permute.xlu0 %5134  ;;  %v1844_v31 = vpack.c.bf16 %v1813_v63, %v1812_v3  ;;  %v5142_v44 = vunpack.i.h.bf16 %v5140_v22  ;;  %v5141_v21 = vunpack.i.l.bf16 %v5140_v22  ;;  %v5061_v29 = vunpack.i.l.bf16 %v8977_v50 }
 0x152   : > { %v5137_v37 = vunpack.i.h.bf16 %v5135_v2  ;;  %v5136_v55 = vunpack.i.l.bf16 %v5135_v2  ;;  %v5057_v18 = vunpack.i.h.bf16 %v8978_v51  ;;  %v5056_v63 = vunpack.i.l.bf16 %v8978_v51 }
 0x153   : > { %4535 = vmatprep.mubr.msk.bf16.mxu0 %vm1887_vm9, %v1844_v31  ;;  %v1785_v22 = vsel %vm1778_vm7, %v1752_v60, %v5141_v21  ;;  %v1786_v39 = vsel %vm1778_vm7, %v1753_v35, %v5142_v44  ;;  %v1727_v44 = vsel %vm1712_vm5, %v7306_v36, %v4991_v49  ;;  %v1728_v60 = vsel %vm1712_vm5, %v7310_v25, %v4992_v62 }
 0x154   : > { %4536 = vmatmul.mubr.msk.bf16.vlgmr.msra.gmra.mrb[0].mxu0 %vm1887_vm9, %v1845_v53  ;;  %v5150_v1 = vpop.permute.xlu1 %5149  ;;  %v1783_v57 = vsel %vm1778_vm7, %v1750_v27, %v5136_v55  ;;  %v1784_v34 = vsel %vm1778_vm7, %v1751_v40, %v5137_v37  ;;  %v1725_v37 = vsel %vm1712_vm5, %v7314_v9, %v4986_v38  ;;  %v8979_v27 = vld [vmem:[#allocation4_spill] sm:$0xff]  ;;  %v1757_v25 = vsel %vm1745_vm6, %v7426_v0, %v5062_v45 }
 0x155   : > { %v5152_v59 = vunpack.i.h.bf16 %v5150_v1  ;;  %v5151_v41 = vunpack.i.l.bf16 %v5150_v1  ;;  %v5145_v6 = vpop.permute.xlu0 %5144  ;;  %v5002_v40 = vunpack.i.h.bf16 %v8979_v27  ;;  %v5001_v50 = vunpack.i.l.bf16 %v8979_v27  ;;  %v8981_v38 = vld [vmem:[#allocation12_spill] sm:$0xff] }
 0x156   : > { %v5147_v56 = vunpack.i.h.bf16 %v5145_v6  ;;  %v5146_v11 = vunpack.i.l.bf16 %v5145_v6  ;;  %v1756_v6 = vsel %vm1745_vm6, %v7421_v42, %v5061_v29  ;;  %v1754_v9 = vsel %vm1745_vm6, %v1721_v16, %v5056_v63 }
 0x157   : > { %v1818_v33 = vsel %vm1811_vm8, %v1785_v22, %v5151_v41  ;;  %v1819_v3 = vsel %vm1811_vm8, %v1786_v39, %v5152_v59  ;;  %v8980_v59 = vld [vmem:[#allocation9_spill] sm:$0xff]  ;;  %v1755_v62 = vsel %vm1745_vm6, %v1722_v8, %v5057_v18  ;;  %v5072_v22 = vunpack.i.h.bf16 %v8981_v38 }
 0x158   : > { %v1816_v53 = vsel %vm1811_vm8, %v1783_v57, %v5146_v11  ;;  %v1817_v2 = vsel %vm1811_vm8, %v1784_v34, %v5147_v56  ;;  %v5160_v31 = vpop.permute.xlu1 %5159  ;;  %v1847_v21 = vpack.c.bf16 %v1819_v3, %v1818_v33  ;;  %v4996_v41 = vunpack.i.l.bf16 %v8980_v59  ;;  %v8982_v11 = vld [vmem:[#allocation15_spill] sm:$0xff] }
 0x159   : > { %v5155_v55 = vpop.permute.xlu0 %5154  ;;  %v1846_v35 = vpack.c.bf16 %v1817_v2, %v1816_v53  ;;  %v5162_v1 = vunpack.i.h.bf16 %v5160_v31  ;;  %v5161_v51 = vunpack.i.l.bf16 %v5160_v31  ;;  %v5071_v56 = vunpack.i.l.bf16 %v8981_v38 }
 0x15a   : > { %v5157_v36 = vunpack.i.h.bf16 %v5155_v55  ;;  %v5156_v49 = vunpack.i.l.bf16 %v5155_v55  ;;  %v5067_v42 = vunpack.i.h.bf16 %v8982_v11  ;;  %v5066_v53 = vunpack.i.l.bf16 %v8982_v11 }
 0x15b   : > { %4539 = vmatprep.mubr.msk.bf16.mxu0 %vm1887_vm9, %v1846_v35  ;;  %v1789_v33 = vsel %vm1778_vm7, %v1756_v6, %v5161_v51  ;;  %v1790_v0 = vsel %vm1778_vm7, %v1757_v25, %v5162_v1  ;;  %v1726_v35 = vsel %vm1712_vm5, %v7319_v4, %v4987_v54  ;;  %v1731_v27 = vsel %vm1712_vm5, %v7323_v24, %v5001_v50 }
 0x15c   : > { %4540 = vmatmul.mubr.msk.bf16.gmra.mrb[4].mxu0 %vm1887_vm9, %v1847_v21  ;;  %v5170_v39 = vpop.permute.xlu1 %5169  ;;  %v1787_v8 = vsel %vm1778_vm7, %v1754_v9, %v5156_v49  ;;  %v1788_v18 = vsel %vm1778_vm7, %v1755_v62, %v5157_v36  ;;  %v4997_v1 = vunpack.i.h.bf16 %v8980_v59  ;;  %v1732_v36 = vsel %vm1712_vm5, %v7329_v12, %v5002_v40  ;;  %v8983_v62 = vld [vmem:[#allocation10_spill] sm:$0xff] }
 0x15d   : > { %v5172_v29 = vunpack.i.h.bf16 %v5170_v39  ;;  %v5171_v57 = vunpack.i.l.bf16 %v5170_v39  ;;  %v5165_v34 = vpop.permute.xlu0 %5164  ;;  %v1729_v49 = vsel %vm1712_vm5, %v7333_v43, %v4996_v41  ;;  %v5011_v13 = vunpack.i.l.bf16 %v8983_v62 }
 0x15e   : > { %v5167_v45 = vunpack.i.h.bf16 %v5165_v34  ;;  %v5166_v16 = vunpack.i.l.bf16 %v5165_v34  ;;  %v1760_v38 = vsel %vm1745_vm6, %v1727_v44, %v5071_v56  ;;  %v1761_v24 = vsel %vm1745_vm6, %v1728_v60, %v5072_v22 }
 0x15f   : > { %v1822_v3 = vsel %vm1811_vm8, %v1789_v33, %v5171_v57  ;;  %v1823_v63 = vsel %vm1811_vm8, %v1790_v0, %v5172_v29  ;;  %v1758_v50 = vsel %vm1745_vm6, %v1725_v37, %v5066_v53  ;;  %v1759_v59 = vsel %vm1745_vm6, %v1726_v35, %v5067_v42  ;;  %v8985_v35 = vld [vmem:[#allocation6_spill] sm:$0xff] }
 0x160   : > { %v1820_v2 = vsel %vm1811_vm8, %v1787_v8, %v5166_v16  ;;  %v1821_v31 = vsel %vm1811_vm8, %v1788_v18, %v5167_v45  ;;  %v5180_v21 = vpop.permute.xlu1 %5179  ;;  %v1849_v55 = vpack.c.bf16 %v1823_v63, %v1822_v3  ;;  %v5082_v12 = vunpack.i.h.bf16 %v7252_v48  ;;  %v8984_v3 = vld [vmem:[#allocation5_spill] sm:$0xff] }
 0x161   : > { %v5175_v51 = vpop.permute.xlu0 %5174  ;;  %v1848_v6 = vpack.c.bf16 %v1821_v31, %v1820_v2  ;;  %v5182_v25 = vunpack.i.h.bf16 %v5180_v21  ;;  %v5181_v9 = vunpack.i.l.bf16 %v5180_v21  ;;  %v5081_v40 = vunpack.i.l.bf16 %v7252_v48 }
 0x162   : > { %v5177_v4 = vunpack.i.h.bf16 %v5175_v51  ;;  %v5176_v54 = vunpack.i.l.bf16 %v5175_v51  ;;  %v5077_v41 = vunpack.i.h.bf16 %v7270_v20  ;;  %v5076_v48 = vunpack.i.l.bf16 %v7270_v20 }
 0x163   : > { %4543 = vmatprep.mubr.msk.bf16.mxu0 %vm1887_vm9, %v1848_v6  ;;  %v1793_v11 = vsel %vm1778_vm7, %v1760_v38, %v5181_v9  ;;  %v1794_v60 = vsel %vm1778_vm7, %v1761_v24, %v5182_v25  ;;  %v1730_v8 = vsel %vm1712_vm5, %v7337_v28, %v4997_v1  ;;  %v5012_v18 = vunpack.i.h.bf16 %v8983_v62 }
 0x164   : > { %4544 = vmatmul.mubr.msk.bf16.gmra.mrb[8].mxu0 %vm1887_vm9, %v1849_v55  ;;  %v5190_v43 = vpop.permute.xlu1 %5189  ;;  %v1791_v42 = vsel %vm1778_vm7, %v1758_v50, %v5176_v54  ;;  %v1792_v29 = vsel %vm1778_vm7, %v1759_v59, %v5177_v4  ;;  %v5007_v63 = vunpack.i.h.bf16 %v8984_v3  ;;  %v1735_v31 = vsel %vm1712_vm5, %v7344_v14, %v5011_v13  ;;  %v8986_v4 = vld [vmem:[#allocation19_spill] sm:$0xff] }
 0x165   : > { %v5192_v44 = vunpack.i.h.bf16 %v5190_v43  ;;  %v5191_v39 = vunpack.i.l.bf16 %v5190_v43  ;;  %v5185_v56 = vpop.permute.xlu0 %5184  ;;  %v5006_v20 = vunpack.i.l.bf16 %v8984_v3  ;;  %v5021_v51 = vunpack.i.l.bf16 %v8985_v35 }
 0x166   : > { %v5187_v22 = vunpack.i.h.bf16 %v5185_v56  ;;  %v5186_v37 = vunpack.i.l.bf16 %v5185_v56  ;;  %v1764_v6 = vsel %vm1745_vm6, %v1731_v27, %v5081_v40  ;;  %v1765_v28 = vsel %vm1745_vm6, %v1732_v36, %v5082_v12 }
 0x167   : > { %v1826_v57 = vsel %vm1811_vm8, %v1793_v11, %v5191_v39  ;;  %v1827_v34 = vsel %vm1811_vm8, %v1794_v60, %v5192_v44  ;;  %v1762_v1 = vsel %vm1745_vm6, %v1729_v49, %v5076_v48  ;;  %v1763_v62 = vsel %vm1745_vm6, %v1730_v8, %v5077_v41  ;;  %v8987_v48 = vld [vmem:[#allocation13_spill] sm:$0xff] }
 0x168   : > { %v1824_v33 = vsel %vm1811_vm8, %v1791_v42, %v5186_v37  ;;  %v1825_v0 = vsel %vm1811_vm8, %v1792_v29, %v5187_v22  ;;  %v5200_v45 = vpop.permute.xlu1 %5199  ;;  %v1851_v16 = vpack.c.bf16 %v1827_v34, %v1826_v57  ;;  %v5092_v14 = vunpack.i.h.bf16 %v7296_v46 }
 0x169   : > { %v5195_v53 = vpop.permute.xlu0 %5194  ;;  %v1850_v2 = vpack.c.bf16 %v1825_v0, %v1824_v33  ;;  %v5202_v21 = vunpack.i.h.bf16 %v5200_v45  ;;  %v5201_v55 = vunpack.i.l.bf16 %v5200_v45  ;;  %v5091_v38 = vunpack.i.l.bf16 %v7296_v46 }
 0x16a   : > { %v5197_v25 = vunpack.i.h.bf16 %v5195_v53  ;;  %v5196_v9 = vunpack.i.l.bf16 %v5195_v53  ;;  %v5087_v54 = vunpack.i.h.bf16 %v8986_v4  ;;  %v5086_v46 = vunpack.i.l.bf16 %v8986_v4 }
 0x16b   : > { %4547 = vmatprep.mubr.msk.bf16.mxu0 %vm1887_vm9, %v1850_v2  ;;  %v1797_v59 = vsel %vm1778_vm7, %v1764_v6, %v5201_v55  ;;  %v1798_v36 = vsel %vm1778_vm7, %v1765_v28, %v5202_v21  ;;  %v1736_v22 = vsel %vm1712_vm5, %v7348_v10, %v5012_v18  ;;  %v1733_v37 = vsel %vm1712_vm5, %v7352_v61, %v5006_v20 }
 0x16c   : > { %4548 = vmatmul.mubr.msk.bf16.gmra.mrb[12].mxu0 %vm1887_vm9, %v1851_v16  ;;  %v5210_v13 = vpop.permute.xlu1 %5209  ;;  %v1795_v43 = vsel %vm1778_vm7, %v1762_v1, %v5196_v9  ;;  %v1796_v40 = vsel %vm1778_vm7, %v1763_v62, %v5197_v25  ;;  %v1734_v42 = vsel %vm1712_vm5, %v7356_v15, %v5007_v63  ;;  %v5022_v34 = vunpack.i.h.bf16 %v8985_v35 }
 0x16d   : > { %v5212_v27 = vunpack.i.h.bf16 %v5210_v13  ;;  %v5211_v24 = vunpack.i.l.bf16 %v5210_v13  ;;  %v5205_v50 = vpop.permute.xlu0 %5204  ;;  %v5017_v33 = vunpack.i.h.bf16 %v8987_v48  ;;  %v1739_v16 = vsel %vm1712_vm5, %v7362_v52, %v5021_v51 }
 0x16e   : > { %v5207_v12 = vunpack.i.h.bf16 %v5205_v50  ;;  %v5206_v49 = vunpack.i.l.bf16 %v5205_v50  ;;  %v5016_v8 = vunpack.i.l.bf16 %v8987_v48  ;;  %v1768_v61 = vsel %vm1745_vm6, %v1735_v31, %v5091_v38 }
 0x16f   : > { %v1830_v41 = vsel %vm1811_vm8, %v1797_v59, %v5211_v24  ;;  %v1831_v44 = vsel %vm1811_vm8, %v1798_v36, %v5212_v27  ;;  %v1769_v15 = vsel %vm1745_vm6, %v1736_v22, %v5092_v14  ;;  %v1766_v3 = vsel %vm1745_vm6, %v1733_v37, %v5086_v46  ;;  %v8988_v36 = vld [vmem:[#allocation14_spill] sm:$0xff] }
 0x170   : > { %v1828_v39 = vsel %vm1811_vm8, %v1795_v43, %v5206_v49  ;;  %v1829_v56 = vsel %vm1811_vm8, %v1796_v40, %v5207_v12  ;;  %v5220_v11 = vpop.permute.xlu1 %5219  ;;  %v1853_v60 = vpack.c.bf16 %v1831_v44, %v1830_v41  ;;  %v1767_v63 = vsel %vm1745_vm6, %v1734_v42, %v5087_v54  ;;  %v8989_v41 = vld [vmem:[#allocation7_spill] sm:$0xff] }
 0x171   : > { %v5215_v29 = vpop.permute.xlu0 %5214  ;;  %v1852_v57 = vpack.c.bf16 %v1829_v56, %v1828_v39  ;;  %v5222_v0 = vunpack.i.h.bf16 %v5220_v11  ;;  %v5221_v45 = vunpack.i.l.bf16 %v5220_v11  ;;  %v5102_v2 = vunpack.i.h.bf16 %v7340_v26 }
 0x172   : > { %v5217_v10 = vunpack.i.h.bf16 %v5215_v29  ;;  %v5216_v18 = vunpack.i.l.bf16 %v5215_v29  ;;  %v5101_v52 = vunpack.i.l.bf16 %v7340_v26  ;;  %v5096_v62 = vunpack.i.l.bf16 %v7358_v58 }
 0x173   : > { %4551 = vmatprep.mubr.msk.bf16.mxu0 %vm1887_vm9, %v1852_v57  ;;  %v1801_v35 = vsel %vm1778_vm7, %v1768_v61, %v5221_v45  ;;  %v1802_v31 = vsel %vm1778_vm7, %v1769_v15, %v5222_v0  ;;  %v1740_v4 = vsel %vm1712_vm5, %v7369_v32, %v5022_v34  ;;  %v1737_v54 = vsel %vm1712_vm5, %v7373_v47, %v5016_v8 }
 0x174   : > { %4552 = vmatmul.mubr.msk.bf16.gmra.mrb[16].mxu0 %vm1887_vm9, %v1853_v60  ;;  %v5230_v53 = vpop.permute.xlu1 %5229  ;;  %v1799_v25 = vsel %vm1778_vm7, %v1766_v3, %v5216_v18  ;;  %v1800_v9 = vsel %vm1778_vm7, %v1767_v63, %v5217_v10  ;;  %v5097_v27 = vunpack.i.h.bf16 %v7358_v58  ;;  %v1738_v59 = vsel %vm1712_vm5, %v7379_v19, %v5017_v33  ;;  %v8991_v63 = vld [vmem:[#allocation16_spill] sm:$0xff] }
 0x175   : > { %v5232_v20 = vunpack.i.h.bf16 %v5230_v53  ;;  %v5231_v21 = vunpack.i.l.bf16 %v5230_v53  ;;  %v5225_v55 = vpop.permute.xlu0 %5224  ;;  %v5032_v12 = vunpack.i.h.bf16 %v8988_v36  ;;  %v5031_v40 = vunpack.i.l.bf16 %v8988_v36 }
 0x176   : > { %v5227_v51 = vunpack.i.h.bf16 %v5225_v55  ;;  %v5226_v6 = vunpack.i.l.bf16 %v5225_v55  ;;  %v5027_v44 = vunpack.i.h.bf16 %v8989_v41  ;;  %v5026_v47 = vunpack.i.l.bf16 %v8989_v41 }
 0x177   : > { %v1834_v28 = vsel %vm1811_vm8, %v1801_v35, %v5231_v21  ;;  %v1835_v1 = vsel %vm1811_vm8, %v1802_v31, %v5232_v20  ;;  %v1772_v58 = vsel %vm1745_vm6, %v1739_v16, %v5101_v52  ;;  %v1773_v39 = vsel %vm1745_vm6, %v1740_v4, %v5102_v2 }
 0x178   : > { %v1832_v26 = vsel %vm1811_vm8, %v1799_v25, %v5226_v6  ;;  %v1833_v14 = vsel %vm1811_vm8, %v1800_v9, %v5227_v51  ;;  %v5240_v13 = vpop.permute.xlu1 %5239  ;;  %v1855_v38 = vpack.c.bf16 %v1835_v1, %v1834_v28  ;;  %v1770_v19 = vsel %vm1745_vm6, %v1737_v54, %v5096_v62  ;;  %v8995_v51 = vld [vmem:[#allocation18_spill] sm:$0xff] }
 0x179   : > { %v5235_v24 = vpop.permute.xlu0 %5234  ;;  %v1854_v50 = vpack.c.bf16 %v1833_v14, %v1832_v26  ;;  %v5242_v49 = vunpack.i.h.bf16 %v5240_v13  ;;  %v5241_v43 = vunpack.i.l.bf16 %v5240_v13  ;;  %v1771_v11 = vsel %vm1745_vm6, %v1738_v59, %v5097_v27 }
 0x17a   : > { %v5237_v46 = vunpack.i.h.bf16 %v5235_v24  ;;  %v5236_v32 = vunpack.i.l.bf16 %v5235_v24  ;;  %v5112_v60 = vunpack.i.h.bf16 %v7384_v23  ;;  %v5111_v8 = vunpack.i.l.bf16 %v7384_v23  ;;  %v8993_v23 = vld [vmem:[#allocation17_spill] sm:$0xff] }
 0x17b   : > { %4555 = vmatprep.mubr.msk.bf16.mxu0 %vm1887_vm9, %v1854_v50  ;;  %v1805_v29 = vsel %vm1778_vm7, %v1772_v58, %v5241_v43  ;;  %v1806_v57 = vsel %vm1778_vm7, %v1773_v39, %v5242_v49  ;;  %v8990_v3 = vunpack.i.h.bf16 %v8975_v17  ;;  %v5107_v2 = vunpack.i.h.bf16 %v7390_v7 }
 0x17c   : > { %4556 = vmatmul.mubr.msk.bf16.gmra.mrb[20].mxu0 %vm1887_vm9, %v1855_v38  ;;  %v5250_v56 = vpop.permute.xlu1 %5249  ;;  %v1803_v33 = vsel %vm1778_vm7, %v1770_v19, %v5236_v32  ;;  %v1804_v0 = vsel %vm1778_vm7, %v1771_v11, %v5237_v46  ;;  %v5106_v52 = vunpack.i.l.bf16 %v7390_v7  ;;  %v8992_v55 = vunpack.i.l.bf16 %v6690_v5 }
 0x17d   : > { %v5252_v22 = vunpack.i.h.bf16 %v5250_v56  ;;  %v5251_v37 = vunpack.i.l.bf16 %v5250_v56  ;;  %v5245_v42 = vpop.permute.xlu0 %5244  ;;  %v1711_v53 = vsel %vm1679_vm4, %v8991_v63, %v8990_v3  ;;  %v8994_v31 = vunpack.i.h.bf16 %v6690_v5 }
 0x17e   : > { %v5247_v34 = vunpack.i.h.bf16 %v5245_v42  ;;  %v5246_v48 = vunpack.i.l.bf16 %v5245_v42  ;;  %v1708_v35 = vsel %vm1679_vm4, %v8993_v23, %v8992_v55  ;;  %v1743_v9 = vsel %vm1712_vm5, %v7394_v30, %v5031_v40 }
 0x17f   : > { %v1838_v45 = vsel %vm1811_vm8, %v1805_v29, %v5251_v37  ;;  %v1839_v16 = vsel %vm1811_vm8, %v1806_v57, %v5252_v22  ;;  %v1709_v6 = vsel %vm1679_vm4, %v8995_v51, %v8994_v31  ;;  %v1744_v28 = vsel %vm1712_vm5, %v1711_v53, %v5032_v12  ;;  %v7690_v22 = vld [vmem:[%s8778_s2] ss:$0 sm:$0xff] }
 0x180   : > { %v1836_v10 = vsel %vm1811_vm8, %v1803_v33, %v5246_v48  ;;  %v1837_v18 = vsel %vm1811_vm8, %v1804_v0, %v5247_v34  ;;  %v5260_v61 = vpop.permute.xlu1 %5259  ;;  %v1857_v15 = vpack.c.bf16 %v1839_v16, %v1838_v45  ;;  %v1741_v62 = vsel %vm1712_vm5, %v1708_v35, %v5026_v47 }
 0x181   : > { %v5255_v20 = vpop.permute.xlu0 %5254  ;;  %v1856_v21 = vpack.c.bf16 %v1837_v18, %v1836_v10  ;;  %v5262_v17 = vunpack.i.h.bf16 %v5260_v61  ;;  %v5261_v25 = vunpack.i.l.bf16 %v5260_v61  ;;  %v1742_v26 = vsel %vm1712_vm5, %v1709_v6, %v5027_v44 }
 0x182   : > { %v5257_v7 = vunpack.i.h.bf16 %v5255_v20  ;;  %v5256_v1 = vunpack.i.l.bf16 %v5255_v20  ;;  %v1776_v5 = vsel %vm1745_vm6, %v1743_v9, %v5111_v8  ;;  %v1777_v14 = vsel %vm1745_vm6, %v1744_v28, %v5112_v60 }
 0x183   : > { %4559 = vmatprep.mubr.msk.bf16.mxu0 %vm1887_vm9, %v1856_v21  ;;  %v1774_v38 = vsel %vm1745_vm6, %v1741_v62, %v5106_v52  ;;  %v1775_v30 = vsel %vm1745_vm6, %v1742_v26, %v5107_v2  ;;  %v1809_v24 = vsel %vm1778_vm7, %v1776_v5, %v5261_v25  ;;  %v1810_v50 = vsel %vm1778_vm7, %v1777_v14, %v5262_v17 }
 0x184   : > { %4560 = vmatmul.mubr.msk.bf16.gmra.mrb[24].mxu0 %vm1887_vm9, %v1857_v15  ;;  %v5270_v13 = vpop.permute.xlu1 %5269  ;;  %v1807_v12 = vsel %vm1778_vm7, %v1774_v38, %v5256_v1  ;;  %v1808_v49 = vsel %vm1778_vm7, %v1775_v30, %v5257_v7  ;;  %v5937_v47 = vmov 0.0  }
 0x185   : > { %v5272_v4 = vunpack.i.h.bf16 %v5270_v13  ;;  %v5271_v54 = vunpack.i.l.bf16 %v5270_v13  ;;  %v5265_v27 = vpop.permute.xlu0 %5264  ;;  %2165 = vst.msk [vmem:[#allocation2] sm:$0xff] %vm1613_vm2, %v5937_v47  ;;  %2166 = vst.msk [vmem:[#allocation2 + $0x8] sm:$0xff] %vm1613_vm2, %v5937_v47 }
 0x186   : > { %v5267_v59 = vunpack.i.h.bf16 %v5265_v27  ;;  %v5266_v36 = vunpack.i.l.bf16 %v5265_v27  ;;  %2168 = vst.msk [vmem:[#allocation2 + $0x10] sm:$0x3] %vm2167_vm10, %v5937_v47  ;;  %2172 = vst.msk [vmem:[#allocation2 + $0x1a8] sm:$0x3] %vm2167_vm10, %v5937_v47 }
 0x187   : > { %v1842_v43 = vsel %vm1811_vm8, %v1809_v24, %v5271_v54  ;;  %v1843_v40 = vsel %vm1811_vm8, %v1810_v50, %v5272_v4  ;;  %2170 = vst.msk [vmem:[#allocation2 + $0x198] sm:$0xff] %vm1613_vm2, %v5937_v47  ;;  %2171 = vst.msk [vmem:[#allocation2 + $0x1a0] sm:$0xff] %vm1613_vm2, %v5937_v47 }
 0x188   : > { %v1840_v41 = vsel %vm1811_vm8, %v1807_v12, %v5266_v36  ;;  %v1841_v44 = vsel %vm1811_vm8, %v1808_v49, %v5267_v59  ;;  %v1859_v46 = vpack.c.bf16 %v1843_v40, %v1842_v43  ;;  %2192 = vst.msk [vmem:[#allocation2 + $0x11] sm:$0x1] %vm2173_vm11, %v5937_v47  ;;  %2174 = vst.msk [vmem:[#allocation2] sm:$0x1] %vm2173_vm11, %v5937_v47 }
 0x189   : > { %v1858_v32 = vpack.c.bf16 %v1841_v44, %v1840_v41  ;;  %2175 = vst.msk [vmem:[#allocation2 + $0x18] sm:$0x1] %vm2173_vm11, %v5937_v47  ;;  %2176 = vst.msk [vmem:[#allocation2 + $0x30] sm:$0x1] %vm2173_vm11, %v5937_v47 }
 0x18a   : > { %2177 = vst.msk [vmem:[#allocation2 + $0x48] sm:$0x1] %vm2173_vm11, %v5937_v47  ;;  %2178 = vst.msk [vmem:[#allocation2 + $0x60] sm:$0x1] %vm2173_vm11, %v5937_v47 }
 0x18b   : > { %4563 = vmatprep.mubr.msk.bf16.mxu0 %vm1887_vm9, %v1858_v32  ;;  %2179 = vst.msk [vmem:[#allocation2 + $0x78] sm:$0x1] %vm2173_vm11, %v5937_v47  ;;  %2180 = vst.msk [vmem:[#allocation2 + $0x90] sm:$0x1] %vm2173_vm11, %v5937_v47 }
 0x18c   : > { %4564 = vmatmul.mubr.msk.bf16.gmra.mrb[28].mxu0 %vm1887_vm9, %v1859_v46  ;;  %2181 = vst.msk [vmem:[#allocation2 + $0xa8] sm:$0x1] %vm2173_vm11, %v5937_v47  ;;  %2182 = vst.msk [vmem:[#allocation2 + $0xc0] sm:$0x1] %vm2173_vm11, %v5937_v47  ;;  %v2275_v58 = vld [vmem:[#allocation2 + $0x1] sm:$0xff] }
 0x18d   : > { %2183 = vst.msk [vmem:[#allocation2 + $0xd8] sm:$0x1] %vm2173_vm11, %v5937_v47  ;;  %2184 = vst.msk [vmem:[#allocation2 + $0xf0] sm:$0x1] %vm2173_vm11, %v5937_v47  ;;  %v2276_v39 = vld [vmem:[#allocation2 + $0x9] sm:$0xff] }
 0x18e   : > { %2185 = vst.msk [vmem:[#allocation2 + $0x108] sm:$0x1] %vm2173_vm11, %v5937_v47  ;;  %2186 = vst.msk [vmem:[#allocation2 + $0x120] sm:$0x1] %vm2173_vm11, %v5937_v47  ;;  %v5273_v19 = vpack.i.bf16 %v2276_v39, %v2275_v58  ;;  %v2307_v56 = vld [vmem:[#allocation2 + $0x2] sm:$0xff] }
 0x18f   : > { %2187 = vst.msk [vmem:[#allocation2 + $0x138] sm:$0x1] %vm2173_vm11, %v5937_v47  ;;  %2188 = vst.msk [vmem:[#allocation2 + $0x150] sm:$0x1] %vm2173_vm11, %v5937_v47  ;;  %v2308_v11 = vld [vmem:[#allocation2 + $0xa] sm:$0xff] }
 0x190   : > { %2189 = vst.msk [vmem:[#allocation2 + $0x168] sm:$0x1] %vm2173_vm11, %v5937_v47  ;;  %2190 = vst.msk [vmem:[#allocation2 + $0x180] sm:$0x1] %vm2173_vm11, %v5937_v47  ;;  %5274 = vrot.lane.b32.xlu0 %v5273_v19, %s5930_s28  ;;  %v5278_v60 = vpack.i.bf16 %v2308_v11, %v2307_v56 }
 0x191   : > { %2191 = vst.msk [vmem:[#allocation2 + $0x198] sm:$0x1] %vm2173_vm11, %v5937_v47  ;;  %2193 = vst.msk [vmem:[#allocation2 + $0x29] sm:$0x1] %vm2173_vm11, %v5937_v47 }
 0x192   : > { %2194 = vst.msk [vmem:[#allocation2 + $0x41] sm:$0x1] %vm2173_vm11, %v5937_v47  ;;  %2195 = vst.msk [vmem:[#allocation2 + $0x59] sm:$0x1] %vm2173_vm11, %v5937_v47 }
 0x193   : > { %2196 = vst.msk [vmem:[#allocation2 + $0x71] sm:$0x1] %vm2173_vm11, %v5937_v47  ;;  %2197 = vst.msk [vmem:[#allocation2 + $0x89] sm:$0x1] %vm2173_vm11, %v5937_v47 }
 0x194   : > { %2198 = vst.msk [vmem:[#allocation2 + $0xa1] sm:$0x1] %vm2173_vm11, %v5937_v47  ;;  %2199 = vst.msk [vmem:[#allocation2 + $0xb9] sm:$0x1] %vm2173_vm11, %v5937_v47  ;;  %5279 = vrot.lane.b32.xlu0 %v5278_v60, %s5932_s30 }
 0x195   : > { %2200 = vst.msk [vmem:[#allocation2 + $0xd1] sm:$0x1] %vm2173_vm11, %v5937_v47  ;;  %2201 = vst.msk [vmem:[#allocation2 + $0xe9] sm:$0x1] %vm2173_vm11, %v5937_v47 }
 0x196   : > { %2202 = vst.msk [vmem:[#allocation2 + $0x101] sm:$0x1] %vm2173_vm11, %v5937_v47  ;;  %2203 = vst.msk [vmem:[#allocation2 + $0x119] sm:$0x1] %vm2173_vm11, %v5937_v47 }
 0x197   : > { %2204 = vst.msk [vmem:[#allocation2 + $0x131] sm:$0x1] %vm2173_vm11, %v5937_v47  ;;  %2205 = vst.msk [vmem:[#allocation2 + $0x149] sm:$0x1] %vm2173_vm11, %v5937_v47 }
 0x198   : > { %2206 = vst.msk [vmem:[#allocation2 + $0x161] sm:$0x1] %vm2173_vm11, %v5937_v47  ;;  %2207 = vst.msk [vmem:[#allocation2 + $0x179] sm:$0x1] %vm2173_vm11, %v5937_v47 }
 0x199   : > { %2208 = vst.msk [vmem:[#allocation2 + $0x191] sm:$0x1] %vm2173_vm11, %v5937_v47  ;;  %2209 = vst.msk [vmem:[#allocation2 + $0x1a9] sm:$0x1] %vm2173_vm11, %v5937_v47 }
 0x227   : > { %v4537_v37 = vpop.f32.mrb[0].mxu0 }
 0x228   : > { %v1983_v42 = vadd.f32 %v4537_v37, %v7690_v22  ;;  %v1974_v29 = vpop.f32.mrb[1].mxu0 }
 0x229   : > { %v1975_v57 = vadd.f32 %v7690_v22, %v1974_v29  ;;  %v4538_v34 = vpop.f32.mrb[2].mxu0 }
 0x22a   : > { %v2103_v48 = vmax.f32 %v1983_v42, 0.0  ;;  %v1986_v33 = vadd.f32 %v4538_v34, %v7690_v22  ;;  %v1977_v0 = vpop.f32.mrb[3].mxu0 }
 0x22b   : > { %v2101_v45 = vmax.f32 %v1975_v57, 0.0  ;;  %v1978_v16 = vadd.f32 %v7690_v22, %v1977_v0 }
 0x22c   : > { %2135 = vst.msk [vmem:[%s7699_s24 + $0x10] sm:$0xff] %vm1613_vm2, %v2103_v48  ;;  %2213 = vst.msk [vmem:[#allocation2 + $0x31] sm:$0xff] %vm1613_vm2, %v2103_v48  ;;  %v2104_v8 = vmax.f32 %v1986_v33, 0.0 }
 0x22d   : > { %2133 = vst.msk [vmem:[%s7699_s24] sm:$0xff] %vm1613_vm2, %v2101_v45  ;;  %2211 = vst.msk [vmem:[#allocation2 + $0x19] sm:$0xff] %vm1613_vm2, %v2101_v45  ;;  %v2102_v10 = vmax.f32 %v1978_v16, 0.0 }
 0x22e   : > { %2136 = vst.msk [vmem:[%s7699_s24 + $0x18] sm:$0xff] %vm1613_vm2, %v2104_v8  ;;  %2214 = vst.msk [vmem:[#allocation2 + $0x39] sm:$0xff] %vm1613_vm2, %v2104_v8 }
 0x22f   : > { %2134 = vst.msk [vmem:[%s7699_s24 + $0x8] sm:$0xff] %vm1613_vm2, %v2102_v10  ;;  %2212 = vst.msk [vmem:[#allocation2 + $0x21] sm:$0xff] %vm1613_vm2, %v2102_v10  ;;  %v4541_v18 = vpop.f32.mrb[4].mxu0 }
 0x230   : > { %v1999_v61 = vadd.f32 %v4541_v18, %v7690_v22  ;;  %v1990_v15 = vpop.f32.mrb[5].mxu0 }
 0x231   : > { %v1991_v3 = vadd.f32 %v7690_v22, %v1990_v15  ;;  %v4542_v63 = vpop.f32.mrb[6].mxu0 }
 0x232   : > { %v2107_v53 = vmax.f32 %v1999_v61, 0.0  ;;  %v2002_v2 = vadd.f32 %v4542_v63, %v7690_v22  ;;  %v1993_v52 = vpop.f32.mrb[7].mxu0 }
 0x233   : > { %v2105_v20 = vmax.f32 %v1991_v3, 0.0  ;;  %v1994_v21 = vadd.f32 %v7690_v22, %v1993_v52  ;;  %v7723_v23 = vld [vmem:[#allocation2 + $0x30] sm:$0xff] }
 0x234   : > { %2139 = vst.msk [vmem:[%s7699_s24 + $0x30] sm:$0xff] %vm1613_vm2, %v2107_v53  ;;  %2217 = vst.msk [vmem:[#allocation2 + $0x61] sm:$0xff] %vm1613_vm2, %v2107_v53  ;;  %v2108_v55 = vmax.f32 %v2002_v2, 0.0  ;;  %v2279_v51 = vld [vmem:[#allocation2 + $0x31] sm:$0xff]  ;;  %v2277_v56 = vld [vmem:[#allocation2 + $0x19] sm:$0xff] }
 0x235   : > { %2137 = vst.msk [vmem:[%s7699_s24 + $0x20] sm:$0xff] %vm1613_vm2, %v2105_v20  ;;  %2215 = vst.msk [vmem:[#allocation2 + $0x49] sm:$0xff] %vm1613_vm2, %v2105_v20  ;;  %v2106_v35 = vmax.f32 %v1994_v21, 0.0  ;;  %v7728_v31 = vld [vmem:[#allocation2 + $0x38] sm:$0xff]  ;;  %v5916_v2 = vld [vmem:[%s8779_s3] sm:$0xff]  }
 0x236   : > { %v2280_v6 = vld [vmem:[#allocation2 + $0x39] sm:$0xff]  ;;  %2140 = vst.msk [vmem:[%s7699_s24 + $0x38] sm:$0xff] %vm1613_vm2, %v2108_v55  ;;  %2218 = vst.msk [vmem:[#allocation2 + $0x69] sm:$0xff] %vm1613_vm2, %v2108_v55  ;;  %v5293_v17 = vpack.i.bf16 %v7728_v31, %v7723_v23  ;;  %v2278_v47 = vld [vmem:[#allocation2 + $0x21] sm:$0xff]  ;;  %4567 = vmatprep.subr.bf16.mxu1 %v5916_v2 }
 0x237   : > { %v5283_v25 = vpack.i.bf16 %v2280_v6, %v2279_v51  ;;  %2138 = vst.msk [vmem:[%s7699_s24 + $0x28] sm:$0xff] %vm1613_vm2, %v2106_v35  ;;  %2216 = vst.msk [vmem:[#allocation2 + $0x51] sm:$0xff] %vm1613_vm2, %v2106_v35  ;;  %v4545_v9 = vpop.f32.mrb[8].mxu0  ;;  %v2311_v28 = vld [vmem:[#allocation2 + $0x32] sm:$0xff]  ;;  %v2312_v7 = vld [vmem:[#allocation2 + $0x3a] sm:$0xff]  ;;  %v5323_v60 = vpack.i.bf16 %v2278_v47, %v2277_v56  ;;  %4568 = vmatpush3.bf16.msra.mxu1 %v5916_v2 }
 0x238   : > { %v2015_v1 = vadd.f32 %v4545_v9, %v7690_v22  ;;  %5294 = vrot.lane.b32.xlu1 %v5293_v17, %s5934_s8  ;;  %v2006_v62 = vpop.f32.mrb[9].mxu0  ;;  %v5288_v30 = vpack.i.bf16 %v2312_v7, %v2311_v28  ;;  %v7764_v32 = vld [vmem:[#allocation2 + $0x20] sm:$0xff]  ;;  %v7774_v19 = vld [vmem:[#allocation2 + $0x18] sm:$0xff]  ;;  %v5917_v35 = vld [vmem:[%s8779_s3 + $0x8] sm:$0xff]  }
 0x239   : > { %5284 = vrot.lane.b32.xlu0 %v5283_v25, %s5930_s28  ;;  %v2007_v26 = vadd.f32 %v7690_v22, %v2006_v62  ;;  %v4546_v5 = vpop.f32.mrb[10].mxu0  ;;  %v5333_v11 = vpack.i.bf16 %v7764_v32, %v7774_v19  ;;  %v2309_v29 = vld [vmem:[#allocation2 + $0x1a] sm:$0xff]  ;;  %v2310_v57 = vld [vmem:[#allocation2 + $0x22] sm:$0xff]  ;;  %4569 = vmatprep.subr.bf16.mxu1 %v5917_v35 }
 0x23a   : > { %v2111_v14 = vmax.f32 %v2015_v1, 0.0  ;;  %v2018_v13 = vadd.f32 %v4546_v5, %v7690_v22  ;;  %v2009_v38 = vpop.f32.mrb[11].mxu0  ;;  %v5328_v61 = vpack.i.bf16 %v2310_v57, %v2309_v29 }
 0x23b   : > { %v2109_v4 = vmax.f32 %v2007_v26, 0.0  ;;  %v2010_v54 = vadd.f32 %v7690_v22, %v2009_v38  ;;  %v2283_v45 = vld [vmem:[#allocation2 + $0x61] sm:$0xff]  ;;  %4570 = vmatpush3.bf16.msra.mxu1 %v5917_v35 }
 0x23c   : > { %2143 = vst.msk [vmem:[%s7699_s24 + $0x50] sm:$0xff] %vm1613_vm2, %v2111_v14  ;;  %2221 = vst.msk [vmem:[#allocation2 + $0x91] sm:$0xff] %vm1613_vm2, %v2111_v14  ;;  %v2112_v27 = vmax.f32 %v2018_v13, 0.0  ;;  %5309 = vrot.lane.b32.xlu1 %v5293_v17, %s5938_s25  ;;  %v5918_v14 = vld [vmem:[%s8779_s3 + $0x10] sm:$0xff]   ;;  %v7836_v38 = vld [vmem:[#allocation2 + $0x60] sm:$0xff] }
 0x23d   : > { %5289 = vrot.lane.b32.xlu0 %v5288_v30, %s5932_s30  ;;  %2141 = vst.msk [vmem:[%s7699_s24 + $0x40] sm:$0xff] %vm1613_vm2, %v2109_v4  ;;  %2219 = vst.msk [vmem:[#allocation2 + $0x79] sm:$0xff] %vm1613_vm2, %v2109_v4  ;;  %v2110_v24 = vmax.f32 %v2010_v54, 0.0  ;;  %v2284_v42 = vld [vmem:[#allocation2 + $0x69] sm:$0xff]  ;;  %4571 = vmatprep.subr.bf16.mxu1 %v5918_v14 }
 0x23e   : > { %2144 = vst.msk [vmem:[%s7699_s24 + $0x58] sm:$0xff] %vm1613_vm2, %v2112_v27  ;;  %2222 = vst.msk [vmem:[#allocation2 + $0x99] sm:$0xff] %vm1613_vm2, %v2112_v27  ;;  %v7789_v18 = vpack.i.bf16 %v2284_v42, %v2283_v45  ;;  %v2315_v63 = vld [vmem:[#allocation2 + $0x62] sm:$0xff]  ;;  %v2316_v53 = vld [vmem:[#allocation2 + $0x6a] sm:$0xff] }
 0x23f   : > { %2142 = vst.msk [vmem:[%s7699_s24 + $0x48] sm:$0xff] %vm1613_vm2, %v2110_v24  ;;  %2220 = vst.msk [vmem:[#allocation2 + $0x81] sm:$0xff] %vm1613_vm2, %v2110_v24  ;;  %v4549_v50 = vpop.f32.mrb[12].mxu0  ;;  %v7807_v21 = vpack.i.bf16 %v2316_v53, %v2315_v63  ;;  %v7822_v26 = vld [vmem:[#allocation2 + $0x68] sm:$0xff]  ;;  %v7846_v54 = vld [vmem:[#allocation2 + $0x50] sm:$0xff]  ;;  %4572 = vmatpush3.bf16.msra.mxu1 %v5918_v14 }
 0x240   : > { %v2031_v59 = vadd.f32 %v4549_v50, %v7690_v22  ;;  %5314 = vrot.lane.b32.xlu1 %v5283_v25, %s5939_s26  ;;  %v2022_v36 = vpop.f32.mrb[13].mxu0  ;;  %v5919_v50 = vld [vmem:[%s8779_s3 + $0x18] sm:$0xff]  }
 0x241   : > { %5299 = vrot.lane.b32.xlu0 %v5283_v25, %s5936_s16  ;;  %v2023_v12 = vadd.f32 %v7690_v22, %v2022_v36  ;;  %v4550_v49 = vpop.f32.mrb[14].mxu0  ;;  %4573 = vmatprep.subr.bf16.mxu1 %v5919_v50 }
 0x242   : > { %v2115_v43 = vmax.f32 %v2031_v59, 0.0  ;;  %v2034_v40 = vadd.f32 %v4550_v49, %v7690_v22  ;;  %v2025_v41 = vpop.f32.mrb[15].mxu0 }
 0x243   : > { %v2113_v44 = vmax.f32 %v2023_v12, 0.0  ;;  %v2026_v46 = vadd.f32 %v7690_v22, %v2025_v41  ;;  %v7856_v12 = vld [vmem:[#allocation2 + $0x48] sm:$0xff]  ;;  %4574 = vmatpush3.bf16.msra.mxu1 %v5919_v50  ;;  %v2287_v63 = vld [vmem:[#allocation2 + $0x91] sm:$0xff] }
 0x244   : > { %2147 = vst.msk [vmem:[%s7699_s24 + $0x70] sm:$0xff] %vm1613_vm2, %v2115_v43  ;;  %2225 = vst.msk [vmem:[#allocation2 + $0xc1] sm:$0xff] %vm1613_vm2, %v2115_v43  ;;  %v2116_v58 = vmax.f32 %v2034_v40, 0.0  ;;  %5319 = vrot.lane.b32.xlu1 %v5288_v30, %s5940_s27  ;;  %v5398_v41 = vpack.i.bf16 %v7846_v54, %v7856_v12 }
 0x245   : > { %5304 = vrot.lane.b32.xlu0 %v5288_v30, %s5941_s29  ;;  %2145 = vst.msk [vmem:[%s7699_s24 + $0x60] sm:$0xff] %vm1613_vm2, %v2113_v44  ;;  %2223 = vst.msk [vmem:[#allocation2 + $0xa9] sm:$0xff] %vm1613_vm2, %v2113_v44  ;;  %v2114_v39 = vmax.f32 %v2026_v46, 0.0  ;;  %v5358_v30 = vpack.i.bf16 %v7822_v26, %v7836_v38  ;;  %v2319_v2 = vld [vmem:[#allocation2 + $0x92] sm:$0xff] }
 0x246   : > { %2148 = vst.msk [vmem:[%s7699_s24 + $0x78] sm:$0xff] %vm1613_vm2, %v2116_v58  ;;  %2226 = vst.msk [vmem:[#allocation2 + $0xc9] sm:$0xff] %vm1613_vm2, %v2116_v58  ;;  %v5920_v58 = vld [vmem:[%s8779_s3 + $0x20] ss:$0 sps:$4 sm:$0xff]  }
 0x247   : > { %2146 = vst.msk [vmem:[%s7699_s24 + $0x68] sm:$0xff] %vm1613_vm2, %v2114_v39  ;;  %2224 = vst.msk [vmem:[#allocation2 + $0xb1] sm:$0xff] %vm1613_vm2, %v2114_v39  ;;  %v4553_v37 = vpop.f32.mrb[16].mxu0  ;;  %4610 = vmatprep.subr.msk.bf16.mxu1 %vm3924_vm12, %v5920_v58  ;;  %v3926_v56 = vsel %vm3924_vm12, %v5920_v58, 0 }
 0x248   : > { %v2047_v34 = vadd.f32 %v4553_v37, %v7690_v22  ;;  %v2038_v48 = vpop.f32.mrb[17].mxu0  ;;  %5324 = vrot.lane.b32.xlu1 %v5323_v60, %s5930_s28  ;;  %4576 = vmatpush3.bf16.msra.mxu1 %v3926_v56 }
 0x249   : > { %5334 = vrot.lane.b32.xlu0 %v5333_v11, %s5934_s8  ;;  %v2039_v33 = vadd.f32 %v7690_v22, %v2038_v48  ;;  %v4554_v0 = vpop.f32.mrb[18].mxu0 }
 0x24a   : > { %v2119_v16 = vmax.f32 %v2047_v34, 0.0  ;;  %v2050_v8 = vadd.f32 %v4554_v0, %v7690_v22  ;;  %v2041_v10 = vpop.f32.mrb[19].mxu0  ;;  %v2470_v34 = vld [vmem:[#allocation2 + $0x49] sm:$0xff] }
 0x24b   : > { %v2117_v15 = vmax.f32 %v2039_v33, 0.0  ;;  %v2042_v3 = vadd.f32 %v7690_v22, %v2041_v10  ;;  %v2502_v10 = vld [vmem:[#allocation2 + $0x4a] sm:$0xff]  ;;  %v2291_v14 = vld [vmem:[#allocation2 + $0xc1] sm:$0xff] }
 0x24c   : > { %2151 = vst.msk [vmem:[%s7699_s24 + $0x90] sm:$0xff] %vm1613_vm2, %v2119_v16  ;;  %2229 = vst.msk [vmem:[#allocation2 + $0xf1] sm:$0xff] %vm1613_vm2, %v2119_v16  ;;  %v2120_v52 = vmax.f32 %v2050_v8, 0.0  ;;  %5329 = vrot.lane.b32.xlu1 %v5328_v61, %s5932_s30  ;;  %v7946_v50 = vld [vmem:[#allocation2 + $0xc0] sm:$0xff] }
 0x24d   : > { %5349 = vrot.lane.b32.xlu0 %v7789_v18, %s5930_s28  ;;  %2149 = vst.msk [vmem:[%s7699_s24 + $0x80] sm:$0xff] %vm1613_vm2, %v2117_v15  ;;  %2227 = vst.msk [vmem:[#allocation2 + $0xd9] sm:$0xff] %vm1613_vm2, %v2117_v15  ;;  %v2118_v20 = vmax.f32 %v2042_v3, 0.0  ;;  %v2288_v3 = vld [vmem:[#allocation2 + $0x99] sm:$0xff] }
 0x24e   : > { %2152 = vst.msk [vmem:[%s7699_s24 + $0x98] sm:$0xff] %vm1613_vm2, %v2120_v52  ;;  %2230 = vst.msk [vmem:[#allocation2 + $0xf9] sm:$0xff] %vm1613_vm2, %v2120_v52  ;;  %v5428_v53 = vpack.i.bf16 %v2288_v3, %v2287_v63  ;;  %v2320_v52 = vld [vmem:[#allocation2 + $0x9a] sm:$0xff]  ;;  %v2322_v58 = vld [vmem:[#allocation2 + $0xb2] sm:$0xff] }
 0x24f   : > { %2150 = vst.msk [vmem:[%s7699_s24 + $0x88] sm:$0xff] %vm1613_vm2, %v2118_v20  ;;  %2228 = vst.msk [vmem:[#allocation2 + $0xe1] sm:$0xff] %vm1613_vm2, %v2118_v20  ;;  %v4557_v55 = vpop.f32.mrb[20].mxu0  ;;  %v5433_v20 = vpack.i.bf16 %v2320_v52, %v2319_v2 }
 0x250   : > { %v2063_v51 = vadd.f32 %v4557_v55, %v7690_v22  ;;  %v2054_v6 = vpop.f32.mrb[21].mxu0  ;;  %5339 = vrot.lane.b32.xlu1 %v5323_v60, %s5936_s16  ;;  %v2471_v60 = vld [vmem:[#allocation2 + $0x51] sm:$0xff] }
 0x251   : > { %5354 = vrot.lane.b32.xlu0 %v7807_v21, %s5932_s30  ;;  %v2055_v17 = vadd.f32 %v7690_v22, %v2054_v6  ;;  %v4558_v25 = vpop.f32.mrb[22].mxu0  ;;  %v5408_v45 = vpack.i.bf16 %v2471_v60, %v2470_v34  ;;  %v7911_v55 = vld [vmem:[#allocation2 + $0x90] sm:$0xff]  ;;  %v7919_v6 = vld [vmem:[#allocation2 + $0x78] sm:$0xff] }
 0x252   : > { %v2123_v9 = vmax.f32 %v2063_v51, 0.0  ;;  %v2066_v28 = vadd.f32 %v4558_v25, %v7690_v22  ;;  %v2057_v7 = vpop.f32.mrb[23].mxu0  ;;  %v7915_v51 = vld [vmem:[#allocation2 + $0x80] sm:$0xff] }
 0x253   : > { %v2121_v1 = vmax.f32 %v2055_v17, 0.0  ;;  %v2058_v62 = vadd.f32 %v7690_v22, %v2057_v7  ;;  %v5478_v17 = vpack.i.bf16 %v7915_v51, %v7919_v6  ;;  %v2475_v25 = vld [vmem:[#allocation2 + $0x81] sm:$0xff]  ;;  %v2295_v60 = vld [vmem:[#allocation2 + $0xf1] sm:$0xff] }
 0x254   : > { %2155 = vst.msk [vmem:[%s7699_s24 + $0xb0] sm:$0xff] %vm1613_vm2, %v2123_v9  ;;  %2233 = vst.msk [vmem:[#allocation2 + $0x121] sm:$0xff] %vm1613_vm2, %v2123_v9  ;;  %v2124_v5 = vmax.f32 %v2066_v28, 0.0  ;;  %5344 = vrot.lane.b32.xlu1 %v5328_v61, %s5941_s29  ;;  %v2503_v61 = vld [vmem:[#allocation2 + $0x52] sm:$0xff]  ;;  %v2506_v7 = vld [vmem:[#allocation2 + $0x7a] sm:$0xff] }
 0x255   : > { %5364 = vrot.lane.b32.xlu0 %v7789_v18, %s5936_s16  ;;  %2153 = vst.msk [vmem:[%s7699_s24 + $0xa0] sm:$0xff] %vm1613_vm2, %v2121_v1  ;;  %2231 = vst.msk [vmem:[#allocation2 + $0x109] sm:$0xff] %vm1613_vm2, %v2121_v1  ;;  %v2122_v13 = vmax.f32 %v2058_v62, 0.0  ;;  %v2474_v9 = vld [vmem:[#allocation2 + $0x79] sm:$0xff]  ;;  %v2507_v1 = vld [vmem:[#allocation2 + $0x82] sm:$0xff] }
 0x256   : > { %2156 = vst.msk [vmem:[%s7699_s24 + $0xb8] sm:$0xff] %vm1613_vm2, %v2124_v5  ;;  %2234 = vst.msk [vmem:[#allocation2 + $0x129] sm:$0xff] %vm1613_vm2, %v2124_v5  ;;  %v5488_v28 = vpack.i.bf16 %v2475_v25, %v2474_v9  ;;  %v5493_v62 = vpack.i.bf16 %v2507_v1, %v2506_v7  ;;  %v2292_v5 = vld [vmem:[#allocation2 + $0xc9] sm:$0xff]  ;;  %v2328_v34 = vld [vmem:[#allocation2 + $0xfa] sm:$0xff] }
 0x257   : > { %2154 = vst.msk [vmem:[%s7699_s24 + $0xa8] sm:$0xff] %vm1613_vm2, %v2122_v13  ;;  %2232 = vst.msk [vmem:[#allocation2 + $0x111] sm:$0xff] %vm1613_vm2, %v2122_v13  ;;  %v4561_v4 = vpop.f32.mrb[24].mxu0  ;;  %v7931_v13 = vpack.i.bf16 %v2292_v5, %v2291_v14  ;;  %v2325_v52 = vld [vmem:[#allocation2 + $0xda] sm:$0xff] }
 0x258   : > { %v2079_v27 = vadd.f32 %v4561_v4, %v7690_v22  ;;  %v2070_v24 = vpop.f32.mrb[25].mxu0  ;;  %5359 = vrot.lane.b32.xlu1 %v5358_v30, %s5934_s8  ;;  %v2324_v4 = vld [vmem:[#allocation2 + $0xca] sm:$0xff] }
 0x259   : > { %5369 = vrot.lane.b32.xlu0 %v7807_v21, %s5941_s29  ;;  %v2071_v59 = vadd.f32 %v7690_v22, %v2070_v24  ;;  %v4562_v36 = vpop.f32.mrb[26].mxu0  ;;  %v7941_v24 = vld [vmem:[#allocation2 + $0xc8] sm:$0xff] }
 0x25a   : > { %v2127_v49 = vmax.f32 %v2079_v27, 0.0  ;;  %v2082_v43 = vadd.f32 %v4562_v36, %v7690_v22  ;;  %v2073_v40 = vpop.f32.mrb[27].mxu0  ;;  %v2352_v36 = vld [vmem:[#allocation2 + $0xb0] sm:$0xff] }
 0x25b   : > { %v2125_v44 = vmax.f32 %v2071_v59, 0.0  ;;  %v2074_v46 = vadd.f32 %v7690_v22, %v2073_v40  ;;  %v5518_v59 = vpack.i.bf16 %v7941_v24, %v7946_v50  ;;  %v2290_v40 = vld [vmem:[#allocation2 + $0xb1] sm:$0xff] }
 0x25c   : > { %2159 = vst.msk [vmem:[%s7699_s24 + $0xd0] sm:$0xff] %vm1613_vm2, %v2127_v49  ;;  %2237 = vst.msk [vmem:[#allocation2 + $0x151] sm:$0xff] %vm1613_vm2, %v2127_v49  ;;  %v2128_v47 = vmax.f32 %v2082_v43, 0.0  ;;  %5374 = vrot.lane.b32.xlu1 %v5358_v30, %s5938_s25  ;;  %v2323_v30 = vld [vmem:[#allocation2 + $0xc2] sm:$0xff] }
 0x25d   : > { %5399 = vrot.lane.b32.xlu0 %v5398_v41, %s5934_s8  ;;  %2157 = vst.msk [vmem:[%s7699_s24 + $0xc0] sm:$0xff] %vm1613_vm2, %v2125_v44  ;;  %2235 = vst.msk [vmem:[#allocation2 + $0x139] sm:$0xff] %vm1613_vm2, %v2125_v44  ;;  %v2126_v39 = vmax.f32 %v2074_v46, 0.0  ;;  %v7936_v27 = vpack.i.bf16 %v2324_v4, %v2323_v30  ;;  %v2351_v49 = vld [vmem:[#allocation2 + $0xa8] sm:$0xff]  ;;  %v7955_v46 = vpop.permute.xlu0 %5274 }
 0x25e   : > { %2160 = vst.msk [vmem:[%s7699_s24 + $0xd8] sm:$0xff] %vm1613_vm2, %v2128_v47  ;;  %2238 = vst.msk [vmem:[#allocation2 + $0x159] sm:$0xff] %vm1613_vm2, %v2128_v47  ;;  %v5548_v43 = vpack.i.bf16 %v2352_v36, %v2351_v49  ;;  %v2321_v47 = vld [vmem:[#allocation2 + $0xaa] sm:$0xff]  ;;  %v2331_v7 = vld [vmem:[#allocation2 + $0x122] sm:$0xff] }
 0x25f   : > { %2158 = vst.msk [vmem:[%s7699_s24 + $0xc8] sm:$0xff] %vm1613_vm2, %v2126_v39  ;;  %2236 = vst.msk [vmem:[#allocation2 + $0x141] sm:$0xff] %vm1613_vm2, %v2126_v39  ;;  %v4565_v11 = vpop.f32.mrb[28].mxu0  ;;  %v5543_v39 = vpack.i.bf16 %v2322_v58, %v2321_v47  ;;  %v2300_v2 = vld [vmem:[#allocation2 + $0x129] sm:$0xff] }
 0x260   : > { %v2095_v37 = vadd.f32 %v4565_v11, %v7690_v22  ;;  %v2086_v42 = vpop.f32.mrb[29].mxu0  ;;  %5379 = vrot.lane.b32.xlu1 %v7789_v18, %s5939_s26  ;;  %v2296_v11 = vld [vmem:[#allocation2 + $0xf9] sm:$0xff]  ;;  %v2332_v1 = vld [vmem:[#allocation2 + $0x12a] sm:$0xff] }
 0x261   : > { %5404 = vrot.lane.b32.xlu0 %v5398_v41, %s5938_s25  ;;  %v2087_v29 = vadd.f32 %v7690_v22, %v2086_v42  ;;  %v4566_v57 = vpop.f32.mrb[30].mxu0  ;;  %v2289_v41 = vld [vmem:[#allocation2 + $0xa9] sm:$0xff]  ;;  %v7961_v56 = vpop.permute.xlu0 %5279  ;;  %v8012_v4 = vpack.i.bf16 %v2332_v1, %v2331_v7 }
 0x262   : > { %v2131_v48 = vmax.f32 %v2095_v37, 0.0  ;;  %v2098_v33 = vadd.f32 %v4566_v57, %v7690_v22  ;;  %v2089_v0 = vpop.f32.mrb[31].mxu0  ;;  %v5538_v44 = vpack.i.bf16 %v2290_v40, %v2289_v41  ;;  %v2327_v57 = vld [vmem:[#allocation2 + $0xf2] sm:$0xff]  ;;  %v2297_v5 = vld [vmem:[#allocation2 + $0x109] sm:$0xff]  ;;  %v5277_v41 = vunpack.i.h.bf16 %v7955_v46 }
 0x263   : > { %v2129_v16 = vmax.f32 %v2087_v29, 0.0  ;;  %v2090_v8 = vadd.f32 %v7690_v22, %v2089_v0  ;;  %v5413_v22 = vpack.i.bf16 %v2503_v61, %v2502_v10  ;;  %v7969_v29 = vpack.i.bf16 %v2296_v11, %v2295_v60  ;;  %v2356_v10 = vld [vmem:[#allocation2 + $0xe0] sm:$0xff]  ;;  %v2360_v36 = vld [vmem:[#allocation2 + $0x110] sm:$0xff]  ;;  %v2359_v40 = vld [vmem:[#allocation2 + $0x108] sm:$0xff] }
 0x264   : > { %2163 = vst.msk [vmem:[%s7699_s24 + $0xf0] sm:$0xff] %vm1613_vm2, %v2131_v48  ;;  %2241 = vst.msk [vmem:[#allocation2 + $0x181] sm:$0xff] %vm1613_vm2, %v2131_v48  ;;  %v2132_v18 = vmax.f32 %v2098_v33, 0.0  ;;  %5384 = vrot.lane.b32.xlu1 %v7807_v21, %s5940_s27  ;;  %v7907_v21 = vld [vmem:[#allocation2 + $0x98] sm:$0xff]  ;;  %v2357_v33 = vld [vmem:[#allocation2 + $0xf0] sm:$0xff] }
 0x265   : > { %5409 = vrot.lane.b32.xlu0 %v5408_v45, %s5939_s26  ;;  %2161 = vst.msk [vmem:[%s7699_s24 + $0xe0] sm:$0xff] %vm1613_vm2, %v2129_v16  ;;  %2239 = vst.msk [vmem:[#allocation2 + $0x169] sm:$0xff] %vm1613_vm2, %v2129_v16  ;;  %v2130_v15 = vmax.f32 %v2090_v8, 0.0  ;;  %v5438_v35 = vpack.i.bf16 %v7907_v21, %v7911_v55  ;;  %v2358_v48 = vld [vmem:[#allocation2 + $0xf8] sm:$0xff]  ;;  %v7978_v16 = vpack.i.bf16 %v2328_v34, %v2327_v57  ;;  %v2294_v61 = vld [vmem:[#allocation2 + $0xe1] sm:$0xff] }
 0x266   : > { %2164 = vst.msk [vmem:[%s7699_s24 + $0xf8] sm:$0xff] %vm1613_vm2, %v2132_v18  ;;  %2242 = vst.msk [vmem:[#allocation2 + $0x189] sm:$0xff] %vm1613_vm2, %v2132_v18  ;;  %v7980_v8 = vpack.i.bf16 %v2358_v48, %v2357_v33  ;;  %v2355_v18 = vld [vmem:[#allocation2 + $0xd8] sm:$0xff]  ;;  %v2329_v49 = vld [vmem:[#allocation2 + $0x10a] sm:$0xff]  ;;  %v5282_v48 = vunpack.i.h.bf16 %v7961_v56 }
 0x267   : > { %2162 = vst.msk [vmem:[%s7699_s24 + $0xe8] sm:$0xff] %vm1613_vm2, %v2130_v15  ;;  %2240 = vst.msk [vmem:[#allocation2 + $0x171] sm:$0xff] %vm1613_vm2, %v2130_v15  ;;  %v2293_v15 = vld [vmem:[#allocation2 + $0xd9] sm:$0xff]  ;;  %v7990_v63 = vpack.i.bf16 %v2356_v10, %v2355_v18  ;;  %v2244_v57 = vld [vmem:[#allocation2 + $0x8] sm:$0xff] }
 0x268   : > { %5389 = vrot.lane.b32.xlu1 %v5408_v45, %s5930_s28  ;;  %v2243_v60 = vld [vmem:[#allocation2] sm:$0xff]  ;;  %v2303_v33 = vld [vmem:[#allocation2 + $0x151] sm:$0xff]  ;;  %v3557_v10 = vsel %vm1613_vm2, %v2244_v57, %v5277_v41 }
 0x269   : > { %5414 = vrot.lane.b32.xlu0 %v5413_v22, %s5940_s27  ;;  %v2304_v34 = vld [vmem:[#allocation2 + $0x159] sm:$0xff] }
 0x26a   : > { %v2336_v7 = vld [vmem:[#allocation2 + $0x15a] sm:$0xff] }
 0x26c   : > { %5394 = vrot.lane.b32.xlu1 %v5413_v22, %s5932_s30 }
 0x26d   : > { %5429 = vrot.lane.b32.xlu0 %v5428_v53, %s5930_s28 }
 0x270   : > { %5419 = vrot.lane.b32.xlu1 %v5408_v45, %s5936_s16 }
 0x271   : > { %5434 = vrot.lane.b32.xlu0 %v5433_v20, %s5932_s30 }
 0x274   : > { %5424 = vrot.lane.b32.xlu1 %v5413_v22, %s5941_s29 }
 0x275   : > { %5444 = vrot.lane.b32.xlu0 %v5428_v53, %s5936_s16 }
 0x278   : > { %5439 = vrot.lane.b32.xlu1 %v5438_v35, %s5934_s8 }
 0x279   : > { %5449 = vrot.lane.b32.xlu0 %v5433_v20, %s5941_s29 }
 0x27c   : > { %5454 = vrot.lane.b32.xlu1 %v5438_v35, %s5938_s25  ;;  %v2299_v35 = vld [vmem:[#allocation2 + $0x121] sm:$0xff] }
 0x27d   : > { %5479 = vrot.lane.b32.xlu0 %v5478_v17, %s5934_s8  ;;  %v8002_v9 = vpack.i.bf16 %v2300_v2, %v2299_v35  ;;  %v8040_v2 = vpack.i.bf16 %v2304_v34, %v2303_v33  ;;  %v2335_v35 = vld [vmem:[#allocation2 + $0x152] sm:$0xff] }
 0x280   : > { %5459 = vrot.lane.b32.xlu1 %v5428_v53, %s5939_s26  ;;  %v7992_v53 = vpack.i.bf16 %v2294_v61, %v2293_v15 }
 0x281   : > { %5484 = vrot.lane.b32.xlu0 %v5478_v17, %s5938_s25 }
 0x284   : > { %5464 = vrot.lane.b32.xlu1 %v5433_v20, %s5940_s27  ;;  %v2326_v20 = vld [vmem:[#allocation2 + $0xe2] sm:$0xff] }
 0x285   : > { %5489 = vrot.lane.b32.xlu0 %v5488_v28, %s5939_s26 }
 0x288   : > { %5469 = vrot.lane.b32.xlu1 %v5488_v28, %s5930_s28 }
 0x289   : > { %5494 = vrot.lane.b32.xlu0 %v5493_v62, %s5940_s27 }
 0x28c   : > { %5474 = vrot.lane.b32.xlu1 %v5493_v62, %s5932_s30 }
 0x28d   : > { %5509 = vrot.lane.b32.xlu0 %v7931_v13, %s5930_s28 }
 0x290   : > { %5499 = vrot.lane.b32.xlu1 %v5488_v28, %s5936_s16  ;;  %v8004_v28 = vpack.i.bf16 %v2326_v20, %v2325_v52 }
 0x291   : > { %5514 = vrot.lane.b32.xlu0 %v7936_v27, %s5932_s30 }
 0x294   : > { %5504 = vrot.lane.b32.xlu1 %v5493_v62, %s5941_s29  ;;  %v2298_v62 = vld [vmem:[#allocation2 + $0x111] sm:$0xff] }
 0x295   : > { %5524 = vrot.lane.b32.xlu0 %v7931_v13, %s5936_s16 }
 0x298   : > { %5519 = vrot.lane.b32.xlu1 %v5518_v59, %s5934_s8 }
 0x299   : > { %5529 = vrot.lane.b32.xlu0 %v7936_v27, %s5941_s29 }
 0x29c   : > { %5534 = vrot.lane.b32.xlu1 %v5518_v59, %s5938_s25  ;;  %v8014_v59 = vpack.i.bf16 %v2298_v62, %v2297_v5  ;;  %v3589_v5 = vsel %vm1679_vm4, %v3557_v10, %v5282_v48 }
 0x29d   : > { %5549 = vrot.lane.b32.xlu0 %v5548_v43, %s5934_s8 }
 0x2a0   : > { %5539 = vrot.lane.b32.xlu1 %v5538_v44, %s5930_s28 }
 0x2a1   : > { %5554 = vrot.lane.b32.xlu0 %v5548_v43, %s5938_s25  ;;  %v2330_v43 = vld [vmem:[#allocation2 + $0x112] sm:$0xff] }
 0x2a2   : > { %v8028_v11 = vpack.i.bf16 %v2330_v43, %v2329_v49  ;;  %v8050_v43 = vpack.i.bf16 %v2336_v7, %v2335_v35 }
 0x2a4   : > { %5544 = vrot.lane.b32.xlu1 %v5543_v39, %s5932_s30 }
 0x2a5   : > { %5559 = vrot.lane.b32.xlu0 %v5538_v44, %s5939_s26 }
 0x2a8   : > { %5569 = vrot.lane.b32.xlu1 %v5538_v44, %s5936_s16  ;;  %v5276_v44 = vunpack.i.l.bf16 %v7955_v46  ;;  %v5281_v46 = vunpack.i.l.bf16 %v7961_v56 }
 0x2a9   : > { %5564 = vrot.lane.b32.xlu0 %v5543_v39, %s5940_s27 }
 0x2aa   : > { %v7965_v37 = vpop.permute.xlu1 %5294  ;;  %v3556_v61 = vsel %vm1613_vm2, %v2243_v60, %v5276_v44 }
 0x2ab   : > { %v7967_v42 = vpop.permute.xlu0 %5284  ;;  %v3588_v56 = vsel %vm1679_vm4, %v3556_v61, %v5281_v46  ;;  %v2301_v46 = vld [vmem:[#allocation2 + $0x139] sm:$0xff] }
 0x2ac   : > { %5574 = vrot.lane.b32.xlu1 %v5543_v39, %s5941_s29  ;;  %v8026_v39 = vpack.i.bf16 %v2360_v36, %v2359_v40 }
 0x2ad   : > { %5579 = vrot.lane.b32.xlu0 %v7969_v29, %s5930_s28 }
 0x2ae   : > { %v7974_v0 = vpop.permute.xlu1 %5309 }
 0x2af   : > { %v7976_v45 = vpop.permute.xlu0 %5289  ;;  %v5311_v57 = vunpack.i.l.bf16 %v7974_v0 }
 0x2b0   : > { %5589 = vrot.lane.b32.xlu1 %v7980_v8, %s5934_s8 }
 0x2b1   : > { %5584 = vrot.lane.b32.xlu0 %v7978_v16, %s5932_s30 }
 0x2b2   : > { %v7986_v22 = vpop.permute.xlu1 %5314 }
 0x2b3   : > { %v7988_v3 = vpop.permute.xlu0 %5299 }
 0x2b4   : > { %5594 = vrot.lane.b32.xlu1 %v7992_v53, %s5930_s28 }
 0x2b5   : > { %5604 = vrot.lane.b32.xlu0 %v7990_v63, %s5934_s8 }
 0x2b6   : > { %v7998_v17 = vpop.permute.xlu1 %5319 }
 0x2b7   : > { %v8000_v25 = vpop.permute.xlu0 %5304  ;;  %v5322_v7 = vunpack.i.h.bf16 %v7998_v17 }
 0x2b8   : > { %5599 = vrot.lane.b32.xlu1 %v8004_v28, %s5932_s30 }
 0x2b9   : > { %5609 = vrot.lane.b32.xlu0 %v8002_v9, %s5930_s28 }
 0x2ba   : > { %v8010_v30 = vpop.permute.xlu1 %5324 }
 0x2bb   : > { %v5335_v14 = vpop.permute.xlu0 %5334 }
 0x2bc   : > { %5619 = vrot.lane.b32.xlu1 %v8014_v59, %s5930_s28  ;;  %v5337_v52 = vunpack.i.h.bf16 %v5335_v14  ;;  %v5336_v20 = vunpack.i.l.bf16 %v5335_v14  ;;  %v2302_v14 = vld [vmem:[#allocation2 + $0x141] sm:$0xff] }
 0x2bd   : > { %5614 = vrot.lane.b32.xlu0 %v8012_v4, %s5932_s30  ;;  %v8064_v61 = vpack.i.bf16 %v2302_v14, %v2301_v46  ;;  %v2334_v14 = vld [vmem:[#allocation2 + $0x142] sm:$0xff] }
 0x2be   : > { %v8024_v58 = vpop.permute.xlu1 %5329  ;;  %v3621_v40 = vsel %vm1745_vm6, %v3589_v5, %v5337_v52  ;;  %v3620_v41 = vsel %vm1745_vm6, %v3588_v56, %v5336_v20  ;;  %v5326_v56 = vunpack.i.l.bf16 %v8010_v30 }
 0x2bf   : > { %v8022_v47 = vpop.permute.xlu0 %5349 }
 0x2c0   : > { %5624 = vrot.lane.b32.xlu1 %v8028_v11, %s5932_s30 }
 0x2c1   : > { %5629 = vrot.lane.b32.xlu0 %v8026_v39, %s5934_s8 }
 0x2c2   : > { %v5340_v15 = vpop.permute.xlu1 %5339 }
 0x2c3   : > { %v8038_v18 = vpop.permute.xlu0 %5354  ;;  %v5342_v1 = vunpack.i.h.bf16 %v5340_v15  ;;  %v5341_v62 = vunpack.i.l.bf16 %v5340_v15  ;;  %v5316_v15 = vunpack.i.l.bf16 %v7986_v22 }
 0x2c4   : > { %5649 = vrot.lane.b32.xlu1 %v7931_v13, %s5939_s26  ;;  %v5312_v13 = vunpack.i.h.bf16 %v7974_v0  ;;  %v5317_v0 = vunpack.i.h.bf16 %v7986_v22 }
 0x2c5   : > { %5634 = vrot.lane.b32.xlu0 %v8040_v2, %s5930_s28  ;;  %v3653_v34 = vsel %vm1811_vm8, %v3621_v40, %v5342_v1  ;;  %v3652_v48 = vsel %vm1811_vm8, %v3620_v41, %v5341_v62  ;;  %v5321_v1 = vunpack.i.l.bf16 %v7998_v17  ;;  %v5327_v62 = vunpack.i.h.bf16 %v8010_v30 }
 0x2c6   : > { %v5345_v49 = vpop.permute.xlu1 %5344  ;;  %v5332_v40 = vunpack.i.h.bf16 %v8024_v58  ;;  %v5331_v17 = vunpack.i.l.bf16 %v8024_v58  ;;  %v2306_v58 = vld [vmem:[#allocation2 + $0x171] sm:$0xff] }
 0x2c7   : > { %v8048_v36 = vpop.permute.xlu0 %5364  ;;  %v5347_v44 = vunpack.i.h.bf16 %v5345_v49  ;;  %v5346_v60 = vunpack.i.l.bf16 %v5345_v49  ;;  %v2333_v49 = vld [vmem:[#allocation2 + $0x13a] sm:$0xff] }
 0x2c8   : > { %5659 = vrot.lane.b32.xlu1 %v7936_v27, %s5940_s27 }
 0x2c9   : > { %5639 = vrot.lane.b32.xlu0 %v8050_v43, %s5932_s30  ;;  %v3685_v33 = vsel %vm3684_vm13, %v3652_v48, %v5346_v60  ;;  %v3686_v10 = vsel %vm3684_vm13, %v3653_v34, %v5347_v44  ;;  %v3559_v34 = vsel %vm1613_vm2, %v7764_v32, %v5327_v62  ;;  %v2305_v32 = vld [vmem:[#allocation2 + $0x169] sm:$0xff]  ;;  %v5302_v62 = vunpack.i.h.bf16 %v7988_v3 }
 0x2ca   : > { %v8070_v20 = vpop.permute.xlu1 %5359  ;;  %v3718_v35 = vsel %vm3717_vm14, %v3685_v33, %v5311_v57  ;;  %v3719_v27 = vsel %vm3717_vm14, %v3686_v10, %v5312_v13  ;;  %v8092_v13 = vpack.i.bf16 %v2334_v14, %v2333_v49  ;;  %v3558_v57 = vsel %vm1613_vm2, %v7774_v19, %v5326_v56 }
 0x2cb   : > { %v8068_v52 = vpop.permute.xlu0 %5369  ;;  %v3751_v22 = vsel %vm3750_vm15, %v3718_v35, %v5316_v15  ;;  %v3752_v5 = vsel %vm3750_vm15, %v3719_v27, %v5317_v0  ;;  %v3590_v48 = vsel %vm1679_vm4, %v3558_v57, %v5331_v17  ;;  %v3591_v46 = vsel %vm1679_vm4, %v3559_v34, %v5332_v40  ;;  %v2337_v35 = vld [vmem:[#allocation2 + $0x16a] sm:$0xff]  ;;  %v2338_v27 = vld [vmem:[#allocation2 + $0x172] sm:$0xff] }
 0x2cc   : > { %5669 = vrot.lane.b32.xlu1 %v8064_v61, %s5930_s28  ;;  %v3784_v41 = vsel %vm3783_vm0, %v3751_v22, %v5321_v1  ;;  %v3785_v30 = vsel %vm3783_vm0, %v3752_v5, %v5322_v7  ;;  %v5297_v33 = vunpack.i.h.bf16 %v7965_v37  ;;  %v5296_v19 = vunpack.i.l.bf16 %v7965_v37 }
 0x2cd   : > { %5644 = vrot.lane.b32.xlu0 %v7990_v63, %s5938_s25  ;;  %v3816_v60 = vpack.c.bf16 %v3785_v30, %v3784_v41  ;;  %v8109_v15 = vpack.i.bf16 %v2306_v58, %v2305_v32  ;;  %v5301_v56 = vunpack.i.l.bf16 %v7988_v3  ;;  %v8121_v5 = vpack.i.bf16 %v2338_v27, %v2337_v35 }
 0x2ce   : > { %v8090_v63 = vpop.permute.xlu1 %5374  ;;  %v3622_v7 = vsel %vm1745_vm6, %v3590_v48, %v5296_v19  ;;  %v3623_v1 = vsel %vm1745_vm6, %v3591_v46, %v5297_v33  ;;  %v5307_v41 = vunpack.i.h.bf16 %v8000_v25  ;;  %v5306_v30 = vunpack.i.l.bf16 %v8000_v25 }
 0x2cf   : > { %v8088_v44 = vpop.permute.xlu0 %5399  ;;  %4577 = vmatprep.mubr.msk.bf16.mxu1 %vm3875_vm1, %v3816_v60  ;;  %v3654_v40 = vsel %vm1811_vm8, %v3622_v7, %v5301_v56  ;;  %v3655_v17 = vsel %vm1811_vm8, %v3623_v1, %v5302_v62 }
 0x2d0   : > { %5674 = vrot.lane.b32.xlu1 %v8092_v13, %s5932_s30  ;;  %v3687_v57 = vsel %vm3684_vm13, %v3654_v40, %v5306_v30  ;;  %v3688_v34 = vsel %vm3684_vm13, %v3655_v17, %v5307_v41  ;;  %v5291_v40 = vunpack.i.l.bf16 %v7976_v45  ;;  %v5402_v30 = vunpack.i.h.bf16 %v8088_v44 }
 0x2d1   : > { %5654 = vrot.lane.b32.xlu0 %v7992_v53, %s5939_s26 }
 0x2d2   : > { %v8107_v0 = vpop.permute.xlu1 %5379 }
 0x2d3   : > { %v5405_v10 = vpop.permute.xlu0 %5404 }
 0x2d4   : > { %5679 = vrot.lane.b32.xlu1 %v8109_v15, %s5930_s28  ;;  %v5407_v49 = vunpack.i.h.bf16 %v5405_v10  ;;  %v5406_v14 = vunpack.i.l.bf16 %v5405_v10 }
 0x2d5   : > { %5664 = vrot.lane.b32.xlu0 %v8004_v28, %s5940_s27 }
 0x2d6   : > { %v8119_v22 = vpop.permute.xlu1 %5384  ;;  %v3720_v46 = vsel %vm3717_vm14, %v3687_v57, %v5406_v14  ;;  %v3721_v33 = vsel %vm3717_vm14, %v3688_v34, %v5407_v49  ;;  %v5287_v49 = vunpack.i.h.bf16 %v7967_v42  ;;  %v5286_v14 = vunpack.i.l.bf16 %v7967_v42 }
 0x2d7   : > { %v5410_v37 = vpop.permute.xlu0 %5409 }
 0x2d8   : > { %v5412_v60 = vunpack.i.h.bf16 %v5410_v37  ;;  %v5411_v3 = vunpack.i.l.bf16 %v5410_v37  ;;  %5684 = vrot.lane.b32.xlu1 %v8121_v5, %s5932_s30 }
 0x2d9   : > { %5694 = vrot.lane.b32.xlu0 %v7969_v29, %s5936_s16 }
 0x2da   : > { %v8133_v48 = vpop.permute.xlu1 %5389  ;;  %v3753_v10 = vsel %vm3750_vm15, %v3720_v46, %v5411_v3  ;;  %v3754_v32 = vsel %vm3750_vm15, %v3721_v33, %v5412_v60  ;;  %v5401_v60 = vunpack.i.l.bf16 %v8088_v44 }
 0x2db   : > { %v5415_v58 = vpop.permute.xlu0 %5414 }
 0x2dc   : > { %v5417_v25 = vunpack.i.h.bf16 %v5415_v58  ;;  %v5416_v19 = vunpack.i.l.bf16 %v5415_v58  ;;  %5689 = vrot.lane.b32.xlu1 %v7992_v53, %s5936_s16  ;;  %v5292_v53 = vunpack.i.h.bf16 %v7976_v45  ;;  %v3560_v45 = vsel %vm1613_vm2, %v7723_v23, %v5286_v14 }
 0x2dd   : > { %5704 = vrot.lane.b32.xlu0 %v7978_v16, %s5941_s29  ;;  %v3561_v58 = vsel %vm1613_vm2, %v7728_v31, %v5287_v49 }
 0x2de   : > { %v3786_v35 = vsel %vm3783_vm0, %v3753_v10, %v5416_v19  ;;  %v3787_v27 = vsel %vm3783_vm0, %v3754_v32, %v5417_v25  ;;  %v8145_v1 = vpop.permute.xlu1 %5394  ;;  %v5377_v32 = vunpack.i.h.bf16 %v8090_v63 }
 0x2df   : > { %v5430_v7 = vpop.permute.xlu0 %5429  ;;  %v3817_v62 = vpack.c.bf16 %v3787_v27, %v3786_v35  ;;  %v5376_v35 = vunpack.i.l.bf16 %v8090_v63 }
 0x2e0   : > { %v5432_v56 = vunpack.i.h.bf16 %v5430_v7  ;;  %v5431_v37 = vunpack.i.l.bf16 %v5430_v7  ;;  %5699 = vrot.lane.b32.xlu1 %v8004_v28, %s5941_s29 }
 0x2e1   : > { %5714 = vrot.lane.b32.xlu0 %v8026_v39, %s5938_s25  ;;  %4578 = vmatmul.mubr.msk.bf16.vlgmr.msra.gmra.mrb[0].mxu1 %vm3875_vm1, %v3817_v62 }
 0x2e2   : > { %v5420_v41 = vpop.permute.xlu1 %5419  ;;  %v3569_v57 = vsel %vm1613_vm2, %v7907_v21, %v5432_v56  ;;  %v3568_v42 = vsel %vm1613_vm2, %v7911_v55, %v5431_v37  ;;  %v3592_v21 = vsel %vm1679_vm4, %v3560_v45, %v5291_v40  ;;  %v3593_v55 = vsel %vm1679_vm4, %v3561_v58, %v5292_v53 }
 0x2e3   : > { %v5435_v17 = vpop.permute.xlu0 %5434  ;;  %v5422_v34 = vunpack.i.h.bf16 %v5420_v41  ;;  %v5421_v28 = vunpack.i.l.bf16 %v5420_v41  ;;  %v3625_v23 = vsel %vm1745_vm6, %v3593_v55, %v5402_v30  ;;  %v3624_v31 = vsel %vm1745_vm6, %v3592_v21, %v5401_v60  ;;  %v8208_v60 = vld [vmem:[#allocation2 + $0x128] sm:$0xff] }
 0x2e4   : > { %v5437_v39 = vunpack.i.h.bf16 %v5435_v17  ;;  %v5436_v3 = vunpack.i.l.bf16 %v5435_v17  ;;  %5709 = vrot.lane.b32.xlu1 %v7980_v8, %s5938_s25  ;;  %v5382_v56 = vunpack.i.h.bf16 %v8107_v0  ;;  %v5381_v37 = vunpack.i.l.bf16 %v8107_v0 }
 0x2e5   : > { %5724 = vrot.lane.b32.xlu0 %v8014_v59, %s5939_s26  ;;  %v3657_v27 = vsel %vm1811_vm8, %v3625_v23, %v5422_v34  ;;  %v3656_v8 = vsel %vm1811_vm8, %v3624_v31, %v5421_v28  ;;  %v5387_v40 = vunpack.i.h.bf16 %v8119_v22  ;;  %v5386_v17 = vunpack.i.l.bf16 %v8119_v22  ;;  %v8220_v34 = vld [vmem:[#allocation2 + $0x120] sm:$0xff] }
 0x2e6   : > { %v8169_v44 = vsel %vm1679_vm4, %v3568_v42, %v5436_v3  ;;  %v8172_v46 = vsel %vm1679_vm4, %v3569_v57, %v5437_v39  ;;  %v5425_v25 = vpop.permute.xlu1 %5424  ;;  %v5392_v41 = vunpack.i.h.bf16 %v8133_v48  ;;  %v5397_v39 = vunpack.i.h.bf16 %v8145_v1 }
 0x2e7   : > { %v8178_v33 = vpop.permute.xlu0 %5444  ;;  %v5427_v19 = vunpack.i.h.bf16 %v5425_v25  ;;  %v5426_v10 = vunpack.i.l.bf16 %v5425_v25  ;;  %v5396_v3 = vunpack.i.l.bf16 %v8145_v1  ;;  %v5738_v28 = vpack.i.bf16 %v8208_v60, %v8220_v34 }
 0x2e8   : > { %5719 = vrot.lane.b32.xlu1 %v7969_v29, %s5939_s26  ;;  %v5391_v29 = vunpack.i.l.bf16 %v8133_v48  ;;  %v3563_v1 = vsel %vm1613_vm2, %v7846_v54, %v5392_v41  ;;  %v5362_v21 = vunpack.i.h.bf16 %v8070_v20  ;;  %v5361_v55 = vunpack.i.l.bf16 %v8070_v20 }
 0x2e9   : > { %5734 = vrot.lane.b32.xlu0 %v8028_v11, %s5940_s27  ;;  %v3689_v7 = vsel %vm3684_vm13, %v3656_v8, %v5426_v10  ;;  %v3690_v62 = vsel %vm3684_vm13, %v3657_v27, %v5427_v19  ;;  %v3595_v58 = vsel %vm1679_vm4, %v3563_v1, %v5397_v39  ;;  %v5366_v31 = vunpack.i.l.bf16 %v8048_v36  ;;  %v8249_v8 = vld [vmem:[#allocation2 + $0x140] sm:$0xff] }
 0x2ea   : > { %v3722_v63 = vsel %vm3717_vm14, %v3689_v7, %v5376_v35  ;;  %v3723_v49 = vsel %vm3717_vm14, %v3690_v62, %v5377_v32  ;;  %v8198_v53 = vpop.permute.xlu1 %5439  ;;  %v3627_v23 = vsel %vm1745_vm6, %v3595_v58, %v5362_v21  ;;  %v5372_v7 = vunpack.i.h.bf16 %v8068_v52 }
 0x2eb   : > { %v8196_v14 = vpop.permute.xlu0 %5449  ;;  %v3755_v0 = vsel %vm3750_vm15, %v3722_v63, %v5381_v37  ;;  %v3756_v30 = vsel %vm3750_vm15, %v3723_v49, %v5382_v56  ;;  %v5371_v62 = vunpack.i.l.bf16 %v8068_v52  ;;  %v8257_v37 = vld [vmem:[#allocation2 + $0x138] sm:$0xff]  ;;  %v5357_v58 = vunpack.i.h.bf16 %v8038_v18 }
 0x2ec   : > { %5729 = vrot.lane.b32.xlu1 %v7978_v16, %s5940_s27  ;;  %v3788_v22 = vsel %vm3783_vm0, %v3755_v0, %v5386_v17  ;;  %v3789_v48 = vsel %vm3783_vm0, %v3756_v30, %v5387_v40  ;;  %v3562_v16 = vsel %vm1613_vm2, %v7856_v12, %v5391_v29  ;;  %v5768_v52 = vpack.i.bf16 %v8249_v8, %v8257_v37 }
 0x2ed   : > { %5744 = vrot.lane.b32.xlu0 %v8014_v59, %s5936_s16  ;;  %v3818_v42 = vpack.c.bf16 %v3789_v48, %v3788_v22  ;;  %v3594_v45 = vsel %vm1679_vm4, %v3562_v16, %v5396_v3  ;;  %v5356_v21 = vunpack.i.l.bf16 %v8038_v18 }
 0x2ee   : > { %v8218_v59 = vpop.permute.xlu1 %5454  ;;  %v3626_v12 = vsel %vm1745_vm6, %v3594_v45, %v5361_v55  ;;  %v5352_v45 = vunpack.i.h.bf16 %v8022_v47 }
 0x2ef   : > { %v8216_v57 = vpop.permute.xlu0 %5479  ;;  %4581 = vmatprep.mubr.msk.bf16.mxu1 %vm3875_vm1, %v3818_v42  ;;  %v3658_v35 = vsel %vm1811_vm8, %v3626_v12, %v5366_v31 }
 0x2f0   : > { %5739 = vrot.lane.b32.xlu1 %v5738_v28, %s5934_s8  ;;  %v3691_v63 = vsel %vm3684_vm13, %v3658_v35, %v5371_v62  ;;  %v5482_v12 = vunpack.i.h.bf16 %v8216_v57  ;;  %v3565_v18 = vsel %vm1613_vm2, %v7822_v26, %v5352_v45 }
 0x2f1   : > { %5754 = vrot.lane.b32.xlu0 %v8028_v11, %s5941_s29  ;;  %v5367_v11 = vunpack.i.h.bf16 %v8048_v36 }
 0x2f2   : > { %v8236_v54 = vpop.permute.xlu1 %5459 }
 0x2f3   : > { %v5485_v25 = vpop.permute.xlu0 %5484  ;;  %v3659_v27 = vsel %vm1811_vm8, %v3627_v23, %v5367_v11  ;;  %v5481_v23 = vunpack.i.l.bf16 %v8216_v57 }
 0x2f4   : > { %5749 = vrot.lane.b32.xlu1 %v8002_v9, %s5936_s16  ;;  %v5487_v20 = vunpack.i.h.bf16 %v5485_v25  ;;  %v5486_v32 = vunpack.i.l.bf16 %v5485_v25  ;;  %v3692_v49 = vsel %vm3684_vm13, %v3659_v27, %v5372_v7 }
 0x2f5   : > { %5764 = vrot.lane.b32.xlu0 %v5738_v28, %s5938_s25 }
 0x2f6   : > { %v8245_v10 = vpop.permute.xlu1 %5464  ;;  %v3724_v41 = vsel %vm3717_vm14, %v3691_v63, %v5486_v32  ;;  %v3725_v29 = vsel %vm3717_vm14, %v3692_v49, %v5487_v20 }
 0x2f7   : > { %v5490_v19 = vpop.permute.xlu0 %5489 }
 0x2f8   : > { %v5492_v56 = vunpack.i.h.bf16 %v5490_v19  ;;  %v5491_v36 = vunpack.i.l.bf16 %v5490_v19  ;;  %5759 = vrot.lane.b32.xlu1 %v8012_v4, %s5941_s29  ;;  %v8286_v19 = vld [vmem:[#allocation2 + $0x158] sm:$0xff] }
 0x2f9   : > { %5774 = vrot.lane.b32.xlu0 %v8002_v9, %s5939_s26 }
 0x2fa   : > { %v8261_v17 = vpop.permute.xlu1 %5469  ;;  %v3757_v30 = vsel %vm3750_vm15, %v3724_v41, %v5491_v36  ;;  %v3758_v39 = vsel %vm3750_vm15, %v3725_v29, %v5492_v56 }
 0x2fb   : > { %v5495_v40 = vpop.permute.xlu0 %5494 }
 0x2fc   : > { %v5497_v9 = vunpack.i.h.bf16 %v5495_v40  ;;  %v5496_v0 = vunpack.i.l.bf16 %v5495_v40  ;;  %5769 = vrot.lane.b32.xlu1 %v5768_v52, %s5938_s25  ;;  %v5457_v40 = vunpack.i.h.bf16 %v8218_v59 }
 0x2fd   : > { %5784 = vrot.lane.b32.xlu0 %v8012_v4, %s5940_s27  ;;  %v5351_v4 = vunpack.i.l.bf16 %v8022_v47 }
 0x2fe   : > { %v3790_v3 = vsel %vm3783_vm0, %v3757_v30, %v5496_v0  ;;  %v3791_v22 = vsel %vm3783_vm0, %v3758_v39, %v5497_v9  ;;  %v8274_v28 = vpop.permute.xlu1 %5474  ;;  %v5462_v30 = vunpack.i.h.bf16 %v8236_v54  ;;  %v5461_v39 = vunpack.i.l.bf16 %v8236_v54 }
 0x2ff   : > { %v3819_v48 = vpack.c.bf16 %v3791_v22, %v3790_v3  ;;  %v5510_v42 = vpop.permute.xlu0 %5509  ;;  %v3564_v57 = vsel %vm1613_vm2, %v7836_v38, %v5351_v4  ;;  %v5477_v4 = vunpack.i.h.bf16 %v8274_v28 }
 0x300   : > { %v5512_v1 = vunpack.i.h.bf16 %v5510_v42  ;;  %v5511_v16 = vunpack.i.l.bf16 %v5510_v42  ;;  %5779 = vrot.lane.b32.xlu1 %v8064_v61, %s5939_s26  ;;  %v5466_v42 = vunpack.i.l.bf16 %v8245_v10 }
 0x301   : > { %5794 = vrot.lane.b32.xlu0 %v5768_v52, %s5934_s8  ;;  %4582 = vmatmul.mubr.msk.bf16.gmra.mrb[4].mxu1 %vm3875_vm1, %v3819_v48  ;;  %v5456_v52 = vunpack.i.l.bf16 %v8218_v59 }
 0x302   : > { %v5500_v25 = vpop.permute.xlu1 %5499  ;;  %v3573_v47 = vsel %vm1613_vm2, %v7941_v24, %v5512_v1  ;;  %v3572_v20 = vsel %vm1613_vm2, %v7946_v50, %v5511_v16  ;;  %v8306_v24 = vld [vmem:[#allocation2 + $0x150] sm:$0xff]  ;;  %v3596_v50 = vsel %vm1679_vm4, %v3564_v57, %v5356_v21  ;;  %v5472_v1 = vunpack.i.h.bf16 %v8261_v17 }
 0x303   : > { %v5515_v55 = vpop.permute.xlu0 %5514  ;;  %v5502_v32 = vunpack.i.h.bf16 %v5500_v25  ;;  %v5501_v35 = vunpack.i.l.bf16 %v5500_v25  ;;  %v5798_v38 = vpack.i.bf16 %v8286_v19, %v8306_v24  ;;  %v3628_v56 = vsel %vm1745_vm6, %v3596_v50, %v5481_v23 }
 0x304   : > { %v5517_v11 = vunpack.i.h.bf16 %v5515_v55  ;;  %v5516_v31 = vunpack.i.l.bf16 %v5515_v55  ;;  %5789 = vrot.lane.b32.xlu1 %v8092_v13, %s5940_s27  ;;  %v5471_v16 = vunpack.i.l.bf16 %v8261_v17  ;;  %v5447_v57 = vunpack.i.h.bf16 %v8178_v33 }
 0x305   : > { %5804 = vrot.lane.b32.xlu0 %v8064_v61, %s5936_s16  ;;  %v3597_v61 = vsel %vm1679_vm4, %v3565_v18, %v5357_v58  ;;  %v3660_v29 = vsel %vm1811_vm8, %v3628_v56, %v5501_v35  ;;  %v5476_v58 = vunpack.i.l.bf16 %v8274_v28  ;;  %v8357_v28 = vld [vmem:[#allocation2 + $0x170] sm:$0xff]  ;;  %v5446_v50 = vunpack.i.l.bf16 %v8178_v33 }
 0x306   : > { %v8299_v27 = vsel %vm1679_vm4, %v3572_v20, %v5516_v31  ;;  %v8302_v7 = vsel %vm1679_vm4, %v3573_v47, %v5517_v11  ;;  %v5505_v26 = vpop.permute.xlu1 %5504  ;;  %v3629_v36 = vsel %vm1745_vm6, %v3597_v61, %v5482_v12  ;;  %v3567_v12 = vsel %vm1613_vm2, %v7915_v51, %v5472_v1 }
 0x307   : > { %v8310_v62 = vpop.permute.xlu0 %5524  ;;  %v5507_v63 = vunpack.i.h.bf16 %v5505_v26  ;;  %v5506_v49 = vunpack.i.l.bf16 %v5505_v26  ;;  %v3661_v41 = vsel %vm1811_vm8, %v3629_v36, %v5502_v32  ;;  %v3566_v23 = vsel %vm1613_vm2, %v7919_v6, %v5471_v16  ;;  %v8367_v32 = vld [vmem:[#allocation2 + $0x168] sm:$0xff] }
 0x308   : > { %5799 = vrot.lane.b32.xlu1 %v5798_v38, %s5934_s8  ;;  %v3598_v11 = vsel %vm1679_vm4, %v3566_v23, %v5476_v58  ;;  %v3599_v31 = vsel %vm1679_vm4, %v3567_v12, %v5477_v4  ;;  %v5442_v47 = vunpack.i.h.bf16 %v8198_v53  ;;  %v5441_v51 = vunpack.i.l.bf16 %v8198_v53  ;;  %v2401_v12 = vld [vmem:[#allocation2 + $0x181] sm:$0xff]  ;;  %v2263_v23 = vld [vmem:[#allocation2 + $0xf0] sm:$0xff] }
 0x309   : > { %5814 = vrot.lane.b32.xlu0 %v8092_v13, %s5941_s29  ;;  %v3693_v9 = vsel %vm3684_vm13, %v3660_v29, %v5506_v49  ;;  %v3694_v0 = vsel %vm3684_vm13, %v3661_v41, %v5507_v63  ;;  %v5467_v13 = vunpack.i.h.bf16 %v8245_v10  ;;  %v5452_v63 = vunpack.i.h.bf16 %v8196_v14 }
 0x30a   : > { %v3726_v3 = vsel %vm3717_vm14, %v3693_v9, %v5456_v52  ;;  %v3727_v59 = vsel %vm3717_vm14, %v3694_v0, %v5457_v40  ;;  %v8331_v48 = vpop.permute.xlu1 %5519  ;;  %v3630_v35 = vsel %vm1745_vm6, %v3598_v11, %v5441_v51  ;;  %v3631_v18 = vsel %vm1745_vm6, %v3599_v31, %v5442_v47  ;;  %v2264_v11 = vld [vmem:[#allocation2 + $0xf8] sm:$0xff] }
 0x30b   : > { %v8329_v22 = vpop.permute.xlu0 %5529  ;;  %v3759_v54 = vsel %vm3750_vm15, %v3726_v3, %v5461_v39  ;;  %v3760_v45 = vsel %vm3750_vm15, %v3727_v59, %v5462_v30  ;;  %v3662_v56 = vsel %vm1811_vm8, %v3630_v35, %v5446_v50  ;;  %v3663_v36 = vsel %vm1811_vm8, %v3631_v18, %v5447_v57  ;;  %v2370_v59 = vld [vmem:[#allocation2 + $0x188] sm:$0xff] }
 0x30c   : > { %5809 = vrot.lane.b32.xlu1 %v8040_v2, %s5936_s16  ;;  %v3792_v21 = vsel %vm3783_vm0, %v3759_v54, %v5466_v42  ;;  %v3793_v10 = vsel %vm3783_vm0, %v3760_v45, %v5467_v13  ;;  %v5451_v49 = vunpack.i.l.bf16 %v8196_v14  ;;  %v3696_v52 = vsel %vm3684_vm13, %v3663_v36, %v5452_v63  ;;  %v2369_v45 = vld [vmem:[#allocation2 + $0x180] sm:$0xff]  ;;  %v2434_v35 = vld [vmem:[#allocation2 + $0x18a] sm:$0xff] }
 0x30d   : > { %5824 = vrot.lane.b32.xlu0 %v5798_v38, %s5938_s25  ;;  %v3820_v25 = vpack.c.bf16 %v3793_v10, %v3792_v21  ;;  %v5858_v4 = vpack.i.bf16 %v2370_v59, %v2369_v45 }
 0x30e   : > { %v8348_v17 = vpop.permute.xlu1 %5534  ;;  %v3695_v33 = vsel %vm3684_vm13, %v3662_v56, %v5451_v49 }
 0x30f   : > { %v8346_v55 = vpop.permute.xlu0 %5549  ;;  %4585 = vmatprep.mubr.msk.bf16.mxu1 %vm3875_vm1, %v3820_v25 }
 0x310   : > { %5819 = vrot.lane.b32.xlu1 %v8050_v43, %s5941_s29 }
 0x311   : > { %5834 = vrot.lane.b32.xlu0 %v8040_v2, %s5939_s26  ;;  %v5828_v2 = vpack.i.bf16 %v8357_v28, %v8367_v32 }
 0x312   : > { %v8365_v6 = vpop.permute.xlu1 %5539 }
 0x313   : > { %v5555_v20 = vpop.permute.xlu0 %5554 }
 0x314   : > { %5829 = vrot.lane.b32.xlu1 %v5828_v2, %s5938_s25  ;;  %v5557_v26 = vunpack.i.h.bf16 %v5555_v20  ;;  %v5556_v38 = vunpack.i.l.bf16 %v5555_v20 }
 0x315   : > { %5844 = vrot.lane.b32.xlu0 %v8050_v43, %s5940_s27 }
 0x316   : > { %v8378_v61 = vpop.permute.xlu1 %5544  ;;  %v3728_v9 = vsel %vm3717_vm14, %v3695_v33, %v5556_v38  ;;  %v3729_v0 = vsel %vm3717_vm14, %v3696_v52, %v5557_v26  ;;  %v2466_v26 = vld [vmem:[#allocation2 + $0x198] sm:$0xff]  ;;  %v2467_v38 = vld [vmem:[#allocation2 + $0x1a0] sm:$0xff] }
 0x317   : > { %v5560_v53 = vpop.permute.xlu0 %5559  ;;  %v5888_v36 = vpack.i.bf16 %v2467_v38, %v2466_v26 }
 0x318   : > { %v5562_v43 = vunpack.i.h.bf16 %v5560_v53  ;;  %v5561_v40 = vunpack.i.l.bf16 %v5560_v53  ;;  %5839 = vrot.lane.b32.xlu1 %v8109_v15, %s5939_s26 }
 0x319   : > { %5854 = vrot.lane.b32.xlu0 %v5828_v2, %s5934_s8 }
 0x31a   : > { %v8389_v29 = vpop.permute.xlu1 %5569  ;;  %v3761_v39 = vsel %vm3750_vm15, %v3728_v9, %v5561_v40  ;;  %v3762_v3 = vsel %vm3750_vm15, %v3729_v0, %v5562_v43  ;;  %v2498_v43 = vld [vmem:[#allocation2 + $0x199] sm:$0xff]  ;;  %v2499_v40 = vld [vmem:[#allocation2 + $0x1a1] sm:$0xff] }
 0x31b   : > { %v5565_v41 = vpop.permute.xlu0 %5564  ;;  %v2530_v9 = vld [vmem:[#allocation2 + $0x19a] sm:$0xff]  ;;  %v2531_v0 = vld [vmem:[#allocation2 + $0x1a2] sm:$0xff] }
 0x31c   : > { %v5567_v30 = vunpack.i.h.bf16 %v5565_v41  ;;  %v5566_v14 = vunpack.i.l.bf16 %v5565_v41  ;;  %5849 = vrot.lane.b32.xlu1 %v8121_v5, %s5940_s27  ;;  %v5898_v41 = vpack.i.bf16 %v2499_v40, %v2498_v43 }
 0x31d   : > { %5864 = vrot.lane.b32.xlu0 %v8109_v15, %s5936_s16  ;;  %v2402_v15 = vld [vmem:[#allocation2 + $0x189] sm:$0xff] }
 0x31e   : > { %v3794_v13 = vsel %vm3783_vm0, %v3761_v39, %v5566_v14  ;;  %v3795_v42 = vsel %vm3783_vm0, %v3762_v3, %v5567_v30  ;;  %v8401_v54 = vpop.permute.xlu1 %5574  ;;  %v5868_v51 = vpack.i.bf16 %v2402_v15, %v2401_v12 }
 0x31f   : > { %v3821_v1 = vpack.c.bf16 %v3795_v42, %v3794_v13  ;;  %v5580_v16 = vpop.permute.xlu0 %5579  ;;  %v5908_v42 = vpack.i.bf16 %v2531_v0, %v2530_v9  ;;  %v5577_v15 = vunpack.i.h.bf16 %v8401_v54 }
 0x320   : > { %v5582_v58 = vunpack.i.h.bf16 %v5580_v16  ;;  %v5581_v21 = vunpack.i.l.bf16 %v5580_v16  ;;  %5859 = vrot.lane.b32.xlu1 %v5858_v4, %s5934_s8  ;;  %v5551_v16 = vunpack.i.l.bf16 %v8346_v55 }
 0x321   : > { %5874 = vrot.lane.b32.xlu0 %v8121_v5, %s5941_s29  ;;  %4586 = vmatmul.mubr.msk.bf16.gmra.mrb[8].mxu1 %vm3875_vm1, %v3821_v1  ;;  %v2433_v5 = vld [vmem:[#allocation2 + $0x182] sm:$0xff]  ;;  %v5552_v1 = vunpack.i.h.bf16 %v8346_v55  ;;  %v5576_v55 = vunpack.i.l.bf16 %v8401_v54 }
 0x322   : > { %v8407_v25 = vpop.permute.xlu1 %5589  ;;  %v3577_v20 = vsel %vm1613_vm2, %v2264_v11, %v5582_v58  ;;  %v3576_v2 = vsel %vm1613_vm2, %v2263_v23, %v5581_v21  ;;  %v5878_v56 = vpack.i.bf16 %v2434_v35, %v2433_v5  ;;  %v5572_v58 = vunpack.i.h.bf16 %v8389_v29  ;;  %v2257_v5 = vld [vmem:[#allocation2 + $0xa8] sm:$0xff]  ;;  %v2258_v35 = vld [vmem:[#allocation2 + $0xb0] sm:$0xff] }
 0x323   : > { %v5585_v10 = vpop.permute.xlu0 %5584  ;;  %v3633_v12 = vsel %vm1745_vm6, %v8172_v46, %v5552_v1  ;;  %v5542_v23 = vunpack.i.h.bf16 %v8365_v6  ;;  %v5541_v11 = vunpack.i.l.bf16 %v8365_v6  ;;  %v5536_v46 = vunpack.i.l.bf16 %v8348_v17 }
 0x324   : > { %v5587_v31 = vunpack.i.h.bf16 %v5585_v10  ;;  %v5586_v47 = vunpack.i.l.bf16 %v5585_v10  ;;  %5869 = vrot.lane.b32.xlu1 %v5868_v51, %s5936_s16  ;;  %v3632_v10 = vsel %vm1745_vm6, %v8169_v44, %v5551_v16  ;;  %v5537_v44 = vunpack.i.h.bf16 %v8348_v17 }
 0x325   : > { %5884 = vrot.lane.b32.xlu0 %v5858_v4, %s5938_s25 }
 0x326   : > { %v8413_v18 = vsel %vm1679_vm4, %v3576_v2, %v5586_v47  ;;  %v8416_v57 = vsel %vm1679_vm4, %v3577_v20, %v5587_v31  ;;  %v8421_v53 = vpop.permute.xlu1 %5594  ;;  %v5546_v31 = vunpack.i.l.bf16 %v8378_v61  ;;  %v3665_v47 = vsel %vm1811_vm8, %v3633_v12, %v5572_v58 }
 0x327   : > { %v8419_v50 = vpop.permute.xlu0 %5604  ;;  %v3698_v6 = vsel %vm3684_vm13, %v3665_v47, %v5577_v15  ;;  %v5522_v15 = vunpack.i.h.bf16 %v8331_v48 }
 0x328   : > { %5879 = vrot.lane.b32.xlu1 %v5878_v56, %s5941_s29 }
 0x329   : > { %5894 = vrot.lane.b32.xlu0 %v5868_v51, %s5939_s26 }
 0x32a   : > { %v8425_v49 = vpop.permute.xlu1 %5599 }
 0x32b   : > { %v5610_v63 = vpop.permute.xlu0 %5609 }
 0x32c   : > { %v5612_v33 = vunpack.i.h.bf16 %v5610_v63  ;;  %v5611_v52 = vunpack.i.l.bf16 %v5610_v63  ;;  %5889 = vrot.lane.b32.xlu1 %v5888_v36, %s5938_s25  ;;  %v3571_v36 = vsel %vm1613_vm2, %v2258_v35, %v5542_v23  ;;  %v3570_v63 = vsel %vm1613_vm2, %v2257_v5, %v5541_v11 }
 0x32d   : > { %5904 = vrot.lane.b32.xlu0 %v5878_v56, %s5940_s27  ;;  %v3602_v43 = vsel %vm1679_vm4, %v3570_v63, %v5546_v31  ;;  %v5527_v11 = vunpack.i.h.bf16 %v8310_v62 }
 0x32e   : > { %v8429_v14 = vpop.permute.xlu1 %5619  ;;  %v3581_v59 = vsel %vm1613_vm2, %v8208_v60, %v5612_v33  ;;  %v3580_v13 = vsel %vm1613_vm2, %v8220_v34, %v5611_v52  ;;  %v5571_v60 = vunpack.i.l.bf16 %v8389_v29  ;;  %v5547_v29 = vunpack.i.h.bf16 %v8378_v61 }
 0x32f   : > { %v5615_v30 = vpop.permute.xlu0 %5614  ;;  %v3731_v33 = vsel %vm3717_vm14, %v3698_v6, %v5537_v44 }
 0x330   : > { %v5617_v39 = vunpack.i.h.bf16 %v5615_v30  ;;  %v5616_v3 = vunpack.i.l.bf16 %v5615_v30  ;;  %5899 = vrot.lane.b32.xlu1 %v5898_v41, %s5939_s26  ;;  %v3664_v54 = vsel %vm1811_vm8, %v3632_v10, %v5571_v60  ;;  %v3603_v40 = vsel %vm1679_vm4, %v3571_v36, %v5547_v29 }
 0x331   : > { %v3697_v2 = vsel %vm3684_vm13, %v3664_v54, %v5576_v55  ;;  %v3635_v23 = vsel %vm1745_vm6, %v3603_v40, %v5522_v15  ;;  %v5526_v29 = vunpack.i.l.bf16 %v8310_v62  ;;  %v5532_v54 = vunpack.i.h.bf16 %v8329_v22 }
 0x332   : > { %v8438_v45 = vsel %vm1679_vm4, %v3580_v13, %v5616_v3  ;;  %v8441_v4 = vsel %vm1679_vm4, %v3581_v59, %v5617_v39  ;;  %v8448_v34 = vpop.permute.xlu1 %5624  ;;  %v3730_v17 = vsel %vm3717_vm14, %v3697_v2, %v5536_v46  ;;  %v3667_v2 = vsel %vm1811_vm8, %v3635_v23, %v5527_v11 }
 0x333   : > { %v8446_v21 = vpop.permute.xlu0 %5629  ;;  %v5596_v23 = vunpack.i.l.bf16 %v8421_v53  ;;  %v5602_v11 = vunpack.i.h.bf16 %v8425_v49 }
 0x334   : > { %5909 = vrot.lane.b32.xlu1 %v5908_v42, %s5940_s27 }
 0x336   : > { %v5650_v20 = vpop.permute.xlu1 %5649 }
 0x337   : > { %v5635_v51 = vpop.permute.xlu0 %5634  ;;  %v5652_v56 = vunpack.i.h.bf16 %v5650_v20  ;;  %v5651_v61 = vunpack.i.l.bf16 %v5650_v20 }
 0x338   : > { %v5637_v26 = vunpack.i.h.bf16 %v5635_v51  ;;  %v5636_v38 = vunpack.i.l.bf16 %v5635_v51  ;;  %v5531_v51 = vunpack.i.l.bf16 %v8329_v22 }
 0x339   : > { %v3763_v13 = vsel %vm3750_vm15, %v3730_v17, %v5651_v61  ;;  %v3764_v42 = vsel %vm3750_vm15, %v3731_v33, %v5652_v56  ;;  %v3700_v61 = vsel %vm3684_vm13, %v3667_v2, %v5532_v54  ;;  %v5607_v54 = vunpack.i.h.bf16 %v8419_v50 }
 0x33a   : > { %v5660_v41 = vpop.permute.xlu1 %5659  ;;  %v3585_v3 = vsel %vm1613_vm2, %v8286_v19, %v5637_v26  ;;  %v3584_v59 = vsel %vm1613_vm2, %v8306_v24, %v5636_v38  ;;  %v5521_v19 = vunpack.i.l.bf16 %v8331_v48 }
 0x33b   : > { %v5640_v52 = vpop.permute.xlu0 %5639  ;;  %v5662_v30 = vunpack.i.h.bf16 %v5660_v41  ;;  %v5661_v39 = vunpack.i.l.bf16 %v5660_v41 }
 0x33c   : > { %v5642_v9 = vunpack.i.h.bf16 %v5640_v52  ;;  %v5641_v0 = vunpack.i.l.bf16 %v5640_v52  ;;  %v3634_v12 = vsel %vm1745_vm6, %v3602_v43, %v5521_v19 }
 0x33d   : > { %v3796_v58 = vsel %vm3783_vm0, %v3763_v13, %v5661_v39  ;;  %v3797_v60 = vsel %vm3783_vm0, %v3764_v42, %v5662_v30  ;;  %v3666_v46 = vsel %vm1811_vm8, %v3634_v12, %v5526_v29  ;;  %v5597_v12 = vunpack.i.h.bf16 %v8421_v53 }
 0x33e   : > { %v8480_v1 = vsel %vm1679_vm4, %v3584_v59, %v5641_v0  ;;  %v8483_v16 = vsel %vm1679_vm4, %v3585_v3, %v5642_v9  ;;  %v3822_v55 = vpack.c.bf16 %v3797_v60, %v3796_v58  ;;  %v5670_v10 = vpop.permute.xlu1 %5669  ;;  %v3699_v22 = vsel %vm3684_vm13, %v3666_v46, %v5531_v51 }
 0x33f   : > { %v5645_v24 = vpop.permute.xlu0 %5644  ;;  %v5672_v31 = vunpack.i.h.bf16 %v5670_v10  ;;  %v5671_v47 = vunpack.i.l.bf16 %v5670_v10  ;;  %v5601_v29 = vunpack.i.l.bf16 %v8425_v49  ;;  %v5606_v51 = vunpack.i.l.bf16 %v8419_v50 }
 0x340   : > { %4589 = vmatprep.mubr.msk.bf16.mxu1 %vm3875_vm1, %v3822_v55  ;;  %v5647_v20 = vunpack.i.h.bf16 %v5645_v24  ;;  %v5646_v44 = vunpack.i.l.bf16 %v5645_v24  ;;  %v5592_v49 = vunpack.i.h.bf16 %v8407_v25 }
 0x341   : > { %v3583_v62 = vsel %vm1613_vm2, %v8249_v8, %v5672_v31  ;;  %v3582_v56 = vsel %vm1613_vm2, %v8257_v37, %v5671_v47  ;;  %v2261_v31 = vld [vmem:[#allocation2 + $0xd8] sm:$0xff]  ;;  %v2262_v47 = vld [vmem:[#allocation2 + $0xe0] sm:$0xff] }
 0x342   : > { %v5675_v6 = vpop.permute.xlu1 %5674  ;;  %v3732_v40 = vsel %vm3717_vm14, %v3699_v22, %v5646_v44  ;;  %v3733_v17 = vsel %vm3717_vm14, %v3700_v61, %v5647_v20  ;;  %v3574_v20 = vsel %vm1613_vm2, %v2261_v31, %v5596_v23  ;;  %v3637_v22 = vsel %vm1745_vm6, %v8302_v7, %v5607_v54 }
 0x343   : > { %v5655_v48 = vpop.permute.xlu0 %5654  ;;  %v5677_v26 = vunpack.i.h.bf16 %v5675_v6  ;;  %v5676_v38 = vunpack.i.l.bf16 %v5675_v6  ;;  %v3606_v44 = vsel %vm1679_vm4, %v3574_v20, %v5601_v29  ;;  %v5591_v6 = vunpack.i.l.bf16 %v8407_v25 }
 0x344   : > { %v5657_v5 = vunpack.i.h.bf16 %v5655_v48  ;;  %v5656_v35 = vunpack.i.l.bf16 %v5655_v48  ;;  %v3575_v48 = vsel %vm1613_vm2, %v2262_v47, %v5597_v12 }
 0x345   : > { %v8505_v36 = vsel %vm1679_vm4, %v3582_v56, %v5676_v38  ;;  %v8508_v63 = vsel %vm1679_vm4, %v3583_v62, %v5677_v26  ;;  %v3607_v53 = vsel %vm1679_vm4, %v3575_v48, %v5602_v11  ;;  %v3638_v26 = vsel %vm1745_vm6, %v3606_v44, %v5591_v6 }
 0x346   : > { %v5680_v52 = vpop.permute.xlu1 %5679  ;;  %v3765_v37 = vsel %vm3750_vm15, %v3732_v40, %v5656_v35  ;;  %v3766_v41 = vsel %vm3750_vm15, %v3733_v17, %v5657_v5  ;;  %v3639_v50 = vsel %vm1745_vm6, %v3607_v53, %v5592_v49  ;;  %v3636_v56 = vsel %vm1745_vm6, %v8299_v27, %v5606_v51 }
 0x347   : > { %v5665_v43 = vpop.permute.xlu0 %5664  ;;  %v5682_v30 = vunpack.i.h.bf16 %v5680_v52  ;;  %v5681_v39 = vunpack.i.l.bf16 %v5680_v52 }
 0x348   : > { %v5667_v33 = vunpack.i.h.bf16 %v5665_v43  ;;  %v5666_v8 = vunpack.i.l.bf16 %v5665_v43 }
 0x349   : > { %v3587_v60 = vsel %vm1613_vm2, %v8357_v28, %v5682_v30  ;;  %v3586_v15 = vsel %vm1613_vm2, %v8367_v32, %v5681_v39 }
 0x34a   : > { %v3798_v9 = vsel %vm3783_vm0, %v3765_v37, %v5666_v8  ;;  %v3799_v0 = vsel %vm3783_vm0, %v3766_v41, %v5667_v33  ;;  %v5685_v13 = vpop.permute.xlu1 %5684 }
 0x34b   : > { %v3823_v3 = vpack.c.bf16 %v3799_v0, %v3798_v9  ;;  %v5695_v59 = vpop.permute.xlu0 %5694  ;;  %v5687_v42 = vunpack.i.h.bf16 %v5685_v13  ;;  %v5686_v58 = vunpack.i.l.bf16 %v5685_v13 }
 0x34c   : > { %v5697_v46 = vunpack.i.h.bf16 %v5695_v59  ;;  %v5696_v2 = vunpack.i.l.bf16 %v5695_v59 }
 0x34d   : > { %4590 = vmatmul.mubr.msk.bf16.gmra.mrb[12].mxu1 %vm3875_vm1, %v3823_v3  ;;  %v8522_v19 = vsel %vm1679_vm4, %v3586_v15, %v5686_v58  ;;  %v8525_v55 = vsel %vm1679_vm4, %v3587_v60, %v5687_v42 }
 0x34e   : > { %v5690_v10 = vpop.permute.xlu1 %5689  ;;  %v3670_v61 = vsel %vm1811_vm8, %v3638_v26, %v5696_v2  ;;  %v3671_v43 = vsel %vm1811_vm8, %v3639_v50, %v5697_v46  ;;  %v5632_v50 = vunpack.i.h.bf16 %v8446_v21 }
 0x34f   : > { %v5705_v24 = vpop.permute.xlu0 %5704  ;;  %v5692_v40 = vunpack.i.h.bf16 %v5690_v10  ;;  %v5691_v25 = vunpack.i.l.bf16 %v5690_v10 }
 0x350   : > { %v5707_v38 = vunpack.i.h.bf16 %v5705_v24  ;;  %v5706_v62 = vunpack.i.l.bf16 %v5705_v24 }
 0x351   : > { %v3669_v58 = vsel %vm1811_vm8, %v3637_v22, %v5692_v40  ;;  %v3668_v60 = vsel %vm1811_vm8, %v3636_v56, %v5691_v25 }
 0x352   : > { %v5700_v32 = vpop.permute.xlu1 %5699  ;;  %v3703_v30 = vsel %vm3684_vm13, %v3670_v61, %v5706_v62  ;;  %v3704_v27 = vsel %vm3684_vm13, %v3671_v43, %v5707_v38  ;;  %v5631_v38 = vunpack.i.l.bf16 %v8446_v21 }
 0x353   : > { %v5715_v28 = vpop.permute.xlu0 %5714  ;;  %v5702_v52 = vunpack.i.h.bf16 %v5700_v32  ;;  %v5701_v37 = vunpack.i.l.bf16 %v5700_v32 }
 0x354   : > { %v5717_v17 = vunpack.i.h.bf16 %v5715_v28  ;;  %v5716_v33 = vunpack.i.l.bf16 %v5715_v28 }
 0x355   : > { %v3701_v12 = vsel %vm3684_vm13, %v3668_v60, %v5701_v37  ;;  %v3702_v23 = vsel %vm3684_vm13, %v3669_v58, %v5702_v52 }
 0x356   : > { %v5710_v35 = vpop.permute.xlu1 %5709  ;;  %v3736_v15 = vsel %vm3717_vm14, %v3703_v30, %v5716_v33  ;;  %v3737_v24 = vsel %vm3717_vm14, %v3704_v27, %v5717_v17  ;;  %v3640_v33 = vsel %vm1745_vm6, %v8413_v18, %v5631_v38 }
 0x357   : > { %v5725_v5 = vpop.permute.xlu0 %5724  ;;  %v5712_v39 = vunpack.i.h.bf16 %v5710_v35  ;;  %v5711_v7 = vunpack.i.l.bf16 %v5710_v35 }
 0x358   : > { %v5727_v41 = vunpack.i.h.bf16 %v5725_v5  ;;  %v5726_v9 = vunpack.i.l.bf16 %v5725_v5 }
 0x359   : > { %v3734_v31 = vsel %vm3717_vm14, %v3701_v12, %v5711_v7  ;;  %v3735_v47 = vsel %vm3717_vm14, %v3702_v23, %v5712_v39  ;;  %v2265_v12 = vld [vmem:[#allocation2 + $0x108] sm:$0xff]  ;;  %v2266_v23 = vld [vmem:[#allocation2 + $0x110] sm:$0xff] }
 0x35a   : > { %v5720_v0 = vpop.permute.xlu1 %5719  ;;  %v3769_v11 = vsel %vm3750_vm15, %v3736_v15, %v5726_v9  ;;  %v3770_v29 = vsel %vm3750_vm15, %v3737_v24, %v5727_v41  ;;  %v5622_v9 = vunpack.i.h.bf16 %v8429_v14 }
 0x35b   : > { %v5735_v8 = vpop.permute.xlu0 %5734  ;;  %v5722_v13 = vunpack.i.h.bf16 %v5720_v0  ;;  %v5721_v42 = vunpack.i.l.bf16 %v5720_v0  ;;  %v5621_v0 = vunpack.i.l.bf16 %v8429_v14 }
 0x35c   : > { %v5737_v3 = vunpack.i.h.bf16 %v5735_v8  ;;  %v5736_v59 = vunpack.i.l.bf16 %v5735_v8  ;;  %v3641_v8 = vsel %vm1745_vm6, %v8416_v57, %v5632_v50 }
 0x35d   : > { %v3767_v20 = vsel %vm3750_vm15, %v3734_v31, %v5721_v42  ;;  %v3768_v44 = vsel %vm3750_vm15, %v3735_v47, %v5722_v13  ;;  %v5627_v13 = vunpack.i.h.bf16 %v8448_v34  ;;  %v5626_v42 = vunpack.i.l.bf16 %v8448_v34 }
 0x35e   : > { %v5730_v28 = vpop.permute.xlu1 %5729  ;;  %v3802_v51 = vsel %vm3783_vm0, %v3769_v11, %v5736_v59  ;;  %v3803_v48 = vsel %vm3783_vm0, %v3770_v29, %v5737_v3  ;;  %v3579_v47 = vsel %vm1613_vm2, %v2266_v23, %v5622_v9  ;;  %v3578_v34 = vsel %vm1613_vm2, %v2265_v12, %v5621_v0 }
 0x35f   : > { %v5745_v10 = vpop.permute.xlu0 %5744  ;;  %v5732_v32 = vunpack.i.h.bf16 %v5730_v28  ;;  %v5731_v54 = vunpack.i.l.bf16 %v5730_v28  ;;  %v3825_v5 = vpack.c.bf16 %v3803_v48, %v3802_v51  ;;  %v3610_v48 = vsel %vm1679_vm4, %v3578_v34, %v5626_v42 }
 0x360   : > { %v5747_v62 = vunpack.i.h.bf16 %v5745_v10  ;;  %v5746_v56 = vunpack.i.l.bf16 %v5745_v10 }
 0x361   : > { %v3800_v53 = vsel %vm3783_vm0, %v3767_v20, %v5731_v54  ;;  %v3801_v46 = vsel %vm3783_vm0, %v3768_v44, %v5732_v32  ;;  %v3611_v20 = vsel %vm1679_vm4, %v3579_v47, %v5627_v13 }
 0x362   : > { %v3824_v49 = vpack.c.bf16 %v3801_v46, %v3800_v53  ;;  %v5740_v6 = vpop.permute.xlu1 %5739  ;;  %v3672_v41 = vsel %vm1811_vm8, %v3640_v33, %v5746_v56  ;;  %v3673_v21 = vsel %vm1811_vm8, %v3641_v8, %v5747_v62 }
 0x363   : > { %v5755_v2 = vpop.permute.xlu0 %5754  ;;  %v5742_v60 = vunpack.i.h.bf16 %v5740_v6  ;;  %v5741_v15 = vunpack.i.l.bf16 %v5740_v6 }
 0x364   : > { %4593 = vmatprep.mubr.msk.bf16.mxu1 %vm3875_vm1, %v3824_v49  ;;  %v5757_v22 = vunpack.i.h.bf16 %v5755_v2  ;;  %v5756_v61 = vunpack.i.l.bf16 %v5755_v2 }
 0x365   : > { %4594 = vmatmul.mubr.msk.bf16.gmra.mrb[16].mxu1 %vm3875_vm1, %v3825_v5  ;;  %v3642_v46 = vsel %vm1745_vm6, %v3610_v48, %v5741_v15  ;;  %v3643_v2 = vsel %vm1745_vm6, %v3611_v20, %v5742_v60 }
 0x366   : > { %v5750_v26 = vpop.permute.xlu1 %5749  ;;  %v3705_v30 = vsel %vm3684_vm13, %v3672_v41, %v5756_v61  ;;  %v3706_v27 = vsel %vm3684_vm13, %v3673_v21, %v5757_v22 }
 0x367   : > { %v5765_v35 = vpop.permute.xlu0 %5764  ;;  %v5752_v11 = vunpack.i.h.bf16 %v5750_v26  ;;  %v5751_v29 = vunpack.i.l.bf16 %v5750_v26 }
 0x368   : > { %v5767_v40 = vunpack.i.h.bf16 %v5765_v35  ;;  %v5766_v25 = vunpack.i.l.bf16 %v5765_v35 }
 0x369   : > { %v3674_v5 = vsel %vm1811_vm8, %v3642_v46, %v5751_v29  ;;  %v3675_v35 = vsel %vm1811_vm8, %v3643_v2, %v5752_v11 }
 0x36a   : > { %v5760_v17 = vpop.permute.xlu1 %5759  ;;  %v3738_v18 = vsel %vm3717_vm14, %v3705_v30, %v5766_v25  ;;  %v3739_v7 = vsel %vm3717_vm14, %v3706_v27, %v5767_v40 }
 0x36b   : > { %v5775_v43 = vpop.permute.xlu0 %5774  ;;  %v5762_v32 = vunpack.i.h.bf16 %v5760_v17  ;;  %v5761_v54 = vunpack.i.l.bf16 %v5760_v17 }
 0x36c   : > { %v5777_v52 = vunpack.i.h.bf16 %v5775_v43  ;;  %v5776_v37 = vunpack.i.l.bf16 %v5775_v43 }
 0x36d   : > { %v3707_v50 = vsel %vm3684_vm13, %v3674_v5, %v5761_v54  ;;  %v3708_v38 = vsel %vm3684_vm13, %v3675_v35, %v5762_v32 }
 0x36e   : > { %v5770_v59 = vpop.permute.xlu1 %5769  ;;  %v3771_v58 = vsel %vm3750_vm15, %v3738_v18, %v5776_v37  ;;  %v3772_v14 = vsel %vm3750_vm15, %v3739_v7, %v5777_v52 }
 0x36f   : > { %v5785_v39 = vpop.permute.xlu0 %5784  ;;  %v5772_v44 = vunpack.i.h.bf16 %v5770_v59  ;;  %v5771_v53 = vunpack.i.l.bf16 %v5770_v59 }
 0x370   : > { %v5787_v57 = vunpack.i.h.bf16 %v5785_v39  ;;  %v5786_v3 = vunpack.i.l.bf16 %v5785_v39 }
 0x371   : > { %v3740_v56 = vsel %vm3717_vm14, %v3707_v50, %v5771_v53  ;;  %v3741_v22 = vsel %vm3717_vm14, %v3708_v38, %v5772_v44 }
 0x372   : > { %v3804_v24 = vsel %vm3783_vm0, %v3771_v58, %v5786_v3  ;;  %v3805_v10 = vsel %vm3783_vm0, %v3772_v14, %v5787_v57  ;;  %v5780_v51 = vpop.permute.xlu1 %5779 }
 0x373   : > { %v3826_v28 = vpack.c.bf16 %v3805_v10, %v3804_v24  ;;  %v5795_v31 = vpop.permute.xlu0 %5794  ;;  %v5782_v49 = vunpack.i.h.bf16 %v5780_v51  ;;  %v5781_v6 = vunpack.i.l.bf16 %v5780_v51 }
 0x374   : > { %v5797_v9 = vunpack.i.h.bf16 %v5795_v31  ;;  %v5796_v0 = vunpack.i.l.bf16 %v5795_v31 }
 0x375   : > { %4597 = vmatprep.mubr.msk.bf16.mxu1 %vm3875_vm1, %v3826_v28  ;;  %v3773_v40 = vsel %vm3750_vm15, %v3740_v56, %v5781_v6  ;;  %v3774_v25 = vsel %vm3750_vm15, %v3741_v22, %v5782_v49 }
 0x376   : > { %v5790_v62 = vpop.permute.xlu1 %5789  ;;  %v3644_v13 = vsel %vm1745_vm6, %v8438_v45, %v5796_v0  ;;  %v3645_v42 = vsel %vm1745_vm6, %v8441_v4, %v5797_v9 }
 0x377   : > { %v5805_v26 = vpop.permute.xlu0 %5804  ;;  %v5792_v61 = vunpack.i.h.bf16 %v5790_v62  ;;  %v5791_v43 = vunpack.i.l.bf16 %v5790_v62 }
 0x378   : > { %v5807_v30 = vunpack.i.h.bf16 %v5805_v26  ;;  %v5806_v27 = vunpack.i.l.bf16 %v5805_v26 }
 0x379   : > { %v3806_v17 = vsel %vm3783_vm0, %v3773_v40, %v5791_v43  ;;  %v3807_v33 = vsel %vm3783_vm0, %v3774_v25, %v5792_v61 }
 0x37a   : > { %v3827_v52 = vpack.c.bf16 %v3807_v33, %v3806_v17  ;;  %v5800_v37 = vpop.permute.xlu1 %5799  ;;  %v3676_v60 = vsel %vm1811_vm8, %v3644_v13, %v5806_v27  ;;  %v3677_v15 = vsel %vm1811_vm8, %v3645_v42, %v5807_v30 }
 0x37b   : > { %v5815_v8 = vpop.permute.xlu0 %5814  ;;  %v5802_v47 = vunpack.i.h.bf16 %v5800_v37  ;;  %v5801_v34 = vunpack.i.l.bf16 %v5800_v37 }
 0x37c   : > { %4598 = vmatmul.mubr.msk.bf16.gmra.mrb[20].mxu1 %vm3875_vm1, %v3827_v52  ;;  %v5817_v39 = vunpack.i.h.bf16 %v5815_v8  ;;  %v5816_v18 = vunpack.i.l.bf16 %v5815_v8 }
 0x37d   : > { %v3646_v5 = vsel %vm1745_vm6, %v8505_v36, %v5801_v34  ;;  %v3647_v35 = vsel %vm1745_vm6, %v8508_v63, %v5802_v47 }
 0x37e   : > { %v5810_v21 = vpop.permute.xlu1 %5809  ;;  %v3709_v24 = vsel %vm3684_vm13, %v3676_v60, %v5816_v18  ;;  %v3710_v10 = vsel %vm3684_vm13, %v3677_v15, %v5817_v39 }
 0x37f   : > { %v5825_v41 = vpop.permute.xlu0 %5824  ;;  %v5812_v51 = vunpack.i.h.bf16 %v5810_v21  ;;  %v5811_v48 = vunpack.i.l.bf16 %v5810_v21 }
 0x380   : > { %v5827_v57 = vunpack.i.h.bf16 %v5825_v41  ;;  %v5826_v3 = vunpack.i.l.bf16 %v5825_v41 }
 0x381   : > { %v3678_v38 = vsel %vm1811_vm8, %v3646_v5, %v5811_v48  ;;  %v3679_v62 = vsel %vm1811_vm8, %v3647_v35, %v5812_v51 }
 0x382   : > { %v5820_v59 = vpop.permute.xlu1 %5819  ;;  %v3742_v23 = vsel %vm3717_vm14, %v3709_v24, %v5826_v3  ;;  %v3743_v11 = vsel %vm3717_vm14, %v3710_v10, %v5827_v57 }
 0x383   : > { %v5835_v7 = vpop.permute.xlu0 %5834  ;;  %v5822_v53 = vunpack.i.h.bf16 %v5820_v59  ;;  %v5821_v46 = vunpack.i.l.bf16 %v5820_v59 }
 0x384   : > { %v5837_v58 = vunpack.i.h.bf16 %v5835_v7  ;;  %v5836_v14 = vunpack.i.l.bf16 %v5835_v7 }
 0x385   : > { %v3711_v22 = vsel %vm3684_vm13, %v3678_v38, %v5821_v46  ;;  %v3712_v61 = vsel %vm3684_vm13, %v3679_v62, %v5822_v53 }
 0x386   : > { %v5830_v28 = vpop.permute.xlu1 %5829  ;;  %v3775_v4 = vsel %vm3750_vm15, %v3742_v23, %v5836_v14  ;;  %v3776_v31 = vsel %vm3750_vm15, %v3743_v11, %v5837_v58 }
 0x387   : > { %v5845_v12 = vpop.permute.xlu0 %5844  ;;  %v5832_v49 = vunpack.i.h.bf16 %v5830_v28  ;;  %v5831_v6 = vunpack.i.l.bf16 %v5830_v28 }
 0x388   : > { %v5847_v29 = vunpack.i.h.bf16 %v5845_v12  ;;  %v5846_v45 = vunpack.i.l.bf16 %v5845_v12 }
 0x389   : > { %v3744_v40 = vsel %vm3717_vm14, %v3711_v22, %v5831_v6  ;;  %v3745_v25 = vsel %vm3717_vm14, %v3712_v61, %v5832_v49 }
 0x38a   : > { %v3808_v32 = vsel %vm3783_vm0, %v3775_v4, %v5846_v45  ;;  %v3809_v54 = vsel %vm3783_vm0, %v3776_v31, %v5847_v29  ;;  %v5840_v2 = vpop.permute.xlu1 %5839 }
 0x38b   : > { %v3828_v20 = vpack.c.bf16 %v3809_v54, %v3808_v32  ;;  %v5855_v44 = vpop.permute.xlu0 %5854  ;;  %v5842_v26 = vunpack.i.h.bf16 %v5840_v2  ;;  %v5841_v50 = vunpack.i.l.bf16 %v5840_v2 }
 0x38c   : > { %v5857_v30 = vunpack.i.h.bf16 %v5855_v44  ;;  %v5856_v27 = vunpack.i.l.bf16 %v5855_v44 }
 0x38d   : > { %4601 = vmatprep.mubr.msk.bf16.mxu1 %vm3875_vm1, %v3828_v20  ;;  %v3777_v63 = vsel %vm3750_vm15, %v3744_v40, %v5841_v50  ;;  %v3778_v33 = vsel %vm3750_vm15, %v3745_v25, %v5842_v26 }
 0x38e   : > { %v5850_v43 = vpop.permute.xlu1 %5849  ;;  %v3648_v58 = vsel %vm1745_vm6, %v8480_v1, %v5856_v27  ;;  %v3649_v14 = vsel %vm1745_vm6, %v8483_v16, %v5857_v30 }
 0x38f   : > { %v5865_v56 = vpop.permute.xlu0 %5864  ;;  %v5852_v36 = vunpack.i.h.bf16 %v5850_v43  ;;  %v5851_v17 = vunpack.i.l.bf16 %v5850_v43 }
 0x390   : > { %v5867_v39 = vunpack.i.h.bf16 %v5865_v56  ;;  %v5866_v18 = vunpack.i.l.bf16 %v5865_v56 }
 0x391   : > { %v3810_v8 = vsel %vm3783_vm0, %v3777_v63, %v5851_v17  ;;  %v3811_v52 = vsel %vm3783_vm0, %v3778_v33, %v5852_v36  ;;  %v8668_v33 = vld [vmem:[%s8780_s4] ss:$0 sm:$0xff] }
 0x392   : > { %v3829_v41 = vpack.c.bf16 %v3811_v52, %v3810_v8  ;;  %v5860_v21 = vpop.permute.xlu1 %5859  ;;  %v3680_v24 = vsel %vm1811_vm8, %v3648_v58, %v5866_v18  ;;  %v3681_v10 = vsel %vm1811_vm8, %v3649_v14, %v5867_v39 }
 0x393   : > { %v5875_v37 = vpop.permute.xlu0 %5874  ;;  %v5862_v47 = vunpack.i.h.bf16 %v5860_v21  ;;  %v5861_v34 = vunpack.i.l.bf16 %v5860_v21 }
 0x394   : > { %4602 = vmatmul.mubr.msk.bf16.gmra.mrb[24].mxu1 %vm3875_vm1, %v3829_v41  ;;  %v5877_v7 = vunpack.i.h.bf16 %v5875_v37  ;;  %v5876_v57 = vunpack.i.l.bf16 %v5875_v37 }
 0x395   : > { %v3650_v6 = vsel %vm1745_vm6, %v8522_v19, %v5861_v34  ;;  %v3651_v5 = vsel %vm1745_vm6, %v8525_v55, %v5862_v47 }
 0x396   : > { %v5870_v0 = vpop.permute.xlu1 %5869  ;;  %v3713_v12 = vsel %vm3684_vm13, %v3680_v24, %v5876_v57  ;;  %v3714_v23 = vsel %vm3684_vm13, %v3681_v10, %v5877_v7 }
 0x397   : > { %v5885_v9 = vpop.permute.xlu0 %5884  ;;  %v5872_v51 = vunpack.i.h.bf16 %v5870_v0  ;;  %v5871_v48 = vunpack.i.l.bf16 %v5870_v0 }
 0x398   : > { %v5887_v59 = vunpack.i.h.bf16 %v5885_v9  ;;  %v5886_v13 = vunpack.i.l.bf16 %v5885_v9 }
 0x399   : > { %v3682_v50 = vsel %vm1811_vm8, %v3650_v6, %v5871_v48  ;;  %v3683_v38 = vsel %vm1811_vm8, %v3651_v5, %v5872_v51 }
 0x39a   : > { %v5880_v42 = vpop.permute.xlu1 %5879  ;;  %v3746_v29 = vsel %vm3717_vm14, %v3713_v12, %v5886_v13  ;;  %v3747_v45 = vsel %vm3717_vm14, %v3714_v23, %v5887_v59 }
 0x39b   : > { %v5895_v3 = vpop.permute.xlu0 %5894  ;;  %v5882_v44 = vunpack.i.h.bf16 %v5880_v42  ;;  %v5881_v53 = vunpack.i.l.bf16 %v5880_v42 }
 0x39c   : > { %v5897_v60 = vunpack.i.h.bf16 %v5895_v3  ;;  %v5896_v15 = vunpack.i.l.bf16 %v5895_v3 }
 0x39d   : > { %v3715_v62 = vsel %vm3684_vm13, %v3682_v50, %v5881_v53  ;;  %v3716_v56 = vsel %vm3684_vm13, %v3683_v38, %v5882_v44 }
 0x39e   : > { %v5890_v4 = vpop.permute.xlu1 %5889  ;;  %v3779_v16 = vsel %vm3750_vm15, %v3746_v29, %v5896_v15  ;;  %v3780_v31 = vsel %vm3750_vm15, %v3747_v45, %v5897_v60 }
 0x39f   : > { %v5905_v11 = vpop.permute.xlu0 %5904  ;;  %v5892_v2 = vunpack.i.h.bf16 %v5890_v4  ;;  %v5891_v49 = vunpack.i.l.bf16 %v5890_v4 }
 0x3a0   : > { %v5907_v28 = vunpack.i.h.bf16 %v5905_v11  ;;  %v5906_v1 = vunpack.i.l.bf16 %v5905_v11 }
 0x3a1   : > { %v3748_v61 = vsel %vm3717_vm14, %v3715_v62, %v5891_v49  ;;  %v3749_v43 = vsel %vm3717_vm14, %v3716_v56, %v5892_v2 }
 0x3a2   : > { %v3812_v32 = vsel %vm3783_vm0, %v3779_v16, %v5906_v1  ;;  %v3813_v54 = vsel %vm3783_vm0, %v3780_v31, %v5907_v28  ;;  %v5900_v46 = vpop.permute.xlu1 %5899 }
 0x3a3   : > { %v3830_v20 = vpack.c.bf16 %v3813_v54, %v3812_v32  ;;  %v5902_v35 = vunpack.i.h.bf16 %v5900_v46  ;;  %v5901_v26 = vunpack.i.l.bf16 %v5900_v46 }
 0x3a5   : > { %4605 = vmatprep.mubr.msk.bf16.mxu1 %vm3875_vm1, %v3830_v20  ;;  %v3781_v55 = vsel %vm3750_vm15, %v3748_v61, %v5901_v26  ;;  %v3782_v25 = vsel %vm3750_vm15, %v3749_v43, %v5902_v35 }
 0x3a6   : > { %v5910_v22 = vpop.permute.xlu1 %5909 }
 0x3a7   : > { %v5912_v19 = vunpack.i.h.bf16 %v5910_v22  ;;  %v5911_v40 = vunpack.i.l.bf16 %v5910_v22 }
 0x3a9   : > { %v3814_v36 = vsel %vm3783_vm0, %v3781_v55, %v5911_v40  ;;  %v3815_v17 = vsel %vm3783_vm0, %v3782_v25, %v5912_v19 }
 0x3aa   : > { %v3831_v63 = vpack.c.bf16 %v3815_v17, %v3814_v36 }
 0x3ac   : > { %4606 = vmatmul.mubr.msk.bf16.gmra.mrb[28].mxu1 %vm3875_vm1, %v3831_v63 }
 0x3b4   : > { %v4579_v8 = vpop.f32.mrb[0].mxu1 }
 0x3b5   : > { %v3971_v52 = vadd.f32 %v4579_v8, %v8668_v33  ;;  %v3962_v37 = vpop.f32.mrb[1].mxu1 }
 0x3b6   : > { %v3963_v41 = vadd.f32 %v8668_v33, %v3962_v37  ;;  %v4580_v21 = vpop.f32.mrb[2].mxu1 }
 0x3b7   : > { %v4091_v9 = vmax.f32 %v3971_v52, 0.0  ;;  %v3974_v0 = vadd.f32 %v4580_v21, %v8668_v33  ;;  %v3965_v30 = vpop.f32.mrb[3].mxu1 }
 0x3b8   : > { %v4089_v27 = vmax.f32 %v3963_v41, 0.0  ;;  %v3966_v39 = vadd.f32 %v8668_v33, %v3965_v30 }
 0x3b9   : > { %4123 = vst.msk [vmem:[%s8676_s20 + $0x10] sm:$0xff] %vm1613_vm2, %v4091_v9  ;;  %v4092_v18 = vmax.f32 %v3974_v0, 0.0 }
 0x3ba   : > { %4121 = vst.msk [vmem:[%s8676_s20] sm:$0xff] %vm1613_vm2, %v4089_v27  ;;  %v4090_v7 = vmax.f32 %v3966_v39, 0.0 }
 0x3bb   : > { %4124 = vst.msk [vmem:[%s8676_s20 + $0x18] sm:$0xff] %vm1613_vm2, %v4092_v18 }
 0x3bc   : > { %4122 = vst.msk [vmem:[%s8676_s20 + $0x8] sm:$0xff] %vm1613_vm2, %v4090_v7 }
 0x3d4   : > { %v4583_v57 = vpop.f32.mrb[4].mxu1 }
 0x3d5   : > { %v3987_v3 = vadd.f32 %v4583_v57, %v8668_v33  ;;  %v3978_v59 = vpop.f32.mrb[5].mxu1 }
 0x3d6   : > { %v3979_v13 = vadd.f32 %v8668_v33, %v3978_v59  ;;  %v4584_v42 = vpop.f32.mrb[6].mxu1 }
 0x3d7   : > { %v4095_v58 = vmax.f32 %v3987_v3, 0.0  ;;  %v3990_v14 = vadd.f32 %v4584_v42, %v8668_v33  ;;  %v3981_v60 = vpop.f32.mrb[7].mxu1 }
 0x3d8   : > { %v4093_v15 = vmax.f32 %v3979_v13, 0.0  ;;  %v3982_v24 = vadd.f32 %v8668_v33, %v3981_v60 }
 0x3d9   : > { %4127 = vst.msk [vmem:[%s8676_s20 + $0x30] sm:$0xff] %vm1613_vm2, %v4095_v58  ;;  %v4096_v10 = vmax.f32 %v3990_v14, 0.0 }
 0x3da   : > { %4125 = vst.msk [vmem:[%s8676_s20 + $0x20] sm:$0xff] %vm1613_vm2, %v4093_v15  ;;  %v4094_v12 = vmax.f32 %v3982_v24, 0.0 }
 0x3db   : > { %4128 = vst.msk [vmem:[%s8676_s20 + $0x38] sm:$0xff] %vm1613_vm2, %v4096_v10 }
 0x3dc   : > { %4126 = vst.msk [vmem:[%s8676_s20 + $0x28] sm:$0xff] %vm1613_vm2, %v4094_v12 }
 0x3f4   : > { %v4587_v23 = vpop.f32.mrb[8].mxu1 }
 0x3f5   : > { %v4003_v11 = vadd.f32 %v4587_v23, %v8668_v33  ;;  %v3994_v29 = vpop.f32.mrb[9].mxu1 }
 0x3f6   : > { %v3995_v45 = vadd.f32 %v8668_v33, %v3994_v29  ;;  %v4588_v28 = vpop.f32.mrb[10].mxu1 }
 0x3f7   : > { %v4099_v1 = vmax.f32 %v4003_v11, 0.0  ;;  %v4006_v4 = vadd.f32 %v4588_v28, %v8668_v33  ;;  %v3997_v16 = vpop.f32.mrb[11].mxu1 }
 0x3f8   : > { %v4097_v31 = vmax.f32 %v3995_v45, 0.0  ;;  %v3998_v47 = vadd.f32 %v8668_v33, %v3997_v16 }
 0x3f9   : > { %4131 = vst.msk [vmem:[%s8676_s20 + $0x50] sm:$0xff] %vm1613_vm2, %v4099_v1  ;;  %v4100_v34 = vmax.f32 %v4006_v4, 0.0 }
 0x3fa   : > { %4129 = vst.msk [vmem:[%s8676_s20 + $0x40] sm:$0xff] %vm1613_vm2, %v4097_v31  ;;  %v4098_v32 = vmax.f32 %v3998_v47, 0.0 }
 0x3fb   : > { %4132 = vst.msk [vmem:[%s8676_s20 + $0x58] sm:$0xff] %vm1613_vm2, %v4100_v34 }
 0x3fc   : > { %4130 = vst.msk [vmem:[%s8676_s20 + $0x48] sm:$0xff] %vm1613_vm2, %v4098_v32 }
 0x420   : > { %v4591_v54 = vpop.f32.mrb[12].mxu1 }
 0x421   : > { %v4019_v51 = vadd.f32 %v4591_v54, %v8668_v33  ;;  %v4010_v48 = vpop.f32.mrb[13].mxu1 }
 0x422   : > { %v4011_v20 = vadd.f32 %v8668_v33, %v4010_v48  ;;  %v4592_v44 = vpop.f32.mrb[14].mxu1 }
 0x423   : > { %v4103_v53 = vmax.f32 %v4019_v51, 0.0  ;;  %v4022_v46 = vadd.f32 %v4592_v44, %v8668_v33  ;;  %v4013_v2 = vpop.f32.mrb[15].mxu1 }
 0x424   : > { %v4101_v49 = vmax.f32 %v4011_v20, 0.0  ;;  %v4014_v6 = vadd.f32 %v8668_v33, %v4013_v2 }
 0x425   : > { %4135 = vst.msk [vmem:[%s8676_s20 + $0x70] sm:$0xff] %vm1613_vm2, %v4103_v53  ;;  %v4104_v5 = vmax.f32 %v4022_v46, 0.0 }
 0x426   : > { %4133 = vst.msk [vmem:[%s8676_s20 + $0x60] sm:$0xff] %vm1613_vm2, %v4101_v49  ;;  %v4102_v35 = vmax.f32 %v4014_v6, 0.0 }
 0x427   : > { %4136 = vst.msk [vmem:[%s8676_s20 + $0x78] sm:$0xff] %vm1613_vm2, %v4104_v5 }
 0x428   : > { %4134 = vst.msk [vmem:[%s8676_s20 + $0x68] sm:$0xff] %vm1613_vm2, %v4102_v35 }
 0x438   : > { %v4595_v26 = vpop.f32.mrb[16].mxu1 }
 0x439   : > { %v4035_v50 = vadd.f32 %v4595_v26, %v8668_v33  ;;  %v4026_v38 = vpop.f32.mrb[17].mxu1 }
 0x43a   : > { %v4027_v62 = vadd.f32 %v8668_v33, %v4026_v38  ;;  %v4596_v56 = vpop.f32.mrb[18].mxu1 }
 0x43b   : > { %v4107_v22 = vmax.f32 %v4035_v50, 0.0  ;;  %v4038_v61 = vadd.f32 %v4596_v56, %v8668_v33  ;;  %v4029_v43 = vpop.f32.mrb[19].mxu1 }
 0x43c   : > { %v4105_v19 = vmax.f32 %v4027_v62, 0.0  ;;  %v4030_v40 = vadd.f32 %v8668_v33, %v4029_v43 }
 0x43d   : > { %4139 = vst.msk [vmem:[%s8676_s20 + $0x90] sm:$0xff] %vm1613_vm2, %v4107_v22  ;;  %v4108_v55 = vmax.f32 %v4038_v61, 0.0 }
 0x43e   : > { %4137 = vst.msk [vmem:[%s8676_s20 + $0x80] sm:$0xff] %vm1613_vm2, %v4105_v19  ;;  %v4106_v25 = vmax.f32 %v4030_v40, 0.0 }
 0x43f   : > { %4140 = vst.msk [vmem:[%s8676_s20 + $0x98] sm:$0xff] %vm1613_vm2, %v4108_v55 }
 0x440   : > { %4138 = vst.msk [vmem:[%s8676_s20 + $0x88] sm:$0xff] %vm1613_vm2, %v4106_v25 }
 0x44f   : > { %v4599_v36 = vpop.f32.mrb[20].mxu1 }
 0x450   : > { %v4051_v17 = vadd.f32 %v4599_v36, %v8668_v33  ;;  %v4042_v63 = vpop.f32.mrb[21].mxu1 }
 0x451   : > { %v4043_v8 = vadd.f32 %v8668_v33, %v4042_v63  ;;  %v4600_v52 = vpop.f32.mrb[22].mxu1 }
 0x452   : > { %v4111_v37 = vmax.f32 %v4051_v17, 0.0  ;;  %v4054_v41 = vadd.f32 %v4600_v52, %v8668_v33  ;;  %v4045_v21 = vpop.f32.mrb[23].mxu1 }
 0x453   : > { %v4109_v9 = vmax.f32 %v4043_v8, 0.0  ;;  %v4046_v0 = vadd.f32 %v8668_v33, %v4045_v21 }
 0x454   : > { %4143 = vst.msk [vmem:[%s8676_s20 + $0xb0] sm:$0xff] %vm1613_vm2, %v4111_v37  ;;  %v4112_v30 = vmax.f32 %v4054_v41, 0.0 }
 0x455   : > { %4141 = vst.msk [vmem:[%s8676_s20 + $0xa0] sm:$0xff] %vm1613_vm2, %v4109_v9  ;;  %v4110_v27 = vmax.f32 %v4046_v0, 0.0 }
 0x456   : > { %4144 = vst.msk [vmem:[%s8676_s20 + $0xb8] sm:$0xff] %vm1613_vm2, %v4112_v30 }
 0x457   : > { %4142 = vst.msk [vmem:[%s8676_s20 + $0xa8] sm:$0xff] %vm1613_vm2, %v4110_v27 }
 0x467   : > { %v4603_v39 = vpop.f32.mrb[24].mxu1 }
 0x468   : > { %v4067_v18 = vadd.f32 %v4603_v39, %v8668_v33  ;;  %v4058_v7 = vpop.f32.mrb[25].mxu1 }
 0x469   : > { %v4059_v57 = vadd.f32 %v8668_v33, %v4058_v7  ;;  %v4604_v3 = vpop.f32.mrb[26].mxu1 }
 0x46a   : > { %v4115_v59 = vmax.f32 %v4067_v18, 0.0  ;;  %v4070_v13 = vadd.f32 %v4604_v3, %v8668_v33  ;;  %v4061_v42 = vpop.f32.mrb[27].mxu1 }
 0x46b   : > { %v4113_v58 = vmax.f32 %v4059_v57, 0.0  ;;  %v4062_v14 = vadd.f32 %v8668_v33, %v4061_v42 }
 0x46c   : > { %4147 = vst.msk [vmem:[%s8676_s20 + $0xd0] sm:$0xff] %vm1613_vm2, %v4115_v59  ;;  %v4116_v60 = vmax.f32 %v4070_v13, 0.0 }
 0x46d   : > { %4145 = vst.msk [vmem:[%s8676_s20 + $0xc0] sm:$0xff] %vm1613_vm2, %v4113_v58  ;;  %v4114_v15 = vmax.f32 %v4062_v14, 0.0 }
 0x46e   : > { %4148 = vst.msk [vmem:[%s8676_s20 + $0xd8] sm:$0xff] %vm1613_vm2, %v4116_v60 }
 0x46f   : > { %4146 = vst.msk [vmem:[%s8676_s20 + $0xc8] sm:$0xff] %vm1613_vm2, %v4114_v15 }
 0x47f   : > { %v4607_v24 = vpop.f32.mrb[28].mxu1 }
 0x480   : > { %v4083_v10 = vadd.f32 %v4607_v24, %v8668_v33  ;;  %v4074_v12 = vpop.f32.mrb[29].mxu1 }
 0x481   : > { %v4075_v23 = vadd.f32 %v8668_v33, %v4074_v12  ;;  %v4608_v11 = vpop.f32.mrb[30].mxu1 }
 0x482   : > { %v4119_v29 = vmax.f32 %v4083_v10, 0.0  ;;  %v4086_v45 = vadd.f32 %v4608_v11, %v8668_v33  ;;  %v4077_v28 = vpop.f32.mrb[31].mxu1 }
 0x483   : > { %v4117_v1 = vmax.f32 %v4075_v23, 0.0  ;;  %v4078_v4 = vadd.f32 %v8668_v33, %v4077_v28 }
 0x484   : > { %4151 = vst.msk [vmem:[%s8676_s20 + $0xf0] sm:$0xff] %vm1613_vm2, %v4119_v29  ;;  %v4120_v16 = vmax.f32 %v4086_v45, 0.0 }
 0x485   : > { %4149 = vst.msk [vmem:[%s8676_s20 + $0xe0] sm:$0xff] %vm1613_vm2, %v4117_v1  ;;  %v4118_v31 = vmax.f32 %v4078_v4, 0.0 }
 0x486   : > { %4152 = vst.msk [vmem:[%s8676_s20 + $0xf8] sm:$0xff] %vm1613_vm2, %v4120_v16 }
 0x487   : > { %4150 = vst.msk [vmem:[%s8676_s20 + $0xe8] sm:$0xff] %vm1613_vm2, %v4118_v31 }
 0x488 PF: > { %s17_s21 = sadd.s32 1, %s5927_s21  }
 0x489   : > { %p14_p4 = scmp.ge.s32.totalorder %s17_s21, 4  }
 0x48b   :  { %16 = sbr.rel (!%p14_p4) target bundleno = 1 (0x1), region = 87 }

</bundles_post_ra>
